<compile_context>
chip_gen: v6e
topology: v6e:2x2x1
jax: 0.10.0
libtpu: 0.0.40
codegen_flags: <defaults>
</compile_context>

<pallas_src>
import functools

import jax
import jax.numpy as jnp
from jax.experimental import pallas as pl
from jax.experimental.pallas import tpu as pltpu


def _round_up(x, m):
    return ((x + m - 1) // m) * m


# ---------------------------------------------------------------------------
# Fused Pallas kernel: conv(4x4,s2) -> LReLU -> conv(3x3) -> LReLU -> conv(3x3)
# -> LReLU.  One grid step per batch element, everything resident in VMEM.
# ---------------------------------------------------------------------------
def _down_module_pallas(x_s2d, w1m, b1m, w2m, b2m, w3m, b3m, *,
                        N, OH, OW, Cin4, Cout, Coutp, out_dtype):
    OHW = OH * OW
    H2p, W2p = OH + 1, OW + 1          # space-to-depth image spatial size
    mxu_dtype = x_s2d.dtype
    bytes_mxu = jnp.dtype(mxu_dtype).itemsize

    def kernel(x_ref, w1_ref, b1_ref, w2_ref, b2_ref, w3_ref, b3_ref,
               o_ref, y1p_ref, y2p_ref):
        # Scratch persists across grid steps / cores: re-zero the halo'd
        # buffers so the 1-pixel border is valid zero padding for the 3x3s.
        y1p_ref[...] = jnp.zeros_like(y1p_ref)
        y2p_ref[...] = jnp.zeros_like(y2p_ref)

        xs = x_ref[0]                               # (H2p, W2p, 4*Cin)

        # ---- conv1: 4x4 stride 2 == 2x2 stride 1 on space-to-depth input ---
        acc = jnp.zeros((OHW, Coutp), jnp.float32)
        for ah in range(2):
            for aw in range(2):
                patch = xs[ah:ah + OH, aw:aw + OW, :]
                acc = acc + jnp.dot(patch.reshape(OHW, Cin4),
                                    w1_ref[2 * ah + aw],
                                    preferred_element_type=jnp.float32)
        acc = acc + b1_ref[...]
        acc = jnp.where(acc >= 0.0, acc, 0.1 * acc)
        y1p_ref[1:OH + 1, 1:OW + 1, :] = (
            acc.reshape(OH, OW, Coutp).astype(y1p_ref.dtype))

        # ---- conv2: 3x3, stride 1, pad 1 (halo is the zeroed border) --------
        y1p = y1p_ref[...]                          # (OH+2, OW+2, Coutp)
        acc = jnp.zeros((OHW, Coutp), jnp.float32)
        for kh in range(3):
            for kw in range(3):
                patch = y1p[kh:kh + OH, kw:kw + OW, :]
                acc = acc + jnp.dot(patch.reshape(OHW, Coutp),
                                    w2_ref[3 * kh + kw],
                                    preferred_element_type=jnp.float32)
        acc = acc + b2_ref[...]
        acc = jnp.where(acc >= 0.0, acc, 0.1 * acc)
        y2p_ref[1:OH + 1, 1:OW + 1, :] = (
            acc.reshape(OH, OW, Coutp).astype(y2p_ref.dtype))

        # ---- conv3: 3x3, stride 1, pad 1 -------------------------------------
        y2p = y2p_ref[...]
        acc = jnp.zeros((OHW, Coutp), jnp.float32)
        for kh in range(3):
            for kw in range(3):
                patch = y2p[kh:kh + OH, kw:kw + OW, :]
                acc = acc + jnp.dot(patch.reshape(OHW, Coutp),
                                    w3_ref[3 * kh + kw],
                                    preferred_element_type=jnp.float32)
        acc = acc + b3_ref[...]
        acc = jnp.where(acc >= 0.0, acc, 0.1 * acc)
        o_ref[0] = acc[:, :Cout].astype(o_ref.dtype)

    # Scoped-VMEM estimate (double-buffered blocks + weights + scratches).
    x_blk = H2p * W2p * Cin4 * bytes_mxu
    w_bytes = (4 * Cin4 * Coutp + 2 * 9 * Coutp * Coutp) * bytes_mxu + 3 * Coutp * 4
    scratch = 2 * (OH + 2) * (OW + 2) * Coutp * bytes_mxu
    o_blk = OHW * Cout * jnp.dtype(out_dtype).itemsize
    est = 2 * x_blk + 2 * w_bytes + scratch + 2 * o_blk
    vmem_limit = int(min(max(32 * 1024 * 1024, est + (8 << 20)),
                         120 * 1024 * 1024))

    return pl.pallas_call(
        kernel,
        out_shape=jax.ShapeDtypeStruct((N, OHW, Cout), out_dtype),
        grid=(N,),
        in_specs=[
            # space-to-depth input image of sample n
            pl.BlockSpec((1, H2p, W2p, Cin4), lambda n: (n, 0, 0, 0)),
            # weights / biases: constant block index -> fetched once
            pl.BlockSpec((4, Cin4, Coutp), lambda n: (0, 0, 0)),
            pl.BlockSpec((1, Coutp), lambda n: (0, 0)),
            pl.BlockSpec((9, Coutp, Coutp), lambda n: (0, 0, 0)),
            pl.BlockSpec((1, Coutp), lambda n: (0, 0)),
            pl.BlockSpec((9, Coutp, Coutp), lambda n: (0, 0, 0)),
            pl.BlockSpec((1, Coutp), lambda n: (0, 0)),
        ],
        out_specs=pl.BlockSpec((1, OHW, Cout), lambda n: (n, 0, 0)),
        scratch_shapes=[
            pltpu.VMEM((OH + 2, OW + 2, Coutp), mxu_dtype),   # y1 (halo'd)
            pltpu.VMEM((OH + 2, OW + 2, Coutp), mxu_dtype),   # y2 (halo'd)
        ],
        compiler_params=pltpu.CompilerParams(
            dimension_semantics=("parallel",),
            vmem_limit_bytes=vmem_limit,
        ),
    )(x_s2d, w1m, b1m, w2m, b2m, w3m, b3m)


# ---------------------------------------------------------------------------
# Parameter init (matches PyTorch Conv2d default init)
# ---------------------------------------------------------------------------
def init_down_module_params(key, input_channels, output_channels,
                            dtype=jnp.float32):
    ks = jax.random.split(key, 6)

    def conv_init(kw_key, kb_key, cin, cout, ksz):
        fan_in = cin * ksz * ksz
        bound = 1.0 / jnp.sqrt(fan_in)
        w = jax.random.uniform(kw_key, (cout, cin, ksz, ksz), dtype,
                               minval=-bound, maxval=bound)
        b = jax.random.uniform(kb_key, (cout,), dtype,
                               minval=-bound, maxval=bound)
        return w, b

    w1, b1 = conv_init(ks[0], ks[1], input_channels, output_channels, 4)
    w2, b2 = conv_init(ks[2], ks[3], output_channels, output_channels, 3)
    w3, b3 = conv_init(ks[4], ks[5], output_channels, output_channels, 3)
    return dict(w1=w1, b1=b1, w2=w2, b2=b2, w3=w3, b3=b3)


# ---------------------------------------------------------------------------
# Forward wrapper: layout plumbing only (NCHW<->NHWC, space-to-depth, weight
# repack + channel pad).  All conv math runs inside the Pallas kernel.
# ---------------------------------------------------------------------------
@functools.partial(jax.jit, static_argnames=("mxu_dtype",))
def down_module_forward(x_nchw, params, mxu_dtype=jnp.bfloat16):
    N, Cin, H, W = x_nchw.shape
    assert H % 2 == 0 and W % 2 == 0, "DownModule expects even spatial dims"
    Cout = params["b1"].shape[0]
    OH, OW = H // 2, W // 2
    H2p, W2p = OH + 1, OW + 1
    Cin4 = 4 * Cin
    Coutp = _round_up(Cout, 128)        # lane-dense padded channel width

    # NCHW -> NHWC, pad=1 spatially, then 2x2 space-to-depth so conv1
    # (k=4, s=2) becomes a k=2, s=1 conv with 4*Cin input channels.
    x = jnp.transpose(x_nchw, (0, 2, 3, 1))
    x = jnp.pad(x, ((0, 0), (1, 1), (1, 1), (0, 0)))          # (N, H+2, W+2, C)
    x = x.reshape(N, H2p, 2, W2p, 2, Cin)                     # (n,a,ph,b,pw,c)
    x = jnp.transpose(x, (0, 1, 3, 2, 4, 5))                  # (n,a,b,ph,pw,c)
    x = x.reshape(N, H2p, W2p, Cin4).astype(mxu_dtype)

    def prep_w1(w):                    # (Cout, Cin, 4, 4) -> (4, 4*Cin, Coutp)
        w = w.reshape(Cout, Cin, 2, 2, 2, 2)                  # (o,c,ah,ph,aw,pw)
        w = jnp.transpose(w, (2, 4, 3, 5, 1, 0))              # (ah,aw,ph,pw,c,o)
        w = w.reshape(4, Cin4, Cout)
        return jnp.pad(w, ((0, 0), (0, 0),
                           (0, Coutp - Cout))).astype(mxu_dtype)

    def prep_w3x3(w):                  # (Cout, Cout, 3, 3) -> (9, Coutp, Coutp)
        w = jnp.transpose(w, (2, 3, 1, 0)).reshape(9, Cout, Cout)
        return jnp.pad(w, ((0, 0), (0, Coutp - Cout),
                           (0, Coutp - Cout))).astype(mxu_dtype)

    def prep_b(b):
        return jnp.pad(b, (0, Coutp - Cout)).reshape(1, Coutp).astype(jnp.float32)

    w1m = prep_w1(params["w1"])        # (4,  4*Cin, Coutp)
    w2m = prep_w3x3(params["w2"])      # (9,  Coutp, Coutp)
    w3m = prep_w3x3(params["w3"])      # (9,  Coutp, Coutp)
    b1m, b2m, b3m = prep_b(params["b1"]), prep_b(params["b2"]), prep_b(params["b3"])

    out = _down_module_pallas(x, w1m, b1m, w2m, b2m, w3m, b3m,
                              N=N, OH=OH, OW=OW, Cin4=Cin4, Cout=Cout,
                              Coutp=Coutp, out_dtype=x_nchw.dtype)
    # (N, OH*OW, Cout) -> NCHW (PyTorch convention)
    return jnp.transpose(out.reshape(N, OH, OW, Cout), (0, 3, 1, 2))


# ---------------------------------------------------------------------------
# Pure-JAX reference (f32) for the correctness check
# ---------------------------------------------------------------------------
def _ref_conv_lrelu(x_nhwc, w_oihw, b, stride, pad):
    w_hwio = jnp.transpose(w_oihw, (2, 3, 1, 0))
    y = jax.lax.conv_general_dilated(
        x_nhwc, w_hwio, window_strides=(stride, stride),
        padding=((pad, pad), (pad, pad)),
        dimension_numbers=("NHWC", "HWIO", "NHWC"))
    y = y + b
    return jnp.where(y >= 0.0, y, 0.1 * y)


def down_module_reference(x_nchw, params):
    x = jnp.transpose(x_nchw, (0, 2, 3, 1))
    x = _ref_conv_lrelu(x, params["w1"], params["b1"], 2, 1)
    x = _ref_conv_lrelu(x, params["w2"], params["b2"], 1, 1)
    x = _ref_conv_lrelu(x, params["w3"], params["b3"], 1, 1)
    return jnp.transpose(x, (0, 3, 1, 2))


if __name__ == "__main__":
    key = jax.random.PRNGKey(0)
    k_x, k_p = jax.random.split(key)

    N, Cin, H, W = 2, 4, 16, 16
    Cout = 8

    x = jax.random.normal(k_x, (N, Cin, H, W), dtype=jnp.float32)
    params = init_down_module_params(k_p, Cin, Cout)

    out = jax.block_until_ready(down_module_forward(x, params))
    assert out.shape == (N, Cout, H // 2, W // 2), out.shape

    ref = jax.block_until_ready(down_module_reference(x, params))
    # bf16 MXU operands (f32 accumulate) -> tolerance sized for bf16 rounding.
    if not jnp.allclose(out, ref, atol=5e-2, rtol=5e-2):
        max_err = float(jnp.max(jnp.abs(out - ref)))
        raise AssertionError(
            f"Pallas DownModule output mismatch vs reference (max err {max_err})")

    print("KERNEL_OK")
</pallas_src>

<mosaic_0001>
module attributes {stable_mosaic.version = 11 : i64} {
  func.func @kernel(%arg0: i32, %arg1: memref<1x9x9x16xbf16, #tpu.memory_space<vmem>>, %arg2: memref<4x16x128xbf16, #tpu.memory_space<vmem>>, %arg3: memref<1x128xf32, #tpu.memory_space<vmem>>, %arg4: memref<9x128x128xbf16, #tpu.memory_space<vmem>>, %arg5: memref<1x128xf32, #tpu.memory_space<vmem>>, %arg6: memref<9x128x128xbf16, #tpu.memory_space<vmem>>, %arg7: memref<1x128xf32, #tpu.memory_space<vmem>>, %arg8: memref<1x64x8xf32, #tpu.memory_space<vmem>>, %arg9: memref<10x10x128xbf16, #tpu.memory_space<vmem>>, %arg10: memref<10x10x128xbf16, #tpu.memory_space<vmem>>) attributes {dimension_semantics = [#tpu.dimension_semantics<parallel>], iteration_bounds = array<i64: 2>, scalar_prefetch = 0 : i64, scratch_operands = 2 : i64, tpu.core_type = #tpu.core_type<tc>, window_params = [{transform_indices = @transform_0, window_bounds = array<i64: 1, 9, 9, 16>}, {pipeline_mode = #tpu.pipeline_mode<synchronous>, transform_indices = @transform_1, window_bounds = array<i64: 4, 16, 128>}, {pipeline_mode = #tpu.pipeline_mode<synchronous>, transform_indices = @transform_2, window_bounds = array<i64: 1, 128>}, {pipeline_mode = #tpu.pipeline_mode<synchronous>, transform_indices = @transform_3, window_bounds = array<i64: 9, 128, 128>}, {pipeline_mode = #tpu.pipeline_mode<synchronous>, transform_indices = @transform_4, window_bounds = array<i64: 1, 128>}, {pipeline_mode = #tpu.pipeline_mode<synchronous>, transform_indices = @transform_5, window_bounds = array<i64: 9, 128, 128>}, {pipeline_mode = #tpu.pipeline_mode<synchronous>, transform_indices = @transform_6, window_bounds = array<i64: 1, 128>}, {transform_indices = @transform_7, window_bounds = array<i64: 1, 64, 8>}]} {
    %cst = arith.constant 0.000000e+00 : bf16
    %0 = vector.broadcast %cst : bf16 to vector<10x10x128xbf16>
    %c0 = arith.constant 0 : index
    %c0_0 = arith.constant 0 : index
    %c0_1 = arith.constant 0 : index
    %1 = vector.load %arg9[%c0, %c0_0, %c0_1] : memref<10x10x128xbf16, #tpu.memory_space<vmem>>, vector<10x10x128xbf16>
    tpu.vector_store %arg9[%c0, %c0_0, %c0_1], %0 {strides = array<i32>} : memref<10x10x128xbf16, #tpu.memory_space<vmem>>, vector<10x10x128xbf16>,
    %cst_2 = arith.constant 0.000000e+00 : bf16
    %2 = vector.broadcast %cst_2 : bf16 to vector<10x10x128xbf16>
    %c0_3 = arith.constant 0 : index
    %c0_4 = arith.constant 0 : index
    %c0_5 = arith.constant 0 : index
    %3 = vector.load %arg10[%c0_3, %c0_4, %c0_5] : memref<10x10x128xbf16, #tpu.memory_space<vmem>>, vector<10x10x128xbf16>
    tpu.vector_store %arg10[%c0_3, %c0_4, %c0_5], %2 {strides = array<i32>} : memref<10x10x128xbf16, #tpu.memory_space<vmem>>, vector<10x10x128xbf16>,
    %c0_6 = arith.constant 0 : index
    %c0_7 = arith.constant 0 : index
    %c0_8 = arith.constant 0 : index
    %c0_9 = arith.constant 0 : index
    %4 = vector.load %arg1[%c0_6, %c0_7, %c0_8, %c0_9] : memref<1x9x9x16xbf16, #tpu.memory_space<vmem>>, vector<1x9x9x16xbf16>
    %5 = vector.shape_cast %4 : vector<1x9x9x16xbf16> to vector<9x9x16xbf16>
    %cst_10 = arith.constant 0.000000e+00 : f32
    %6 = vector.broadcast %cst_10 : f32 to vector<64x128xf32>
    %7 = vector.extract_strided_slice %5 {offsets = [0, 0, 0], sizes = [8, 8, 16], strides = [1, 1, 1]} : vector<9x9x16xbf16> to vector<8x8x16xbf16>
    %8 = vector.shape_cast %7 : vector<8x8x16xbf16> to vector<64x16xbf16>
    %c0_11 = arith.constant 0 : index
    %c0_12 = arith.constant 0 : index
    %c0_13 = arith.constant 0 : index
    %9 = vector.load %arg2[%c0_11, %c0_12, %c0_13] : memref<4x16x128xbf16, #tpu.memory_space<vmem>>, vector<1x16x128xbf16>
    %10 = vector.shape_cast %9 : vector<1x16x128xbf16> to vector<16x128xbf16>
    %cst_14 = arith.constant dense<0.000000e+00> : vector<64x128xf32>
    %11 = tpu.matmul %8, %10, %cst_14 {dimension_numbers = #tpu.dot_dimension_numbers<[1], [0], [0], [1], [0, 0, 1, 1], [], []>} : vector<64x16xbf16>, vector<16x128xbf16>, vector<64x128xf32> -> vector<64x128xf32>
    %12 = arith.addf %6, %11 : vector<64x128xf32>
    %13 = vector.extract_strided_slice %5 {offsets = [0, 1, 0], sizes = [8, 8, 16], strides = [1, 1, 1]} : vector<9x9x16xbf16> to vector<8x8x16xbf16>
    %14 = vector.shape_cast %13 : vector<8x8x16xbf16> to vector<64x16xbf16>
    %c1 = arith.constant 1 : index
    %c0_15 = arith.constant 0 : index
    %c0_16 = arith.constant 0 : index
    %15 = vector.load %arg2[%c1, %c0_15, %c0_16] : memref<4x16x128xbf16, #tpu.memory_space<vmem>>, vector<1x16x128xbf16>
    %16 = vector.shape_cast %15 : vector<1x16x128xbf16> to vector<16x128xbf16>
    %cst_17 = arith.constant dense<0.000000e+00> : vector<64x128xf32>
    %17 = tpu.matmul %14, %16, %cst_17 {dimension_numbers = #tpu.dot_dimension_numbers<[1], [0], [0], [1], [0, 0, 1, 1], [], []>} : vector<64x16xbf16>, vector<16x128xbf16>, vector<64x128xf32> -> vector<64x128xf32>
    %18 = arith.addf %12, %17 : vector<64x128xf32>
    %19 = vector.extract_strided_slice %5 {offsets = [1, 0, 0], sizes = [8, 8, 16], strides = [1, 1, 1]} : vector<9x9x16xbf16> to vector<8x8x16xbf16>
    %20 = vector.shape_cast %19 : vector<8x8x16xbf16> to vector<64x16xbf16>
    %c2 = arith.constant 2 : index
    %c0_18 = arith.constant 0 : index
    %c0_19 = arith.constant 0 : index
    %21 = vector.load %arg2[%c2, %c0_18, %c0_19] : memref<4x16x128xbf16, #tpu.memory_space<vmem>>, vector<1x16x128xbf16>
    %22 = vector.shape_cast %21 : vector<1x16x128xbf16> to vector<16x128xbf16>
    %cst_20 = arith.constant dense<0.000000e+00> : vector<64x128xf32>
    %23 = tpu.matmul %20, %22, %cst_20 {dimension_numbers = #tpu.dot_dimension_numbers<[1], [0], [0], [1], [0, 0, 1, 1], [], []>} : vector<64x16xbf16>, vector<16x128xbf16>, vector<64x128xf32> -> vector<64x128xf32>
    %24 = arith.addf %18, %23 : vector<64x128xf32>
    %25 = vector.extract_strided_slice %5 {offsets = [1, 1, 0], sizes = [8, 8, 16], strides = [1, 1, 1]} : vector<9x9x16xbf16> to vector<8x8x16xbf16>
    %26 = vector.shape_cast %25 : vector<8x8x16xbf16> to vector<64x16xbf16>
    %c3 = arith.constant 3 : index
    %c0_21 = arith.constant 0 : index
    %c0_22 = arith.constant 0 : index
    %27 = vector.load %arg2[%c3, %c0_21, %c0_22] : memref<4x16x128xbf16, #tpu.memory_space<vmem>>, vector<1x16x128xbf16>
    %28 = vector.shape_cast %27 : vector<1x16x128xbf16> to vector<16x128xbf16>
    %cst_23 = arith.constant dense<0.000000e+00> : vector<64x128xf32>
    %29 = tpu.matmul %26, %28, %cst_23 {dimension_numbers = #tpu.dot_dimension_numbers<[1], [0], [0], [1], [0, 0, 1, 1], [], []>} : vector<64x16xbf16>, vector<16x128xbf16>, vector<64x128xf32> -> vector<64x128xf32>
    %30 = arith.addf %24, %29 : vector<64x128xf32>
    %c0_24 = arith.constant 0 : index
    %c0_25 = arith.constant 0 : index
    %31 = vector.load %arg3[%c0_24, %c0_25] : memref<1x128xf32, #tpu.memory_space<vmem>>, vector<1x128xf32>
    %32 = vector.broadcast %31 : vector<1x128xf32> to vector<64x128xf32>
    %33 = arith.addf %30, %32 : vector<64x128xf32>
    %cst_26 = arith.constant 0.000000e+00 : f32
    %34 = vector.broadcast %cst_26 : f32 to vector<64x128xf32>
    %35 = arith.cmpf oge, %33, %34 : vector<64x128xf32>
    %cst_27 = arith.constant 1.000000e-01 : f32
    %36 = vector.broadcast %cst_27 : f32 to vector<64x128xf32>
    %37 = arith.mulf %36, %33 : vector<64x128xf32>
    %38 = arith.select %35, %33, %37 : vector<64x128xi1>, vector<64x128xf32>
    %39 = vector.shape_cast %38 : vector<64x128xf32> to vector<8x8x128xf32>
    %40 = arith.truncf %39 : vector<8x8x128xf32> to vector<8x8x128xbf16>
    %c1_28 = arith.constant 1 : index
    %c1_29 = arith.constant 1 : index
    %c0_30 = arith.constant 0 : index
    %41 = vector.load %arg9[%c1_28, %c1_29, %c0_30] : memref<10x10x128xbf16, #tpu.memory_space<vmem>>, vector<8x8x128xbf16>
    tpu.vector_store %arg9[%c1_28, %c1_29, %c0_30], %40 {strides = array<i32>} : memref<10x10x128xbf16, #tpu.memory_space<vmem>>, vector<8x8x128xbf16>,
    %c0_31 = arith.constant 0 : index
    %c0_32 = arith.constant 0 : index
    %c0_33 = arith.constant 0 : index
    %42 = vector.load %arg9[%c0_31, %c0_32, %c0_33] : memref<10x10x128xbf16, #tpu.memory_space<vmem>>, vector<10x10x128xbf16>
    %cst_34 = arith.constant 0.000000e+00 : f32
    %43 = vector.broadcast %cst_34 : f32 to vector<64x128xf32>
    %44 = vector.extract_strided_slice %42 {offsets = [0, 0, 0], sizes = [8, 8, 128], strides = [1, 1, 1]} : vector<10x10x128xbf16> to vector<8x8x128xbf16>
    %45 = vector.shape_cast %44 : vector<8x8x128xbf16> to vector<64x128xbf16>
    %c0_35 = arith.constant 0 : index
    %c0_36 = arith.constant 0 : index
    %c0_37 = arith.constant 0 : index
    %46 = vector.load %arg4[%c0_35, %c0_36, %c0_37] : memref<9x128x128xbf16, #tpu.memory_space<vmem>>, vector<1x128x128xbf16>
    %47 = vector.shape_cast %46 : vector<1x128x128xbf16> to vector<128x128xbf16>
    %cst_38 = arith.constant dense<0.000000e+00> : vector<64x128xf32>
    %48 = tpu.matmul %45, %47, %cst_38 {dimension_numbers = #tpu.dot_dimension_numbers<[1], [0], [0], [1], [0, 0, 1, 1], [], []>} : vector<64x128xbf16>, vector<128x128xbf16>, vector<64x128xf32> -> vector<64x128xf32>
    %49 = arith.addf %43, %48 : vector<64x128xf32>
    %50 = vector.extract_strided_slice %42 {offsets = [0, 1, 0], sizes = [8, 8, 128], strides = [1, 1, 1]} : vector<10x10x128xbf16> to vector<8x8x128xbf16>
    %51 = vector.shape_cast %50 : vector<8x8x128xbf16> to vector<64x128xbf16>
    %c1_39 = arith.constant 1 : index
    %c0_40 = arith.constant 0 : index
    %c0_41 = arith.constant 0 : index
    %52 = vector.load %arg4[%c1_39, %c0_40, %c0_41] : memref<9x128x128xbf16, #tpu.memory_space<vmem>>, vector<1x128x128xbf16>
    %53 = vector.shape_cast %52 : vector<1x128x128xbf16> to vector<128x128xbf16>
    %cst_42 = arith.constant dense<0.000000e+00> : vector<64x128xf32>
    %54 = tpu.matmul %51, %53, %cst_42 {dimension_numbers = #tpu.dot_dimension_numbers<[1], [0], [0], [1], [0, 0, 1, 1], [], []>} : vector<64x128xbf16>, vector<128x128xbf16>, vector<64x128xf32> -> vector<64x128xf32>
    %55 = arith.addf %49, %54 : vector<64x128xf32>
    %56 = vector.extract_strided_slice %42 {offsets = [0, 2, 0], sizes = [8, 8, 128], strides = [1, 1, 1]} : vector<10x10x128xbf16> to vector<8x8x128xbf16>
    %57 = vector.shape_cast %56 : vector<8x8x128xbf16> to vector<64x128xbf16>
    %c2_43 = arith.constant 2 : index
    %c0_44 = arith.constant 0 : index
    %c0_45 = arith.constant 0 : index
    %58 = vector.load %arg4[%c2_43, %c0_44, %c0_45] : memref<9x128x128xbf16, #tpu.memory_space<vmem>>, vector<1x128x128xbf16>
    %59 = vector.shape_cast %58 : vector<1x128x128xbf16> to vector<128x128xbf16>
    %cst_46 = arith.constant dense<0.000000e+00> : vector<64x128xf32>
    %60 = tpu.matmul %57, %59, %cst_46 {dimension_numbers = #tpu.dot_dimension_numbers<[1], [0], [0], [1], [0, 0, 1, 1], [], []>} : vector<64x128xbf16>, vector<128x128xbf16>, vector<64x128xf32> -> vector<64x128xf32>
    %61 = arith.addf %55, %60 : vector<64x128xf32>
    %62 = vector.extract_strided_slice %42 {offsets = [1, 0, 0], sizes = [8, 8, 128], strides = [1, 1, 1]} : vector<10x10x128xbf16> to vector<8x8x128xbf16>
    %63 = vector.shape_cast %62 : vector<8x8x128xbf16> to vector<64x128xbf16>
    %c3_47 = arith.constant 3 : index
    %c0_48 = arith.constant 0 : index
    %c0_49 = arith.constant 0 : index
    %64 = vector.load %arg4[%c3_47, %c0_48, %c0_49] : memref<9x128x128xbf16, #tpu.memory_space<vmem>>, vector<1x128x128xbf16>
    %65 = vector.shape_cast %64 : vector<1x128x128xbf16> to vector<128x128xbf16>
    %cst_50 = arith.constant dense<0.000000e+00> : vector<64x128xf32>
    %66 = tpu.matmul %63, %65, %cst_50 {dimension_numbers = #tpu.dot_dimension_numbers<[1], [0], [0], [1], [0, 0, 1, 1], [], []>} : vector<64x128xbf16>, vector<128x128xbf16>, vector<64x128xf32> -> vector<64x128xf32>
    %67 = arith.addf %61, %66 : vector<64x128xf32>
    %68 = vector.extract_strided_slice %42 {offsets = [1, 1, 0], sizes = [8, 8, 128], strides = [1, 1, 1]} : vector<10x10x128xbf16> to vector<8x8x128xbf16>
    %69 = vector.shape_cast %68 : vector<8x8x128xbf16> to vector<64x128xbf16>
    %c4 = arith.constant 4 : index
    %c0_51 = arith.constant 0 : index
    %c0_52 = arith.constant 0 : index
    %70 = vector.load %arg4[%c4, %c0_51, %c0_52] : memref<9x128x128xbf16, #tpu.memory_space<vmem>>, vector<1x128x128xbf16>
    %71 = vector.shape_cast %70 : vector<1x128x128xbf16> to vector<128x128xbf16>
    %cst_53 = arith.constant dense<0.000000e+00> : vector<64x128xf32>
    %72 = tpu.matmul %69, %71, %cst_53 {dimension_numbers = #tpu.dot_dimension_numbers<[1], [0], [0], [1], [0, 0, 1, 1], [], []>} : vector<64x128xbf16>, vector<128x128xbf16>, vector<64x128xf32> -> vector<64x128xf32>
    %73 = arith.addf %67, %72 : vector<64x128xf32>
    %74 = vector.extract_strided_slice %42 {offsets = [1, 2, 0], sizes = [8, 8, 128], strides = [1, 1, 1]} : vector<10x10x128xbf16> to vector<8x8x128xbf16>
    %75 = vector.shape_cast %74 : vector<8x8x128xbf16> to vector<64x128xbf16>
    %c5 = arith.constant 5 : index
    %c0_54 = arith.constant 0 : index
    %c0_55 = arith.constant 0 : index
    %76 = vector.load %arg4[%c5, %c0_54, %c0_55] : memref<9x128x128xbf16, #tpu.memory_space<vmem>>, vector<1x128x128xbf16>
    %77 = vector.shape_cast %76 : vector<1x128x128xbf16> to vector<128x128xbf16>
    %cst_56 = arith.constant dense<0.000000e+00> : vector<64x128xf32>
    %78 = tpu.matmul %75, %77, %cst_56 {dimension_numbers = #tpu.dot_dimension_numbers<[1], [0], [0], [1], [0, 0, 1, 1], [], []>} : vector<64x128xbf16>, vector<128x128xbf16>, vector<64x128xf32> -> vector<64x128xf32>
    %79 = arith.addf %73, %78 : vector<64x128xf32>
    %80 = vector.extract_strided_slice %42 {offsets = [2, 0, 0], sizes = [8, 8, 128], strides = [1, 1, 1]} : vector<10x10x128xbf16> to vector<8x8x128xbf16>
    %81 = vector.shape_cast %80 : vector<8x8x128xbf16> to vector<64x128xbf16>
    %c6 = arith.constant 6 : index
    %c0_57 = arith.constant 0 : index
    %c0_58 = arith.constant 0 : index
    %82 = vector.load %arg4[%c6, %c0_57, %c0_58] : memref<9x128x128xbf16, #tpu.memory_space<vmem>>, vector<1x128x128xbf16>
    %83 = vector.shape_cast %82 : vector<1x128x128xbf16> to vector<128x128xbf16>
    %cst_59 = arith.constant dense<0.000000e+00> : vector<64x128xf32>
    %84 = tpu.matmul %81, %83, %cst_59 {dimension_numbers = #tpu.dot_dimension_numbers<[1], [0], [0], [1], [0, 0, 1, 1], [], []>} : vector<64x128xbf16>, vector<128x128xbf16>, vector<64x128xf32> -> vector<64x128xf32>
    %85 = arith.addf %79, %84 : vector<64x128xf32>
    %86 = vector.extract_strided_slice %42 {offsets = [2, 1, 0], sizes = [8, 8, 128], strides = [1, 1, 1]} : vector<10x10x128xbf16> to vector<8x8x128xbf16>
    %87 = vector.shape_cast %86 : vector<8x8x128xbf16> to vector<64x128xbf16>
    %c7 = arith.constant 7 : index
    %c0_60 = arith.constant 0 : index
    %c0_61 = arith.constant 0 : index
    %88 = vector.load %arg4[%c7, %c0_60, %c0_61] : memref<9x128x128xbf16, #tpu.memory_space<vmem>>, vector<1x128x128xbf16>
    %89 = vector.shape_cast %88 : vector<1x128x128xbf16> to vector<128x128xbf16>
    %cst_62 = arith.constant dense<0.000000e+00> : vector<64x128xf32>
    %90 = tpu.matmul %87, %89, %cst_62 {dimension_numbers = #tpu.dot_dimension_numbers<[1], [0], [0], [1], [0, 0, 1, 1], [], []>} : vector<64x128xbf16>, vector<128x128xbf16>, vector<64x128xf32> -> vector<64x128xf32>
    %91 = arith.addf %85, %90 : vector<64x128xf32>
    %92 = vector.extract_strided_slice %42 {offsets = [2, 2, 0], sizes = [8, 8, 128], strides = [1, 1, 1]} : vector<10x10x128xbf16> to vector<8x8x128xbf16>
    %93 = vector.shape_cast %92 : vector<8x8x128xbf16> to vector<64x128xbf16>
    %c8 = arith.constant 8 : index
    %c0_63 = arith.constant 0 : index
    %c0_64 = arith.constant 0 : index
    %94 = vector.load %arg4[%c8, %c0_63, %c0_64] : memref<9x128x128xbf16, #tpu.memory_space<vmem>>, vector<1x128x128xbf16>
    %95 = vector.shape_cast %94 : vector<1x128x128xbf16> to vector<128x128xbf16>
    %cst_65 = arith.constant dense<0.000000e+00> : vector<64x128xf32>
    %96 = tpu.matmul %93, %95, %cst_65 {dimension_numbers = #tpu.dot_dimension_numbers<[1], [0], [0], [1], [0, 0, 1, 1], [], []>} : vector<64x128xbf16>, vector<128x128xbf16>, vector<64x128xf32> -> vector<64x128xf32>
    %97 = arith.addf %91, %96 : vector<64x128xf32>
    %c0_66 = arith.constant 0 : index
    %c0_67 = arith.constant 0 : index
    %98 = vector.load %arg5[%c0_66, %c0_67] : memref<1x128xf32, #tpu.memory_space<vmem>>, vector<1x128xf32>
    %99 = vector.broadcast %98 : vector<1x128xf32> to vector<64x128xf32>
    %100 = arith.addf %97, %99 : vector<64x128xf32>
    %cst_68 = arith.constant 0.000000e+00 : f32
    %101 = vector.broadcast %cst_68 : f32 to vector<64x128xf32>
    %102 = arith.cmpf oge, %100, %101 : vector<64x128xf32>
    %cst_69 = arith.constant 1.000000e-01 : f32
    %103 = vector.broadcast %cst_69 : f32 to vector<64x128xf32>
    %104 = arith.mulf %103, %100 : vector<64x128xf32>
    %105 = arith.select %102, %100, %104 : vector<64x128xi1>, vector<64x128xf32>
    %106 = vector.shape_cast %105 : vector<64x128xf32> to vector<8x8x128xf32>
    %107 = arith.truncf %106 : vector<8x8x128xf32> to vector<8x8x128xbf16>
    %c1_70 = arith.constant 1 : index
    %c1_71 = arith.constant 1 : index
    %c0_72 = arith.constant 0 : index
    %108 = vector.load %arg10[%c1_70, %c1_71, %c0_72] : memref<10x10x128xbf16, #tpu.memory_space<vmem>>, vector<8x8x128xbf16>
    tpu.vector_store %arg10[%c1_70, %c1_71, %c0_72], %107 {strides = array<i32>} : memref<10x10x128xbf16, #tpu.memory_space<vmem>>, vector<8x8x128xbf16>,
    %c0_73 = arith.constant 0 : index
    %c0_74 = arith.constant 0 : index
    %c0_75 = arith.constant 0 : index
    %109 = vector.load %arg10[%c0_73, %c0_74, %c0_75] : memref<10x10x128xbf16, #tpu.memory_space<vmem>>, vector<10x10x128xbf16>
    %cst_76 = arith.constant 0.000000e+00 : f32
    %110 = vector.broadcast %cst_76 : f32 to vector<64x128xf32>
    %111 = vector.extract_strided_slice %109 {offsets = [0, 0, 0], sizes = [8, 8, 128], strides = [1, 1, 1]} : vector<10x10x128xbf16> to vector<8x8x128xbf16>
    %112 = vector.shape_cast %111 : vector<8x8x128xbf16> to vector<64x128xbf16>
    %c0_77 = arith.constant 0 : index
    %c0_78 = arith.constant 0 : index
    %c0_79 = arith.constant 0 : index
    %113 = vector.load %arg6[%c0_77, %c0_78, %c0_79] : memref<9x128x128xbf16, #tpu.memory_space<vmem>>, vector<1x128x128xbf16>
    %114 = vector.shape_cast %113 : vector<1x128x128xbf16> to vector<128x128xbf16>
    %cst_80 = arith.constant dense<0.000000e+00> : vector<64x128xf32>
    %115 = tpu.matmul %112, %114, %cst_80 {dimension_numbers = #tpu.dot_dimension_numbers<[1], [0], [0], [1], [0, 0, 1, 1], [], []>} : vector<64x128xbf16>, vector<128x128xbf16>, vector<64x128xf32> -> vector<64x128xf32>
    %116 = arith.addf %110, %115 : vector<64x128xf32>
    %117 = vector.extract_strided_slice %109 {offsets = [0, 1, 0], sizes = [8, 8, 128], strides = [1, 1, 1]} : vector<10x10x128xbf16> to vector<8x8x128xbf16>
    %118 = vector.shape_cast %117 : vector<8x8x128xbf16> to vector<64x128xbf16>
    %c1_81 = arith.constant 1 : index
    %c0_82 = arith.constant 0 : index
    %c0_83 = arith.constant 0 : index
    %119 = vector.load %arg6[%c1_81, %c0_82, %c0_83] : memref<9x128x128xbf16, #tpu.memory_space<vmem>>, vector<1x128x128xbf16>
    %120 = vector.shape_cast %119 : vector<1x128x128xbf16> to vector<128x128xbf16>
    %cst_84 = arith.constant dense<0.000000e+00> : vector<64x128xf32>
    %121 = tpu.matmul %118, %120, %cst_84 {dimension_numbers = #tpu.dot_dimension_numbers<[1], [0], [0], [1], [0, 0, 1, 1], [], []>} : vector<64x128xbf16>, vector<128x128xbf16>, vector<64x128xf32> -> vector<64x128xf32>
    %122 = arith.addf %116, %121 : vector<64x128xf32>
    %123 = vector.extract_strided_slice %109 {offsets = [0, 2, 0], sizes = [8, 8, 128], strides = [1, 1, 1]} : vector<10x10x128xbf16> to vector<8x8x128xbf16>
    %124 = vector.shape_cast %123 : vector<8x8x128xbf16> to vector<64x128xbf16>
    %c2_85 = arith.constant 2 : index
    %c0_86 = arith.constant 0 : index
    %c0_87 = arith.constant 0 : index
    %125 = vector.load %arg6[%c2_85, %c0_86, %c0_87] : memref<9x128x128xbf16, #tpu.memory_space<vmem>>, vector<1x128x128xbf16>
    %126 = vector.shape_cast %125 : vector<1x128x128xbf16> to vector<128x128xbf16>
    %cst_88 = arith.constant dense<0.000000e+00> : vector<64x128xf32>
    %127 = tpu.matmul %124, %126, %cst_88 {dimension_numbers = #tpu.dot_dimension_numbers<[1], [0], [0], [1], [0, 0, 1, 1], [], []>} : vector<64x128xbf16>, vector<128x128xbf16>, vector<64x128xf32> -> vector<64x128xf32>
    %128 = arith.addf %122, %127 : vector<64x128xf32>
    %129 = vector.extract_strided_slice %109 {offsets = [1, 0, 0], sizes = [8, 8, 128], strides = [1, 1, 1]} : vector<10x10x128xbf16> to vector<8x8x128xbf16>
    %130 = vector.shape_cast %129 : vector<8x8x128xbf16> to vector<64x128xbf16>
    %c3_89 = arith.constant 3 : index
    %c0_90 = arith.constant 0 : index
    %c0_91 = arith.constant 0 : index
    %131 = vector.load %arg6[%c3_89, %c0_90, %c0_91] : memref<9x128x128xbf16, #tpu.memory_space<vmem>>, vector<1x128x128xbf16>
    %132 = vector.shape_cast %131 : vector<1x128x128xbf16> to vector<128x128xbf16>
    %cst_92 = arith.constant dense<0.000000e+00> : vector<64x128xf32>
    %133 = tpu.matmul %130, %132, %cst_92 {dimension_numbers = #tpu.dot_dimension_numbers<[1], [0], [0], [1], [0, 0, 1, 1], [], []>} : vector<64x128xbf16>, vector<128x128xbf16>, vector<64x128xf32> -> vector<64x128xf32>
    %134 = arith.addf %128, %133 : vector<64x128xf32>
    %135 = vector.extract_strided_slice %109 {offsets = [1, 1, 0], sizes = [8, 8, 128], strides = [1, 1, 1]} : vector<10x10x128xbf16> to vector<8x8x128xbf16>
    %136 = vector.shape_cast %135 : vector<8x8x128xbf16> to vector<64x128xbf16>
    %c4_93 = arith.constant 4 : index
    %c0_94 = arith.constant 0 : index
    %c0_95 = arith.constant 0 : index
    %137 = vector.load %arg6[%c4_93, %c0_94, %c0_95] : memref<9x128x128xbf16, #tpu.memory_space<vmem>>, vector<1x128x128xbf16>
    %138 = vector.shape_cast %137 : vector<1x128x128xbf16> to vector<128x128xbf16>
    %cst_96 = arith.constant dense<0.000000e+00> : vector<64x128xf32>
    %139 = tpu.matmul %136, %138, %cst_96 {dimension_numbers = #tpu.dot_dimension_numbers<[1], [0], [0], [1], [0, 0, 1, 1], [], []>} : vector<64x128xbf16>, vector<128x128xbf16>, vector<64x128xf32> -> vector<64x128xf32>
    %140 = arith.addf %134, %139 : vector<64x128xf32>
    %141 = vector.extract_strided_slice %109 {offsets = [1, 2, 0], sizes = [8, 8, 128], strides = [1, 1, 1]} : vector<10x10x128xbf16> to vector<8x8x128xbf16>
    %142 = vector.shape_cast %141 : vector<8x8x128xbf16> to vector<64x128xbf16>
    %c5_97 = arith.constant 5 : index
    %c0_98 = arith.constant 0 : index
    %c0_99 = arith.constant 0 : index
    %143 = vector.load %arg6[%c5_97, %c0_98, %c0_99] : memref<9x128x128xbf16, #tpu.memory_space<vmem>>, vector<1x128x128xbf16>
    %144 = vector.shape_cast %143 : vector<1x128x128xbf16> to vector<128x128xbf16>
    %cst_100 = arith.constant dense<0.000000e+00> : vector<64x128xf32>
    %145 = tpu.matmul %142, %144, %cst_100 {dimension_numbers = #tpu.dot_dimension_numbers<[1], [0], [0], [1], [0, 0, 1, 1], [], []>} : vector<64x128xbf16>, vector<128x128xbf16>, vector<64x128xf32> -> vector<64x128xf32>
    %146 = arith.addf %140, %145 : vector<64x128xf32>
    %147 = vector.extract_strided_slice %109 {offsets = [2, 0, 0], sizes = [8, 8, 128], strides = [1, 1, 1]} : vector<10x10x128xbf16> to vector<8x8x128xbf16>
    %148 = vector.shape_cast %147 : vector<8x8x128xbf16> to vector<64x128xbf16>
    %c6_101 = arith.constant 6 : index
    %c0_102 = arith.constant 0 : index
    %c0_103 = arith.constant 0 : index
    %149 = vector.load %arg6[%c6_101, %c0_102, %c0_103] : memref<9x128x128xbf16, #tpu.memory_space<vmem>>, vector<1x128x128xbf16>
    %150 = vector.shape_cast %149 : vector<1x128x128xbf16> to vector<128x128xbf16>
    %cst_104 = arith.constant dense<0.000000e+00> : vector<64x128xf32>
    %151 = tpu.matmul %148, %150, %cst_104 {dimension_numbers = #tpu.dot_dimension_numbers<[1], [0], [0], [1], [0, 0, 1, 1], [], []>} : vector<64x128xbf16>, vector<128x128xbf16>, vector<64x128xf32> -> vector<64x128xf32>
    %152 = arith.addf %146, %151 : vector<64x128xf32>
    %153 = vector.extract_strided_slice %109 {offsets = [2, 1, 0], sizes = [8, 8, 128], strides = [1, 1, 1]} : vector<10x10x128xbf16> to vector<8x8x128xbf16>
    %154 = vector.shape_cast %153 : vector<8x8x128xbf16> to vector<64x128xbf16>
    %c7_105 = arith.constant 7 : index
    %c0_106 = arith.constant 0 : index
    %c0_107 = arith.constant 0 : index
    %155 = vector.load %arg6[%c7_105, %c0_106, %c0_107] : memref<9x128x128xbf16, #tpu.memory_space<vmem>>, vector<1x128x128xbf16>
    %156 = vector.shape_cast %155 : vector<1x128x128xbf16> to vector<128x128xbf16>
    %cst_108 = arith.constant dense<0.000000e+00> : vector<64x128xf32>
    %157 = tpu.matmul %154, %156, %cst_108 {dimension_numbers = #tpu.dot_dimension_numbers<[1], [0], [0], [1], [0, 0, 1, 1], [], []>} : vector<64x128xbf16>, vector<128x128xbf16>, vector<64x128xf32> -> vector<64x128xf32>
    %158 = arith.addf %152, %157 : vector<64x128xf32>
    %159 = vector.extract_strided_slice %109 {offsets = [2, 2, 0], sizes = [8, 8, 128], strides = [1, 1, 1]} : vector<10x10x128xbf16> to vector<8x8x128xbf16>
    %160 = vector.shape_cast %159 : vector<8x8x128xbf16> to vector<64x128xbf16>
    %c8_109 = arith.constant 8 : index
    %c0_110 = arith.constant 0 : index
    %c0_111 = arith.constant 0 : index
    %161 = vector.load %arg6[%c8_109, %c0_110, %c0_111] : memref<9x128x128xbf16, #tpu.memory_space<vmem>>, vector<1x128x128xbf16>
    %162 = vector.shape_cast %161 : vector<1x128x128xbf16> to vector<128x128xbf16>
    %cst_112 = arith.constant dense<0.000000e+00> : vector<64x128xf32>
    %163 = tpu.matmul %160, %162, %cst_112 {dimension_numbers = #tpu.dot_dimension_numbers<[1], [0], [0], [1], [0, 0, 1, 1], [], []>} : vector<64x128xbf16>, vector<128x128xbf16>, vector<64x128xf32> -> vector<64x128xf32>
    %164 = arith.addf %158, %163 : vector<64x128xf32>
    %c0_113 = arith.constant 0 : index
    %c0_114 = arith.constant 0 : index
    %165 = vector.load %arg7[%c0_113, %c0_114] : memref<1x128xf32, #tpu.memory_space<vmem>>, vector<1x128xf32>
    %166 = vector.broadcast %165 : vector<1x128xf32> to vector<64x128xf32>
    %167 = arith.addf %164, %166 : vector<64x128xf32>
    %cst_115 = arith.constant 0.000000e+00 : f32
    %168 = vector.broadcast %cst_115 : f32 to vector<64x128xf32>
    %169 = arith.cmpf oge, %167, %168 : vector<64x128xf32>
    %cst_116 = arith.constant 1.000000e-01 : f32
    %170 = vector.broadcast %cst_116 : f32 to vector<64x128xf32>
    %171 = arith.mulf %170, %167 : vector<64x128xf32>
    %172 = arith.select %169, %167, %171 : vector<64x128xi1>, vector<64x128xf32>
    %173 = vector.extract_strided_slice %172 {offsets = [0, 0], sizes = [64, 8], strides = [1, 1]} : vector<64x128xf32> to vector<64x8xf32>
    %c0_117 = arith.constant 0 : index
    %c0_118 = arith.constant 0 : index
    %c0_119 = arith.constant 0 : index
    %174 = vector.load %arg8[%c0_117, %c0_118, %c0_119] : memref<1x64x8xf32, #tpu.memory_space<vmem>>, vector<1x64x8xf32>
    %175 = vector.shape_cast %174 : vector<1x64x8xf32> to vector<64x8xf32>
    %176 = vector.shape_cast %173 : vector<64x8xf32> to vector<1x64x8xf32>
    tpu.vector_store %arg8[%c0_117, %c0_118, %c0_119], %176 {strides = array<i32>} : memref<1x64x8xf32, #tpu.memory_space<vmem>>, vector<1x64x8xf32>,
    return
  }
  func.func @transform_0(%arg0: i32) -> (i32, i32, i32, i32) {
    %c0_i32 = arith.constant 0 : i32
    %c0_i32_0 = arith.constant 0 : i32
    %c0_i32_1 = arith.constant 0 : i32
    %c0_i32_2 = arith.constant 0 : i32
    return %arg0, %c0_i32, %c0_i32_0, %c0_i32_1 : i32, i32, i32, i32
  }
  func.func @transform_1(%arg0: i32) -> (i32, i32, i32) {
    %c0_i32 = arith.constant 0 : i32
    %c0_i32_0 = arith.constant 0 : i32
    %c0_i32_1 = arith.constant 0 : i32
    %c0_i32_2 = arith.constant 0 : i32
    return %c0_i32, %c0_i32_0, %c0_i32_1 : i32, i32, i32
  }
  func.func @transform_2(%arg0: i32) -> (i32, i32) {
    %c0_i32 = arith.constant 0 : i32
    %c0_i32_0 = arith.constant 0 : i32
    %c0_i32_1 = arith.constant 0 : i32
    return %c0_i32, %c0_i32_0 : i32, i32
  }
  func.func @transform_3(%arg0: i32) -> (i32, i32, i32) {
    %c0_i32 = arith.constant 0 : i32
    %c0_i32_0 = arith.constant 0 : i32
    %c0_i32_1 = arith.constant 0 : i32
    %c0_i32_2 = arith.constant 0 : i32
    return %c0_i32, %c0_i32_0, %c0_i32_1 : i32, i32, i32
  }
  func.func @transform_4(%arg0: i32) -> (i32, i32) {
    %c0_i32 = arith.constant 0 : i32
    %c0_i32_0 = arith.constant 0 : i32
    %c0_i32_1 = arith.constant 0 : i32
    return %c0_i32, %c0_i32_0 : i32, i32
  }
  func.func @transform_5(%arg0: i32) -> (i32, i32, i32) {
    %c0_i32 = arith.constant 0 : i32
    %c0_i32_0 = arith.constant 0 : i32
    %c0_i32_1 = arith.constant 0 : i32
    %c0_i32_2 = arith.constant 0 : i32
    return %c0_i32, %c0_i32_0, %c0_i32_1 : i32, i32, i32
  }
  func.func @transform_6(%arg0: i32) -> (i32, i32) {
    %c0_i32 = arith.constant 0 : i32
    %c0_i32_0 = arith.constant 0 : i32
    %c0_i32_1 = arith.constant 0 : i32
    return %c0_i32, %c0_i32_0 : i32, i32
  }
  func.func @transform_7(%arg0: i32) -> (i32, i32, i32) {
    %c0_i32 = arith.constant 0 : i32
    %c0_i32_0 = arith.constant 0 : i32
    %c0_i32_1 = arith.constant 0 : i32
    return %arg0, %c0_i32, %c0_i32_0 : i32, i32, i32
  }
}

</mosaic_0001>

<bundles_post_ra>
// kernel: down_module_forward.1
= control target key start
LH: loop header
LB: loop body
LE: loop exit
PB: predicated region body
PF: predicated region fallthrough
CT: control target
= control target key end

     0   :  { %s5943_s24 = smov 0   ;;  %s7242_s0 = inlined_call_operand.vmem [shape: bf16[2,9,9,16], index: 0, kind: input, shape index: {}]   ;;  %s7243_s1 = inlined_call_operand.vmem [shape: bf16[4,16,128], index: 1, kind: input, shape index: {}]   ;;  %s7244_s2 = inlined_call_operand.vmem [shape: f32[1,128], index: 2, kind: input, shape index: {}]   ;;  %s7245_s3 = inlined_call_operand.vmem [shape: bf16[9,128,128], index: 3, kind: input, shape index: {}]   ;;  %s7246_s4 = inlined_call_operand.vmem [shape: f32[1,128], index: 4, kind: input, shape index: {}]   ;;  %s7247_s5 = inlined_call_operand.vmem [shape: bf16[9,128,128], index: 5, kind: input, shape index: {}]   ;;  %s7248_s6 = inlined_call_operand.vmem [shape: f32[1,128], index: 6, kind: input, shape index: {}]   ;;  %s7249_s7 = inlined_call_operand.vmem [shape: f32[2,64,8], index: 7, kind: output, shape index: {}]  }
   0x1 LB: > { %s4440_s25 = sadd.s32 4294967295, %s5900_s24   ;;  %p4444_p0 = scmp.ge.s32.totalorder %s5900_s24, 1  ;;  %s5900_s24 = sphi %s5943_s24, %s17_s24  }
   0x2   : > { %p237_p1 = scmp.lt.s32.totalorder %s5900_s24, 3 }
   0x4   : > { %p238_p2 = pnand %p4444_p0, %p237_p1 }
   0x6   : > { %241 = sbr.rel (%p238_p2) target bundleno = 1005 (0x3ed), region = 48 }
   0xb   : > { %v5720_v0 = vld [vmem:[%s7243_s1] sm:$0xff]   ;;  %p269_p3 = scmp.lt.s32.totalorder %s4440_s25, 1  ;;  %v5721_v1 = vld [vmem:[%s7243_s1 + $0x8] sm:$0xff]   ;;  %v5962_v2 = vld [vmem:[%s7243_s1 + $0x10] sm:$0xff]   ;;  %vm476_vm0 = vcmask 130048   ;;  %v7262_v29 = vmov 0 }
   0xc   : > { %5248 = vmatprep.subr.bf16.mxu1 %v5720_v0  ;;  %5238 = vmatprep.subr.bf16.mxu0 %v5721_v1  ;;  %v5725_v3 = vld [vmem:[%s7243_s1 + $0x18] sm:$0xff]   ;;  %vm340_vm1 = vsmask.f32 3328  ;;  %vm341_vm2 = vsmask.f32 7440  ;;  %vm1022_vm4 = vcmask 1043456  }
   0xd   : > { %s7295_s25 = smov (!%p269_p3, %s4440_s25), 1  ;;  %5249 = vmatpush3.bf16.msra.mxu1 %v5720_v0  ;;  %5239 = vmatpush3.bf16.msra.mxu0 %v5721_v1  ;;  %vm6000_vm3 = vmor %vm340_vm1, %vm341_vm2  ;;  %vm1023_vm5 = vsmask.f32 7938  ;;  %vm1028_vm6 = vcmask 1040384   ;;  %vm1029_vm7 = vsmask.f32 256 }
   0xe   : > { %s5710_s9 = smul.u32 72, %s7295_s25  ;;  %5258 = vmatprep.subr.bf16.mxu0 %v5962_v2  ;;  %5268 = vmatprep.subr.bf16.mxu1 %v5725_v3  ;;  %v7263_v29 = vsel %vm6000_vm3, 4294967295, %v7262_v29  ;;  %vm6157_vm11 = vmand %vm1022_vm4, %vm1023_vm5  ;;  %vm1515_vm2 = vcmask 1042432   ;;  %vm1516_vm4 = vcmask 1046532   ;;  %s4985_s15 = sshll.u32 %s7295_s25, 6 }
   0xf   : > { %7264 = vst [vmem:[#allocation4_spill] sm:$0xff] %v7263_v29  ;;  %vm6163_vm12 = vmand %vm1028_vm6, %vm1029_vm7  ;;  %s7213_s18 = scalar_lea.vmem %s7249_s7, %s4985_s15 }
  0x10   : > { %s5972_s14 = scalar_lea.vmem %s7242_s0, %s5710_s9  ;;  %vm6345_vm5 = vmor %vm1515_vm2, %vm1516_vm4 }
  0x11   : > { %v320_v4 = vld [vmem:[%s5972_s14] sm:$0xf]  ;;  %v5976_v5 = vld [vmem:[%s5972_s14 + $0x8] sm:$0xf]  ;;  %v5979_v6 = vld [vmem:[%s5972_s14 + $0x10] sm:$0xf] }
  0x12   : > { %v344_v7 = vshrl.u32 %v320_v4, 16  ;;  %v347_v8 = vshll.u32 %v320_v4, 16  ;;  %v358_v9 = vshrl.u32 %v5976_v5, 16  ;;  %v361_v10 = vshll.u32 %v5976_v5, 16  ;;  %v5984_v11 = vld [vmem:[%s5972_s14 + $0x18] sm:$0xf] }
  0x13   : > { %v4459_v12 = vcombine.low %v320_v4, %v5976_v5  ;;  %v4460_v13 = vcombine.low %v5979_v6, %v5984_v11  ;;  %v321_v14 = vld [vmem:[%s5972_s14 + $0x4] sm:$0x1]  ;;  %v323_v15 = vld [vmem:[%s5972_s14 + $0xc] sm:$0x1]  ;;  %v325_v16 = vld [vmem:[%s5972_s14 + $0x14] sm:$0x1] }
  0x14   : > { %v346_v17 = vrot.slane %v344_v7, 4  ;;  %v349_v18 = vrot.slane %v347_v8, 5  ;;  %v353_v19 = vshll.u32 %v321_v14, 16  ;;  %v360_v20 = vrot.slane %v358_v9, 4  ;;  %v327_v23 = vld [vmem:[%s5972_s14 + $0x1c] sm:$0x1] }
  0x15   : > { %5250 = vmatprep.mubr.msk.bf16.mxu1 %vm476_vm0, %v4459_v12  ;;  %v363_v21 = vrot.slane %v361_v10, 5  ;;  %v367_v22 = vshll.u32 %v323_v15, 16  ;;  %v372_v25 = vshrl.u32 %v5979_v6, 16  ;;  %v375_v26 = vshll.u32 %v5979_v6, 16  ;;  %v5998_v28 = vld [vmem:[%s5972_s14 + $0x20] sm:$0xf] }
  0x16   : > { %5251 = vmatmul.mubr.msk.bf16.vlgmr.msra.gmra.mxu1 %vm476_vm0, %v4460_v13  ;;  %v350_v24 = vor.u32 %v349_v18, %v346_v17  ;;  %v381_v27 = vshll.u32 %v325_v16, 16  ;;  %v355_v30 = vrot.slane %v353_v19, 5  ;;  %v386_v33 = vshrl.u32 %v5984_v11, 16  ;;  %v329_v34 = vld [vmem:[%s5972_s14 + $0x24] sm:$0x1] }
  0x17   : > { %v364_v31 = vor.u32 %v363_v21, %v360_v20  ;;  %v369_v32 = vrot.slane %v367_v22, 5  ;;  %5269 = vmatpush3.bf16.msra.mxu1 %v5725_v3  ;;  %v374_v36 = vrot.slane %v372_v25, 4  ;;  %v377_v37 = vrot.slane %v375_v26, 5  ;;  %v6012_v47 = vld [vmem:[%s5972_s14 + $0x28] sm:$0xf] }
  0x18   : > { %v351_v35 = vrot.slane %v350_v24, 4  ;;  %v383_v38 = vrot.slane %v381_v27, 5  ;;  %v388_v40 = vrot.slane %v386_v33, 4  ;;  %v389_v41 = vshll.u32 %v5984_v11, 16  ;;  %v6015_v48 = vld [vmem:[%s5972_s14 + $0x30] sm:$0xf] }
  0x19   : > { %v365_v39 = vrot.slane %v364_v31, 4  ;;  %v395_v42 = vshll.u32 %v327_v23, 16  ;;  %v378_v44 = vor.u32 %v377_v37, %v374_v36  ;;  %v400_v45 = vshrl.u32 %v5998_v28, 16  ;;  %v6020_v53 = vld [vmem:[%s5972_s14 + $0x38] sm:$0xf] }
  0x1a   : > { %v356_v43 = vsel %vm6000_vm3, %v351_v35, %v355_v30  ;;  %v403_v46 = vshll.u32 %v5998_v28, 16  ;;  %v391_v50 = vrot.slane %v389_v41, 5  ;;  %v409_v52 = vshll.u32 %v329_v34, 16  ;;  %v331_v58 = vld [vmem:[%s5972_s14 + $0x2c] sm:$0x1] }
  0x1b   : > { %v370_v49 = vsel %vm6000_vm3, %v365_v39, %v369_v32  ;;  %v397_v51 = vrot.slane %v395_v42, 5  ;;  %v379_v54 = vrot.slane %v378_v44, 4  ;;  %v402_v55 = vrot.slane %v400_v45, 4  ;;  %v333_v63 = vld [vmem:[%s5972_s14 + $0x34] sm:$0x1] }
  0x1c   : > { %v405_v56 = vrot.slane %v403_v46, 5  ;;  %v4450_v57 = vcombine.low %v356_v43, %v370_v49  ;;  %v392_v59 = vor.u32 %v391_v50, %v388_v40  ;;  %v411_v60 = vrot.slane %v409_v52, 5  ;;  %v335_v12 = vld [vmem:[%s5972_s14 + $0x3c] sm:$0x1]  ;;  %v336_v21 = vld [vmem:[%s5972_s14 + $0x40] sm:$0xf] }
  0x1d   : > { %v414_v61 = vshrl.u32 %v6012_v47, 16  ;;  %v417_v62 = vshll.u32 %v6012_v47, 16  ;;  %v384_v0 = vsel %vm6000_vm3, %v379_v54, %v383_v38  ;;  %v4461_v3 = vcombine.low %v5998_v28, %v6012_v47  ;;  %v337_v25 = vld [vmem:[%s5972_s14 + $0x44] sm:$0x1] }
  0x1e   : > { %v406_v1 = vor.u32 %v405_v56, %v402_v55  ;;  %5240 = vmatprep.mubr.msk.bf16.mxu0 %vm476_vm0, %v4450_v57  ;;  %v428_v4 = vshrl.u32 %v6015_v48, 16  ;;  %v393_v7 = vrot.slane %v392_v59, 4  ;;  %v4481_v8 = vcombine.low %v370_v49, %v384_v0 }
  0x1f   : > { %v431_v9 = vshll.u32 %v6015_v48, 16  ;;  %v442_v10 = vshrl.u32 %v6020_v53, 16  ;;  %5254 = vmatprep.mubr.msk.bf16.mxu1 %vm476_vm0, %v4461_v3  ;;  %v445_v14 = vshll.u32 %v6020_v53, 16  ;;  %v4462_v15 = vcombine.low %v6015_v48, %v6020_v53  ;;  %v5740_v3 = vld [vmem:[%s7245_s3 + $0x10] sm:$0xff]  }
  0x20   : > { %v407_v13 = vrot.slane %v406_v1, 4  ;;  %v416_v16 = vrot.slane %v414_v61, 4  ;;  %v398_v17 = vsel %vm6000_vm3, %v393_v7, %v397_v51  ;;  %v419_v18 = vrot.slane %v417_v62, 5  ;;  %v5739_v1 = vld [vmem:[%s7245_s3 + $0x68] sm:$0xff]  }
  0x21   : > { %v423_v19 = vshll.u32 %v331_v58, 16  ;;  %v430_v20 = vrot.slane %v428_v4, 4  ;;  %v4451_v22 = vcombine.low %v384_v0, %v398_v17  ;;  %5255 = vmatmul.mubr.msk.bf16.gmra.mxu1 %vm476_vm0, %v4462_v15  ;;  %v433_v23 = vrot.slane %v431_v9, 5  ;;  %v5738_v0 = vld [vmem:[%s7245_s3 + $0x18] sm:$0xff]   ;;  %v5741_v4 = vld [vmem:[%s7245_s3 + $0x60] sm:$0xff]   ;;  %v5742_v7 = vld [vmem:[%s7245_s3 + $0x8] sm:$0xff]  }
  0x22   : > { %v437_v24 = vshll.u32 %v333_v63, 16  ;;  %v412_v26 = vsel %vm6000_vm3, %v407_v13, %v411_v60  ;;  %v420_v27 = vor.u32 %v419_v18, %v416_v16  ;;  %v444_v31 = vrot.slane %v442_v10, 4  ;;  %5270 = vmatprep.mubr.msk.bf16.mxu1 %vm476_vm0, %v4481_v8  ;;  %v5737_v63 = vld [vmem:[%s7245_s3 + $0x70] sm:$0xff]   ;;  %v5743_v8 = vld [vmem:[%s7245_s3 + $0x58] sm:$0xff]   ;;  %v5744_v9 = vld [vmem:[%s7245_s3] sm:$0xff]  }
  0x23   : > { %v425_v30 = vrot.slane %v423_v19, 5  ;;  %5241 = vmatmul.mubr.msk.bf16.vlgmr.msra.gmra.mxu0 %vm476_vm0, %v4451_v22  ;;  %v434_v32 = vor.u32 %v433_v23, %v430_v20  ;;  %v447_v34 = vrot.slane %v445_v14, 5  ;;  %v451_v35 = vshll.u32 %v335_v12, 16  ;;  %v5745_v10 = vld [vmem:[%s7245_s3 + $0x50] sm:$0xff]   ;;  %v6118_v12 = vld [vmem:[%s7245_s3 + $0xf8] sm:$0xff]   ;;  %v5748_v13 = vld [vmem:[%s7245_s3 + $0x48] sm:$0xff]  }
  0x24   : > { %v439_v33 = vrot.slane %v437_v24, 5  ;;  %v4482_v36 = vcombine.low %v398_v17, %v412_v26  ;;  %5259 = vmatpush3.bf16.msra.mxu0 %v5962_v2  ;;  %v421_v37 = vrot.slane %v420_v27, 4  ;;  %v758_v41 = vshrl.u32 %v336_v21, 16  ;;  %v5751_v14 = vld [vmem:[%s7245_s3 + $0x40] sm:$0xff]   ;;  %v6130_v15 = vld [vmem:[%s7245_s3 + $0xb8] sm:$0xff]  }
  0x25   : > { %v435_v38 = vrot.slane %v434_v32, 4  ;;  %v448_v39 = vor.u32 %v447_v34, %v444_v31  ;;  %v453_v40 = vrot.slane %v451_v35, 5  ;;  %v761_v43 = vshll.u32 %v336_v21, 16 }
  0x26   : > { %v426_v42 = vsel %vm6000_vm3, %v421_v37, %v425_v30  ;;  %v767_v44 = vshll.u32 %v337_v25, 16  ;;  %v760_v50 = vrot.slane %v758_v41, 4  ;;  %v4470_v55 = vcombine.low %v5976_v5, %v5979_v6 }
  0x27   : > { %v4452_v45 = vcombine.low %v412_v26, %v426_v42  ;;  %v440_v46 = vsel %vm6000_vm3, %v435_v38, %v439_v33  ;;  %v449_v49 = vrot.slane %v448_v39, 4  ;;  %v763_v51 = vrot.slane %v761_v43, 5 }
  0x28   : > { %v4483_v52 = vcombine.low %v426_v42, %v440_v46  ;;  %v769_v54 = vrot.slane %v767_v44, 5  ;;  %v4471_v61 = vcombine.low %v5984_v11, %v5998_v28  ;;  %v4472_v62 = vcombine.low %v6012_v47, %v6015_v48  ;;  %v5732_v11 = vld [vmem:[%s7245_s3 + $0x38] sm:$0xff]   ;;  %v5733_v28 = vld [vmem:[%s7245_s3 + $0x30] sm:$0xff]   ;;  %v5734_v47 = vld [vmem:[%s7245_s3 + $0x28] sm:$0xff]  }
  0x29   : > { %5244 = vmatprep.mubr.msk.bf16.mxu0 %vm476_vm0, %v4452_v45  ;;  %v454_v2 = vsel %vm6000_vm3, %v449_v49, %v453_v40  ;;  %5271 = vmatmul.mubr.msk.bf16.vlgmr.msra.gmra.mxu1 %vm476_vm0, %v4482_v36  ;;  %v764_v57 = vor.u32 %v763_v51, %v760_v50  ;;  %v4473_v5 = vcombine.low %v6020_v53, %v336_v21  ;;  %v5902_v6 = vmov 0   ;;  %v5735_v48 = vld [vmem:[%s7245_s3 + $0x78] sm:$0xff]   ;;  %v5736_v53 = vld [vmem:[%s7245_s3 + $0x20] sm:$0xff]  }
  0x2a   : > { %v4453_v56 = vcombine.low %v440_v46, %v454_v2  ;;  %5274 = vmatprep.mubr.msk.bf16.mxu1 %vm476_vm0, %v4483_v52  ;;  %286 = vst [vmem:[#allocation2 + $0x18] sm:$0xf] %v5902_v6  ;;  %287 = vst [vmem:[#allocation2 + $0x1c] sm:$0x1] %v5902_v6  ;;  %5302 = vmatprep.subr.bf16.mxu1 %v5732_v11  ;;  %v6140_v46 = vld [vmem:[%s7244_s2] ss:$0 sm:$0xff] }
  0x2b   : > { %v765_v58 = vrot.slane %v764_v57, 4  ;;  %280 = vst [vmem:[#allocation2] sm:$0xf] %v5902_v6  ;;  %281 = vst [vmem:[#allocation2 + $0x4] sm:$0x1] %v5902_v6  ;;  %5303 = vmatpush3.bf16.msra.mxu1 %v5732_v11  ;;  %5278 = vmatprep.subr.bf16.mxu0 %v5735_v48 }
  0x2c   : > { %5245 = vmatmul.mubr.msk.bf16.gmra.mxu0 %vm476_vm0, %v4453_v56  ;;  %282 = vst [vmem:[#allocation2 + $0x8] sm:$0xf] %v5902_v6  ;;  %283 = vst [vmem:[#allocation2 + $0xc] sm:$0x1] %v5902_v6  ;;  %5304 = vmatprep.subr.bf16.mxu1 %v5733_v28 }
  0x2d   : > { %5260 = vmatprep.mubr.msk.bf16.mxu0 %vm476_vm0, %v4470_v55  ;;  %v770_v59 = vsel %vm6000_vm3, %v765_v58, %v769_v54  ;;  %284 = vst [vmem:[#allocation2 + $0x10] sm:$0xf] %v5902_v6  ;;  %285 = vst [vmem:[#allocation2 + $0x14] sm:$0x1] %v5902_v6 }
  0x2e   : > { %v4484_v60 = vcombine.low %v454_v2, %v770_v59  ;;  %288 = vst [vmem:[#allocation2 + $0x20] sm:$0xf] %v5902_v6  ;;  %289 = vst [vmem:[#allocation2 + $0x24] sm:$0x1] %v5902_v6 }
  0x2f   : > { %290 = vst [vmem:[#allocation2 + $0x28] sm:$0xf] %v5902_v6  ;;  %291 = vst [vmem:[#allocation2 + $0x2c] sm:$0x1] %v5902_v6  ;;  %5305 = vmatpush3.bf16.msra.mxu1 %v5733_v28 }
  0x30   : > { %292 = vst [vmem:[#allocation2 + $0x30] sm:$0xf] %v5902_v6  ;;  %293 = vst [vmem:[#allocation2 + $0x34] sm:$0x1] %v5902_v6  ;;  %5306 = vmatprep.subr.bf16.mxu1 %v5734_v47 }
  0x31   : > { %5275 = vmatmul.mubr.msk.bf16.gmra.mxu1 %vm476_vm0, %v4484_v60  ;;  %294 = vst [vmem:[#allocation2 + $0x38] sm:$0xf] %v5902_v6  ;;  %295 = vst [vmem:[#allocation2 + $0x3c] sm:$0x1] %v5902_v6 }
  0x32   : > { %296 = vst [vmem:[#allocation2 + $0x40] sm:$0xf] %v5902_v6  ;;  %297 = vst [vmem:[#allocation2 + $0x44] sm:$0x1] %v5902_v6  ;;  %v6133_v30 = vld [vmem:[#allocation2] sm:$0xf] }
  0x33   : > { %298 = vst [vmem:[#allocation2 + $0x48] sm:$0xf] %v5902_v6  ;;  %299 = vst [vmem:[#allocation2 + $0x4c] sm:$0x1] %v5902_v6  ;;  %5307 = vmatpush3.bf16.msra.mxu1 %v5734_v47  ;;  %v1113_v34 = vshrl.u32 %v6133_v30, 16  ;;  %v1116_v35 = vshll.u32 %v6133_v30, 16 }
  0x34   : > { %5261 = vmatmul.mubr.msk.bf16.vlgmr.msra.gmra.mxu0 %vm476_vm0, %v4471_v61  ;;  %300 = vst [vmem:[#allocation3] sm:$0xf] %v5902_v6  ;;  %301 = vst [vmem:[#allocation3 + $0x4] sm:$0x1] %v5902_v6  ;;  %5308 = vmatprep.subr.bf16.mxu1 %v5736_v53  ;;  %v6143_v59 = vld [vmem:[#allocation2 + $0x4] sm:$0x1] }
  0x35   : > { %5264 = vmatprep.mubr.msk.bf16.mxu0 %vm476_vm0, %v4472_v62  ;;  %302 = vst [vmem:[#allocation3 + $0x8] sm:$0xf] %v5902_v6  ;;  %303 = vst [vmem:[#allocation3 + $0xc] sm:$0x1] %v5902_v6  ;;  %5279 = vmatpush3.bf16.msra.mxu0 %v5735_v48  ;;  %v1115_v39 = vrot.slane %v1113_v34, 4  ;;  %v1118_v40 = vrot.slane %v1116_v35, 5 }
  0x36   : > { %304 = vst [vmem:[#allocation3 + $0x10] sm:$0xf] %v5902_v6  ;;  %305 = vst [vmem:[#allocation3 + $0x14] sm:$0x1] %v5902_v6  ;;  %5280 = vmatprep.subr.bf16.mxu0 %v5737_v63  ;;  %v1040_v34 = vld [vmem:[#allocation2 + $0x18] sm:$0xf] }
  0x37   : > { %306 = vst [vmem:[#allocation3 + $0x18] sm:$0xf] %v5902_v6  ;;  %307 = vst [vmem:[#allocation3 + $0x1c] sm:$0x1] %v5902_v6  ;;  %5309 = vmatpush3.bf16.msra.mxu1 %v5736_v53  ;;  %v1119_v50 = vor.u32 %v1118_v40, %v1115_v39  ;;  %v1043_v39 = vld [vmem:[#allocation2 + $0x1c] sm:$0x1] }
  0x38   : > { %308 = vst [vmem:[#allocation3 + $0x20] sm:$0xf] %v5902_v6  ;;  %309 = vst [vmem:[#allocation3 + $0x24] sm:$0x1] %v5902_v6  ;;  %5310 = vmatprep.subr.bf16.mxu1 %v5738_v0 }
  0x39   : > { %310 = vst [vmem:[#allocation3 + $0x28] sm:$0xf] %v5902_v6  ;;  %311 = vst [vmem:[#allocation3 + $0x2c] sm:$0x1] %v5902_v6  ;;  %5281 = vmatpush3.bf16.msra.mxu0 %v5737_v63 }
  0x3a   : > { %312 = vst [vmem:[#allocation3 + $0x30] sm:$0xf] %v5902_v6  ;;  %313 = vst [vmem:[#allocation3 + $0x34] sm:$0x1] %v5902_v6  ;;  %5282 = vmatprep.subr.bf16.mxu0 %v5739_v1 }
  0x3b   : > { %314 = vst [vmem:[#allocation3 + $0x38] sm:$0xf] %v5902_v6  ;;  %315 = vst [vmem:[#allocation3 + $0x3c] sm:$0x1] %v5902_v6  ;;  %5311 = vmatpush3.bf16.msra.mxu1 %v5738_v0 }
  0x3c   : > { %5265 = vmatmul.mubr.msk.bf16.gmra.mxu0 %vm476_vm0, %v4473_v5  ;;  %316 = vst [vmem:[#allocation3 + $0x40] sm:$0xf] %v5902_v6  ;;  %317 = vst [vmem:[#allocation3 + $0x44] sm:$0x1] %v5902_v6  ;;  %5312 = vmatprep.subr.bf16.mxu1 %v5740_v3  ;;  %v6145_v5 = vrot.slane %v1119_v50, 4 }
  0x3d   : > { %318 = vst [vmem:[#allocation3 + $0x48] sm:$0xf] %v5902_v6  ;;  %319 = vst [vmem:[#allocation3 + $0x4c] sm:$0x1] %v5902_v6  ;;  %5283 = vmatpush3.bf16.msra.mxu0 %v5739_v1  ;;  %v1122_v6 = vshll.u32 %v6143_v59, 16 }
  0x3e   : > { %5284 = vmatprep.subr.bf16.mxu0 %v5741_v4 }
  0x3f   : > { %5313 = vmatpush3.bf16.msra.mxu1 %v5740_v3 }
  0x40   : > { %5314 = vmatprep.subr.bf16.mxu1 %v5742_v7 }
  0x41   : > { %5285 = vmatpush3.bf16.msra.mxu0 %v5741_v4 }
  0x42   : > { %5286 = vmatprep.subr.bf16.mxu0 %v5743_v8 }
  0x43   : > { %5315 = vmatpush3.bf16.msra.mxu1 %v5742_v7 }
  0x44   : > { %5316 = vmatprep.subr.bf16.mxu1 %v5744_v9 }
  0x45   : > { %5287 = vmatpush3.bf16.msra.mxu0 %v5743_v8 }
  0x46   : > { %5288 = vmatprep.subr.bf16.mxu0 %v5745_v10 }
  0x47   : > { %5317 = vmatpush3.bf16.msra.mxu1 %v5744_v9 }
  0x48   : > { %5350 = vmatprep.subr.bf16.mxu1 %v6118_v12 }
  0x49   : > { %5289 = vmatpush3.bf16.msra.mxu0 %v5745_v10 }
  0x4a   : > { %5290 = vmatprep.subr.bf16.mxu0 %v5748_v13 }
  0x4d   : > { %5291 = vmatpush3.bf16.msra.mxu0 %v5748_v13 }
  0x4e   : > { %5292 = vmatprep.subr.bf16.mxu0 %v5751_v14 }
  0x51   : > { %5293 = vmatpush3.bf16.msra.mxu0 %v5751_v14 }
  0x52   : > { %5326 = vmatprep.subr.bf16.mxu0 %v6130_v15 }
  0xd6   : > { %v5252_v16 = vpop.f32.mrf.mxu1 }
  0xd8   : > { %v626_v17 = vpop.f32.mrf.mxu1 }
  0xda   : > { %v5253_v18 = vpop.f32.mrf.mxu1 }
  0xdc   : > { %v629_v19 = vpop.f32.mrf.mxu1 }
  0xe1   : > { %v5256_v20 = vpop.f32.mrf.mxu1 }
  0xe3   : > { %v5242_v21 = vpop.f32.mrf.mxu0  ;;  %v642_v22 = vpop.f32.mrf.mxu1 }
  0xe4   : > { %v635_v41 = vadd.f32 %v5252_v16, %v5242_v21 }
  0xe5   : > { %v523_v23 = vpop.f32.mrf.mxu0  ;;  %v5257_v24 = vpop.f32.mrf.mxu1 }
  0xe6   : > { %v627_v44 = vadd.f32 %v626_v17, %v523_v23 }
  0xe7   : > { %v5243_v25 = vpop.f32.mrf.mxu0  ;;  %v645_v26 = vpop.f32.mrf.mxu1 }
  0xe8   : > { %v638_v51 = vadd.f32 %v5253_v18, %v5243_v25 }
  0xe9   : > { %v526_v27 = vpop.f32.mrf.mxu0  ;;  %v5272_v32 = vpop.f32.mrf.mxu1 }
  0xea   : > { %v630_v60 = vadd.f32 %v629_v19, %v526_v27 }
  0xeb   : > { %v831_v37 = vpop.f32.mrf.mxu1 }
  0xec   : > { %v5246_v31 = vpop.f32.mrf.mxu0 }
  0xed   : > { %v5273_v43 = vpop.f32.mrf.mxu1  ;;  %v651_v48 = vadd.f32 %v5256_v20, %v5246_v31 }
  0xee   : > { %v539_v33 = vpop.f32.mrf.mxu0 }
  0xef   : > { %v834_v2 = vpop.f32.mrf.mxu1  ;;  %v643_v53 = vadd.f32 %v642_v22, %v539_v33  ;;  %v7265_v33 = vmov 0 }
  0xf0   : > { %v5247_v36 = vpop.f32.mrf.mxu0  ;;  %v7266_v33 = vsel %vm6157_vm11, 4294967295, %v7265_v33 }
  0xf1   : > { %v5276_v62 = vpop.f32.mrf.mxu1  ;;  %v654_v63 = vadd.f32 %v5257_v24, %v5247_v36  ;;  %7267 = vst [vmem:[#allocation5_spill] sm:$0xff] %v7266_v33 }
  0xf2   : > { %v542_v38 = vpop.f32.mrf.mxu0 }
  0xf3   : > { %v6150_v8 = vadd.f32 %v645_v26, %v542_v38  ;;  %v847_v16 = vpop.f32.mrf.mxu1  ;;  %v7268_v38 = vmov 0 }
  0xf4   : > { %v5262_v42 = vpop.f32.mrf.mxu0  ;;  %v7269_v38 = vsel %vm6163_vm12, 4294967295, %v7268_v38 }
  0xf5   : > { %v751_v45 = vadd.f32 %v5262_v42, %v635_v41  ;;  %7270 = vst [vmem:[#allocation6_spill] sm:$0xff] %v7269_v38 }
  0xf6   : > { %v718_v49 = vpop.f32.mrf.mxu0 }
  0xf7   : > { %v864_v52 = vadd.f32 %v5272_v32, %v751_v45  ;;  %v749_v54 = vadd.f32 %v718_v49, %v627_v44  ;;  %v1025_v49 = vld [vmem:[#allocation2 + $0x8] sm:$0xf] }
  0xf8   : > { %v5263_v55 = vpop.f32.mrf.mxu0 }
  0xf9   : > { %v879_v56 = vadd.f32 %v6140_v46, %v864_v52  ;;  %v862_v57 = vadd.f32 %v831_v37, %v749_v54  ;;  %v752_v58 = vadd.f32 %v5263_v55, %v638_v51  ;;  %v1031_v51 = vld [vmem:[#allocation2 + $0xc] sm:$0x1]  ;;  %v5277_v55 = vpop.f32.mrf.mxu1 }
  0xfa   : > { %v721_v61 = vpop.f32.mrf.mxu0 }
  0xfb   : > { %vm887_vm8 = vcmp.ge.f32.partialorder %v879_v56, 0.0  ;;  %v895_v11 = vmul.f32 0.1, %v879_v56  ;;  %v877_v28 = vadd.f32 %v6140_v46, %v862_v57  ;;  %v865_v47 = vadd.f32 %v5273_v43, %v752_v58 }
  0xfc   : > { %v750_v0 = vadd.f32 %v721_v61, %v630_v60  ;;  %v5266_v1 = vpop.f32.mrf.mxu0 }
  0xfd   : > { %v903_v3 = vsel %vm887_vm8, %v879_v56, %v895_v11  ;;  %vm885_vm9 = vcmp.ge.f32.partialorder %v877_v28, 0.0  ;;  %v893_v4 = vmul.f32 0.1, %v877_v28  ;;  %v880_v7 = vadd.f32 %v6140_v46, %v865_v47 }
  0xfe   : > { %v4988_v9 = vpack.c.bf16 %v903_v3, %v903_v3  ;;  %v863_v10 = vadd.f32 %v834_v2, %v750_v0  ;;  %v755_v13 = vadd.f32 %v5266_v1, %v651_v48  ;;  %v734_v14 = vpop.f32.mrf.mxu0 }
  0xff   : > { %v901_v17 = vsel %vm885_vm9, %v877_v28, %v893_v4  ;;  %vm888_vm10 = vcmp.ge.f32.partialorder %v880_v7, 0.0  ;;  %v896_v18 = vmul.f32 0.1, %v880_v7  ;;  %v753_v19 = vadd.f32 %v734_v14, %v643_v53  ;;  %v1046_v53 = vld [vmem:[#allocation2 + $0x20] sm:$0xf] }
 0x100   : > { %v958_v20 = vshrl.u32 %v4988_v9, 16  ;;  %v961_v21 = vshll.u32 %v4988_v9, 16  ;;  %v4986_v22 = vpack.c.bf16 %v901_v17, %v901_v17  ;;  %v878_v23 = vadd.f32 %v6140_v46, %v863_v10  ;;  %v5267_v24 = vpop.f32.mrf.mxu0  ;;  %v850_v9 = vpop.f32.mrf.mxu1 }
 0x101   : > { %v904_v25 = vsel %vm888_vm10, %v880_v7, %v896_v18  ;;  %v868_v27 = vadd.f32 %v5276_v62, %v755_v13  ;;  %v6153_v31 = vadd.f32 %v5267_v24, %v654_v63  ;;  %v866_v26 = vadd.f32 %v847_v16, %v753_v19  ;;  %v1049_v63 = vld [vmem:[#allocation2 + $0x24] sm:$0x1] }
 0x102   : > { %v960_v32 = vrot.slane %v958_v20, 7  ;;  %v942_v35 = vshrl.u32 %v4986_v22, 16  ;;  %v945_v36 = vshll.u32 %v4986_v22, 16  ;;  %v4989_v37 = vpack.c.bf16 %v904_v25, %v904_v25  ;;  %v737_v28 = vpop.f32.mrf.mxu0  ;;  %v1064_v25 = vld [vmem:[#allocation2 + $0x38] sm:$0xf] }
 0x103   : > { %vm886_vm13 = vcmp.ge.f32.partialorder %v878_v23, 0.0  ;;  %v894_v40 = vmul.f32 0.1, %v878_v23  ;;  %v883_v41 = vadd.f32 %v6140_v46, %v868_v27  ;;  %v881_v42 = vadd.f32 %v6140_v46, %v866_v26 }
 0x104   : > { %v963_v43 = vor.u32 %v961_v21, %v960_v32  ;;  %v964_v44 = vrot.slane %v960_v32, 4  ;;  %v944_v45 = vrot.slane %v942_v35, 7  ;;  %v966_v50 = vshrl.u32 %v4989_v37, 16  ;;  %v1034_v21 = vld [vmem:[#allocation2 + $0x10] sm:$0xf] }
 0x105   : > { %v969_v52 = vshll.u32 %v4989_v37, 16  ;;  %v902_v54 = vsel %vm886_vm13, %v878_v23, %v894_v40  ;;  %vm891_vm14 = vcmp.ge.f32.partialorder %v883_v41, 0.0  ;;  %v899_v2 = vmul.f32 0.1, %v883_v41  ;;  %v1037_v23 = vld [vmem:[#allocation2 + $0x14] sm:$0x1] }
 0x106   : > { %v1041_v56 = vsel %vm6157_vm11, %v963_v43, %v1040_v34  ;;  %v1044_v57 = vsel %vm6163_vm12, %v964_v44, %v1043_v39  ;;  %v947_v58 = vor.u32 %v945_v36, %v944_v45  ;;  %v948_v60 = vrot.slane %v944_v45, 4  ;;  %v1067_v34 = vld [vmem:[#allocation2 + $0x3c] sm:$0x1]  ;;  %v1052_v45 = vld [vmem:[#allocation2 + $0x28] sm:$0xf] }
 0x107   : > { %1042 = vst [vmem:[#allocation2 + $0x18] sm:$0xf] %v1041_v56  ;;  %1045 = vst [vmem:[#allocation2 + $0x1c] sm:$0x1] %v1044_v57  ;;  %v968_v61 = vrot.slane %v966_v50, 7  ;;  %v4987_v62 = vpack.c.bf16 %v902_v54, %v902_v54  ;;  %v907_v11 = vsel %vm891_vm14, %v883_v41, %v899_v2  ;;  %vm889_vm15 = vcmp.ge.f32.partialorder %v881_v42, 0.0 }
 0x108   : > { %v1026_v47 = vsel %vm6157_vm11, %v947_v58, %v1025_v49  ;;  %v1032_v48 = vsel %vm6163_vm12, %v948_v60, %v1031_v51  ;;  %v4992_v0 = vpack.c.bf16 %v907_v11, %v907_v11  ;;  %v897_v1 = vmul.f32 0.1, %v881_v42  ;;  %v1055_v49 = vld [vmem:[#allocation2 + $0x2c] sm:$0x1] }
 0x109   : > { %1027 = vst [vmem:[#allocation2 + $0x8] sm:$0xf] %v1026_v47  ;;  %1033 = vst [vmem:[#allocation2 + $0xc] sm:$0x1] %v1032_v48  ;;  %v971_v3 = vor.u32 %v969_v52, %v968_v61  ;;  %v972_v4 = vrot.slane %v968_v61, 4  ;;  %v950_v7 = vshrl.u32 %v4987_v62, 16  ;;  %v754_v17 = vadd.f32 %v737_v28, %v6150_v8 }
 0x10a   : > { %v6179_v10 = vrot.slane %v1122_v6, 5  ;;  %v953_v13 = vshll.u32 %v4987_v62, 16  ;;  %v990_v14 = vshrl.u32 %v4992_v0, 16  ;;  %v905_v16 = vsel %vm889_vm15, %v881_v42, %v897_v1 }
 0x10b   : > { %v1047_v18 = vsel %vm6157_vm11, %v971_v3, %v1046_v53  ;;  %v1050_v19 = vsel %vm6163_vm12, %v972_v4, %v1049_v63  ;;  %v952_v20 = vrot.slane %v950_v7, 7  ;;  %v4990_v22 = vpack.c.bf16 %v905_v16, %v905_v16 }
 0x10c   : > { %1048 = vst [vmem:[#allocation2 + $0x20] sm:$0xf] %v1047_v18  ;;  %1051 = vst [vmem:[#allocation2 + $0x24] sm:$0x1] %v1050_v19  ;;  %v992_v6 = vrot.slane %v990_v14, 7  ;;  %v993_v24 = vshll.u32 %v4992_v0, 16  ;;  %v869_v27 = vadd.f32 %v5277_v55, %v6153_v31  ;;  %v867_v26 = vadd.f32 %v850_v9, %v754_v17 }
 0x10d   : > { %v955_v32 = vor.u32 %v953_v13, %v952_v20  ;;  %v956_v8 = vrot.slane %v952_v20, 4  ;;  %v974_v35 = vshrl.u32 %v4990_v22, 16  ;;  %v977_v36 = vshll.u32 %v4990_v22, 16  ;;  %v1070_v13 = vld [vmem:[#allocation2 + $0x40] sm:$0xf] }
 0x10e   : > { %v995_v37 = vor.u32 %v993_v24, %v992_v6  ;;  %v996_v39 = vrot.slane %v992_v6, 4  ;;  %v884_v40 = vadd.f32 %v6140_v46, %v869_v27  ;;  %v882_v41 = vadd.f32 %v6140_v46, %v867_v26  ;;  %v6190_v42 = vld [vmem:[#allocation2 + $0x18] sm:$0xf]  ;;  %v1073_v14 = vld [vmem:[#allocation2 + $0x44] sm:$0x1]  ;;  %v5750_v26 = vld [vmem:[%s7245_s3 + $0xf0] sm:$0xff]  }
 0x10f   : > { %v1035_v43 = vsel %vm6157_vm11, %v955_v32, %v1034_v21  ;;  %v1038_v31 = vsel %vm6163_vm12, %v956_v8, %v1037_v23  ;;  %v976_v44 = vrot.slane %v974_v35, 7  ;;  %v1155_v50 = vshrl.u32 %v6190_v42, 16 }
 0x110   : > { %1036 = vst [vmem:[#allocation2 + $0x10] sm:$0xf] %v1035_v43  ;;  %1039 = vst [vmem:[#allocation2 + $0x14] sm:$0x1] %v1038_v31  ;;  %v1065_v51 = vsel %vm6157_vm11, %v995_v37, %v1064_v25  ;;  %v1068_v46 = vsel %vm6163_vm12, %v996_v39, %v1067_v34  ;;  %vm892_vm0 = vcmp.ge.f32.partialorder %v884_v40, 0.0  ;;  %vm890_vm1 = vcmp.ge.f32.partialorder %v882_v41, 0.0 }
 0x111   : > { %v900_v52 = vmul.f32 0.1, %v884_v40  ;;  %v6201_v54 = vld [vmem:[#allocation2 + $0x8] sm:$0xf]  ;;  %1066 = vst [vmem:[#allocation2 + $0x38] sm:$0xf] %v1065_v51  ;;  %v979_v2 = vor.u32 %v977_v36, %v976_v44  ;;  %v1125_v22 = vsel %vm6000_vm3, %v6145_v5, %v6179_v10 }
 0x112   : > { %1069 = vst [vmem:[#allocation2 + $0x3c] sm:$0x1] %v1068_v46  ;;  %v980_v55 = vrot.slane %v976_v44, 4  ;;  %v898_v56 = vmul.f32 0.1, %v882_v41  ;;  %v4527_v60 = vcombine.low %v6133_v30, %v6201_v54  ;;  %v1127_v61 = vshrl.u32 %v6201_v54, 16 }
 0x113   : > { %v6203_v57 = vld [vmem:[#allocation2 + $0xc] sm:$0x1]  ;;  %v908_v58 = vsel %vm892_vm0, %v884_v40, %v900_v52  ;;  %v1130_v62 = vshll.u32 %v6201_v54, 16  ;;  %v1053_v11 = vsel %vm6157_vm11, %v979_v2, %v1052_v45  ;;  %v1157_v7 = vrot.slane %v1155_v50, 4  ;;  %v1058_v25 = vld [vmem:[#allocation2 + $0x30] sm:$0xf] }
 0x114   : > { %v1056_v28 = vsel %vm6163_vm12, %v980_v55, %v1055_v49  ;;  %v4993_v47 = vpack.c.bf16 %v908_v58, %v908_v58  ;;  %v906_v48 = vsel %vm890_vm1, %v882_v41, %v898_v56  ;;  %1054 = vst [vmem:[#allocation2 + $0x28] sm:$0xf] %v1053_v11  ;;  %5318 = vmatprep.mubr.bf16.mxu1 %v4527_v60  ;;  %v1129_v63 = vrot.slane %v1127_v61, 4  ;;  %v1061_v36 = vld [vmem:[#allocation2 + $0x34] sm:$0x1] }
 0x115   : > { %1057 = vst [vmem:[#allocation2 + $0x2c] sm:$0x1] %v1056_v28  ;;  %v4991_v53 = vpack.c.bf16 %v906_v48, %v906_v48  ;;  %v1132_v0 = vrot.slane %v1130_v62, 5  ;;  %v1136_v1 = vshll.u32 %v6203_v57, 16  ;;  %v1158_v9 = vshll.u32 %v6190_v42, 16 }
 0x116   : > { %v998_v3 = vshrl.u32 %v4993_v47, 16  ;;  %v1001_v4 = vshll.u32 %v4993_v47, 16  ;;  %v6234_v40 = vld [vmem:[#allocation2 + $0x20] sm:$0xf]  ;;  %v6240_v43 = vld [vmem:[#allocation2 + $0x1c] sm:$0x1] }
 0x117   : > { %v982_v16 = vshrl.u32 %v4991_v53, 16  ;;  %v985_v17 = vshll.u32 %v4991_v53, 16  ;;  %v1133_v18 = vor.u32 %v1132_v0, %v1129_v63  ;;  %v1138_v19 = vrot.slane %v1136_v1, 5  ;;  %v6215_v21 = vld [vmem:[#allocation2 + $0x10] sm:$0xf] }
 0x118   : > { %v1000_v20 = vrot.slane %v998_v3, 7  ;;  %v6221_v23 = vld [vmem:[#allocation2 + $0x14] sm:$0x1]  ;;  %v1160_v6 = vrot.slane %v1158_v9, 5  ;;  %v6225_v27 = vcombine.low %v6215_v21, %v6190_v42  ;;  %v1141_v8 = vshrl.u32 %v6215_v21, 16 }
 0x119   : > { %v984_v24 = vrot.slane %v982_v16, 7  ;;  %v1134_v32 = vrot.slane %v1133_v18, 4  ;;  %v1144_v5 = vshll.u32 %v6215_v21, 16  ;;  %v1150_v10 = vshll.u32 %v6221_v23, 16  ;;  %v6250_v46 = vld [vmem:[#allocation2 + $0x24] sm:$0x1] }
 0x11a   : > { %v1003_v34 = vor.u32 %v1001_v4, %v1000_v20  ;;  %v1004_v35 = vrot.slane %v1000_v20, 4  ;;  %5319 = vmatmul.mubr.bf16.vlgmr.msra.gmra.mxu1 %v6225_v27  ;;  %v1143_v31 = vrot.slane %v1141_v8, 4  ;;  %v1161_v60 = vor.u32 %v1160_v6, %v1157_v7  ;;  %v6271_v53 = vld [vmem:[#allocation2 + $0x38] sm:$0xf]  ;;  %v5757_v4 = vld [vmem:[%s7245_s3 + $0xe0] sm:$0xff]  }
 0x11b   : > { %v987_v37 = vor.u32 %v985_v17, %v984_v24  ;;  %v988_v39 = vrot.slane %v984_v24, 4  ;;  %v6238_v41 = vsel %vm6000_vm3, %v1134_v32, %v1138_v19  ;;  %5351 = vmatpush3.bf16.msra.mxu1 %v6118_v12  ;;  %v6247_v49 = vld [vmem:[#allocation2 + $0x28] sm:$0xf]  ;;  %v1146_v51 = vrot.slane %v1144_v5, 5  ;;  %v6296_v8 = vld [vmem:[#allocation2 + $0x3c] sm:$0x1] }
 0x11c   : > { %v1071_v44 = vsel %vm6157_vm11, %v1003_v34, %v1070_v13  ;;  %v1074_v45 = vsel %vm6163_vm12, %v1004_v35, %v1073_v14  ;;  %v4515_v50 = vcombine.low %v1125_v22, %v6238_v41  ;;  %5352 = vmatprep.subr.bf16.mxu1 %v5750_v26  ;;  %v6258_v55 = vcombine.low %v6234_v40, %v6247_v49  ;;  %v5753_v12 = vld [vmem:[%s7245_s3 + $0xe8] sm:$0xff]   ;;  %v5758_v22 = vld [vmem:[%s7245_s3 + $0xb0] sm:$0xff]  }
 0x11d   : > { %1072 = vst [vmem:[#allocation2 + $0x40] sm:$0xf] %v1071_v44  ;;  %1075 = vst [vmem:[#allocation2 + $0x44] sm:$0x1] %v1074_v45  ;;  %v1059_v52 = vsel %vm6157_vm11, %v987_v37, %v1058_v25  ;;  %v1062_v2 = vsel %vm6163_vm12, %v988_v39, %v1061_v36  ;;  %v1147_v56 = vor.u32 %v1146_v51, %v1143_v31  ;;  %v1152_v58 = vrot.slane %v1150_v10, 5 }
 0x11e   : > { %1060 = vst [vmem:[#allocation2 + $0x30] sm:$0xf] %v1059_v52  ;;  %1063 = vst [vmem:[#allocation2 + $0x34] sm:$0x1] %v1062_v2  ;;  %5294 = vmatprep.mubr.bf16.mxu0 %v4515_v50  ;;  %v1164_v61 = vshll.u32 %v6240_v43, 16  ;;  %5322 = vmatprep.mubr.bf16.mxu1 %v6258_v55  ;;  %v1169_v11 = vshrl.u32 %v6234_v40, 16  ;;  %v4591_v45 = vcombine.low %v6201_v54, %v6215_v21 }
 0x11f   : > { %v6265_v62 = vld [vmem:[#allocation2 + $0x2c] sm:$0x1]  ;;  %v1172_v28 = vshll.u32 %v6234_v40, 16  ;;  %v1178_v47 = vshll.u32 %v6250_v46, 16  ;;  %v1183_v48 = vshrl.u32 %v6247_v49, 16  ;;  %5353 = vmatpush3.bf16.msra.mxu1 %v5750_v26  ;;  %v1148_v63 = vrot.slane %v1147_v56, 4 }
 0x120   : > { %v1162_v0 = vrot.slane %v1161_v60, 4  ;;  %v1166_v1 = vrot.slane %v1164_v61, 5  ;;  %v1186_v3 = vshll.u32 %v6247_v49, 16  ;;  %5354 = vmatprep.subr.bf16.mxu1 %v5753_v12  ;;  %v1171_v7 = vrot.slane %v1169_v11, 4 }
 0x121   : > { %v1174_v9 = vrot.slane %v1172_v28, 5  ;;  %v1185_v13 = vrot.slane %v1183_v48, 4  ;;  %v4539_v14 = vrot.slane %v6133_v30, 9  ;;  %v6280_v16 = vsel %vm6000_vm3, %v1148_v63, %v1152_v58  ;;  %v5761_v48 = vld [vmem:[%s7245_s3 + $0xd0] sm:$0xff]  }
 0x122   : > { %v6284_v17 = vsel %vm6000_vm3, %v1162_v0, %v1166_v1  ;;  %v1188_v18 = vrot.slane %v1186_v3, 5  ;;  %v1192_v19 = vshll.u32 %v6265_v62, 16  ;;  %v1211_v6 = vshrl.u32 %v6271_v53, 16  ;;  %v5762_v0 = vld [vmem:[%s7245_s3 + $0xa0] sm:$0xff]  }
 0x123   : > { %v6289_v20 = vcombine.low %v6280_v16, %v6284_v17  ;;  %v1175_v30 = vor.u32 %v1174_v9, %v1171_v7  ;;  %v1214_v24 = vshll.u32 %v6271_v53, 16  ;;  %5355 = vmatpush3.bf16.msra.mxu1 %v5753_v12  ;;  %v1180_v25 = vrot.slane %v1178_v47, 5 }
 0x124   : > { %v1189_v26 = vor.u32 %v1188_v18, %v1185_v13  ;;  %v1194_v32 = vrot.slane %v1192_v19, 5  ;;  %v1520_v34 = vrot.slane %v6143_v59, 5  ;;  %5356 = vmatprep.subr.bf16.mxu1 %v5757_v4  ;;  %v1213_v10 = vrot.slane %v1211_v6, 4  ;;  %v5759_v59 = vld [vmem:[%s7245_s3 + $0xd8] sm:$0xff]   ;;  %v5766_v6 = vld [vmem:[%s7245_s3 + $0x90] sm:$0xff]  }
 0x125   : > { %v6299_v35 = vld [vmem:[#allocation2 + $0x30] sm:$0xf]  ;;  %5295 = vmatmul.mubr.bf16.vlgmr.msra.gmra.mxu0 %v6289_v20  ;;  %v1176_v36 = vrot.slane %v1175_v30, 4  ;;  %v6302_v5 = vld [vmem:[#allocation2 + $0x34] sm:$0x1]  ;;  %v1216_v51 = vrot.slane %v1214_v24, 5 }
 0x126   : > { %v6306_v37 = vcombine.low %v6299_v35, %v6271_v53  ;;  %5327 = vmatpush3.bf16.msra.mxu0 %v6130_v15  ;;  %v1190_v39 = vrot.slane %v1189_v26, 4  ;;  %v1197_v31 = vshrl.u32 %v6299_v35, 16  ;;  %v1200_v44 = vshll.u32 %v6299_v35, 16  ;;  %v5760_v15 = vld [vmem:[%s7245_s3 + $0xa8] sm:$0xff]   ;;  %v5764_v19 = vld [vmem:[%s7245_s3 + $0x98] sm:$0xff]   ;;  %v5765_v30 = vld [vmem:[%s7245_s3 + $0xc0] sm:$0xff]  }
 0x127   : > { %5328 = vmatprep.subr.bf16.mxu0 %v5758_v22  ;;  %v6318_v50 = vsel %vm6000_vm3, %v1176_v36, %v1180_v25  ;;  %v1220_v52 = vshll.u32 %v6296_v8, 16  ;;  %v1206_v58 = vshll.u32 %v6302_v5, 16  ;;  %5357 = vmatpush3.bf16.msra.mxu1 %v5757_v4  ;;  %v1217_v61 = vor.u32 %v1216_v51, %v1213_v10  ;;  %v5768_v24 = vld [vmem:[%s7245_s3 + $0x178] sm:$0xff]   ;;  %v5769_v25 = vld [vmem:[%s7245_s3 + $0x88] sm:$0xff]   ;;  %v5772_v36 = vld [vmem:[%s7245_s3 + $0x80] sm:$0xff]  }
 0x128   : > { %5323 = vmatmul.mubr.bf16.gmra.mxu1 %v6306_v37  ;;  %v6327_v2 = vsel %vm6000_vm3, %v1190_v39, %v1194_v32  ;;  %v1199_v12 = vrot.slane %v1197_v31, 4  ;;  %v1202_v56 = vrot.slane %v1200_v44, 5  ;;  %v4540_v11 = vrot.slane %v6201_v54, 9  ;;  %5358 = vmatprep.subr.bf16.mxu1 %v5759_v59  ;;  %v5771_v32 = vld [vmem:[%s7245_s3 + $0x170] sm:$0xff]   ;;  %v5774_v44 = vld [vmem:[%s7245_s3 + $0x168] sm:$0xff]  }
 0x129   : > { %5366 = vmatprep.mubr.bf16.mxu1 %v4591_v45  ;;  %v6332_v60 = vcombine.low %v6318_v50, %v6327_v2  ;;  %v1524_v28 = vrot.slane %v6203_v57, 5  ;;  %v1218_v63 = vrot.slane %v1217_v61, 4  ;;  %v1208_v3 = vrot.slane %v1206_v58, 5  ;;  %v5777_v61 = vld [vmem:[%s7245_s3 + $0x130] sm:$0xff]  }
 0x12a   : > { %5329 = vmatpush3.bf16.msra.mxu0 %v5758_v22  ;;  %v1203_v47 = vor.u32 %v1202_v56, %v1199_v12  ;;  %v1222_v54 = vrot.slane %v1220_v52, 5  ;;  %v7271_v57 = vmov 0  ;;  %v1521_v4 = vsel %vm6345_vm5, %v4539_v14, %v1520_v34  ;;  %v5763_v14 = vld [vmem:[%s7245_s3 + $0xc8] sm:$0xff]   ;;  %v5776_v12 = vld [vmem:[%s7245_s3 + $0x160] sm:$0xff]  }
 0x12b   : > { %5298 = vmatprep.mubr.bf16.mxu0 %v6332_v60  ;;  %5330 = vmatprep.subr.bf16.mxu0 %v5760_v15  ;;  %v7272_v57 = vsel %vm6345_vm5, 4294967295, %v7271_v57  ;;  %v6353_v7 = vsel %vm6345_vm5, %v4540_v11, %v1524_v28  ;;  %v4592_v26 = vcombine.low %v6190_v42, %v6234_v40  ;;  %v4593_v34 = vcombine.low %v6247_v49, %v6299_v35 }
 0x12c   : > { %v1204_v1 = vrot.slane %v1203_v47, 4  ;;  %7273 = vst [vmem:[#allocation7_spill] sm:$0xff] %v7272_v57  ;;  %5359 = vmatpush3.bf16.msra.mxu1 %v5759_v59  ;;  %v6361_v13 = vsel %vm6000_vm3, %v1218_v63, %v1222_v54  ;;  %v4563_v22 = vcombine.low %v1521_v4, %v6353_v7  ;;  %v4541_v10 = vrot.slane %v6215_v21, 9  ;;  %v6406_v21 = vld [vmem:[#allocation2 + $0x40] sm:$0xf]  ;;  %v5778_v47 = vld [vmem:[%s7245_s3 + $0x158] sm:$0xff]  }
 0x12d   : > { %5360 = vmatprep.subr.bf16.mxu1 %v5761_v48  ;;  %v1528_v39 = vrot.slane %v6221_v23, 5  ;;  %v4544_v59 = vrot.slane %v6247_v49, 9  ;;  %v1540_v31 = vrot.slane %v6265_v62, 5  ;;  %v4542_v45 = vrot.slane %v6190_v42, 9  ;;  %v5775_v23 = vld [vmem:[%s7245_s3 + $0x138] sm:$0xff]   ;;  %v5782_v54 = vld [vmem:[%s7245_s3 + $0x148] sm:$0xff]  }
 0x12e   : > { %v6357_v9 = vsel %vm6000_vm3, %v1204_v1, %v1208_v3  ;;  %5331 = vmatpush3.bf16.msra.mxu0 %v5760_v15  ;;  %v1532_v15 = vrot.slane %v6240_v43, 5  ;;  %v4543_v49 = vrot.slane %v6234_v40, 9  ;;  %v1536_v62 = vrot.slane %v6250_v46, 5  ;;  %v5781_v3 = vld [vmem:[%s7245_s3 + $0x120] sm:$0xff]   ;;  %v5783_v4 = vld [vmem:[%s7245_s3 + $0x118] sm:$0xff]  }
 0x12f   : > { %v6365_v18 = vcombine.low %v6357_v9, %v6361_v13  ;;  %5332 = vmatprep.subr.bf16.mxu0 %v5762_v0  ;;  %v1529_v51 = vsel %vm6345_vm5, %v4541_v10, %v1528_v39  ;;  %v6417_v42 = vsel %vm6345_vm5, %v4544_v59, %v1540_v31  ;;  %v4594_v43 = vcombine.low %v6271_v53, %v6406_v21  ;;  %v5790_v39 = vld [vmem:[%s7245_s3 + $0x1e8] sm:$0xff]   ;;  %v5791_v31 = vld [vmem:[%s7245_s3 + $0x1b8] sm:$0xff]  }
 0x130   : > { %5361 = vmatpush3.bf16.msra.mxu1 %v5761_v48  ;;  %v6423_v52 = vsel %vm6345_vm5, %v4542_v45, %v1532_v15  ;;  %v1537_v46 = vsel %vm6345_vm5, %v4543_v49, %v1536_v62  ;;  %v4648_v56 = vcombine.low %v6353_v7, %v1529_v51  ;;  %v4545_v11 = vrot.slane %v6299_v35, 9  ;;  %v5786_v7 = vld [vmem:[%s7245_s3 + $0x1f8] sm:$0xff]   ;;  %v5792_v15 = vld [vmem:[%s7245_s3 + $0x1e0] sm:$0xff]   ;;  %v5793_v62 = vld [vmem:[%s7245_s3 + $0x1b0] sm:$0xff]  }
 0x131   : > { %5299 = vmatmul.mubr.bf16.gmra.mxu0 %v6365_v18  ;;  %5362 = vmatprep.subr.bf16.mxu1 %v5763_v14  ;;  %v6426_v40 = vcombine.low %v1529_v51, %v6423_v52  ;;  %v6435_v58 = vcombine.low %v1537_v46, %v6417_v42  ;;  %v1544_v28 = vrot.slane %v6302_v5, 5  ;;  %v4546_v48 = vrot.slane %v6271_v53, 9  ;;  %v5779_v5 = vld [vmem:[%s7245_s3 + $0x128] sm:$0xff]   ;;  %v5780_v53 = vld [vmem:[%s7245_s3 + $0x150] sm:$0xff]  }
 0x132   : > { %5342 = vmatprep.mubr.bf16.mxu0 %v4563_v22  ;;  %5333 = vmatpush3.bf16.msra.mxu0 %v5762_v0  ;;  %v1548_v63 = vrot.slane %v6296_v8, 5  ;;  %v4619_v1 = vcombine.low %v6238_v41, %v6280_v16  ;;  %v5784_v41 = vld [vmem:[%s7245_s3 + $0x140] sm:$0xff]   ;;  %v5785_v16 = vld [vmem:[%s7245_s3 + $0x110] sm:$0xff]   ;;  %v1853_v22 = vshrl.u32 %v6406_v21, 16  ;;  %v4620_v49 = vcombine.low %v6284_v17, %v6318_v50  ;;  %v5795_v50 = vld [vmem:[%s7245_s3 + $0x1a8] sm:$0xff]  }
 0x133   : > { %5334 = vmatprep.subr.bf16.mxu0 %v5764_v19  ;;  %v1545_v35 = vsel %vm6345_vm5, %v4545_v11, %v1544_v28  ;;  %v4621_v51 = vcombine.low %v6327_v2, %v6357_v9  ;;  %v5796_v2 = vld [vmem:[%s7245_s3 + $0x1d0] sm:$0xff]   ;;  %v5800_v11 = vld [vmem:[%s7245_s3 + $0x1c0] sm:$0xff]  }
 0x134   : > { %5363 = vmatpush3.bf16.msra.mxu1 %v5763_v14  ;;  %v1549_v0 = vsel %vm6345_vm5, %v4546_v48, %v1548_v63  ;;  %v5787_v14 = vld [vmem:[%s7245_s3 + $0x108] sm:$0xff]  }
 0x135   : > { %5364 = vmatprep.subr.bf16.mxu1 %v5765_v30  ;;  %v6459_v8 = vcombine.low %v1545_v35, %v1549_v0  ;;  %v1095_v48 = vld [vmem:[#allocation2 + $0x4c] sm:$0x1] }
 0x136   : > { %5335 = vmatpush3.bf16.msra.mxu0 %v5764_v19  ;;  %v1093_v19 = vld [vmem:[#allocation2 + $0x44] sm:$0x1] }
 0x137   : > { %5336 = vmatprep.subr.bf16.mxu0 %v5766_v6 }
 0x138   : > { %5365 = vmatpush3.bf16.msra.mxu1 %v5765_v30  ;;  %v1856_v30 = vshll.u32 %v6406_v21, 16 }
 0x139   : > { %5398 = vmatprep.subr.bf16.mxu1 %v5768_v24 }
 0x13a   : > { %5337 = vmatpush3.bf16.msra.mxu0 %v5766_v6  ;;  %v4649_v6 = vcombine.low %v6423_v52, %v1537_v46  ;;  %v1858_v10 = vrot.slane %v1856_v30, 5  ;;  %v5797_v52 = vld [vmem:[%s7245_s3 + $0x1a0] sm:$0xff]   ;;  %v6533_v46 = vld [vmem:[#allocation2 + $0x48] sm:$0xf] }
 0x13b   : > { %5338 = vmatprep.subr.bf16.mxu0 %v5769_v25  ;;  %5367 = vmatmul.mubr.bf16.vlgmr.msra.gmra.mxu1 %v4592_v26  ;;  %v4631_v26 = vrot.slane %v6406_v21, 9 }
 0x13c   : > { %5370 = vmatprep.mubr.bf16.mxu1 %v4593_v34  ;;  %5399 = vmatpush3.bf16.msra.mxu1 %v5768_v24  ;;  %v5788_v24 = vld [vmem:[%s7245_s3 + $0x1f0] sm:$0xff]   ;;  %v5789_v34 = vld [vmem:[%s7245_s3 + $0x100] sm:$0xff]  }
 0x13d   : > { %5400 = vmatprep.subr.bf16.mxu1 %v5771_v32 }
 0x13e   : > { %5339 = vmatpush3.bf16.msra.mxu0 %v5769_v25  ;;  %v4650_v25 = vcombine.low %v6417_v42, %v1545_v35  ;;  %v2317_v35 = vshll.u32 %v1095_v48, 16 }
 0x13f   : > { %5340 = vmatprep.subr.bf16.mxu0 %v5772_v36 }
 0x140   : > { %5401 = vmatpush3.bf16.msra.mxu1 %v5771_v32  ;;  %v2016_v32 = vrot.slane %v1093_v19, 5 }
 0x141   : > { %5402 = vmatprep.subr.bf16.mxu1 %v5774_v44 }
 0x142   : > { %5341 = vmatpush3.bf16.msra.mxu0 %v5772_v36  ;;  %v1855_v36 = vrot.slane %v1853_v22, 4  ;;  %v6501_v59 = vsel %vm6345_vm5, %v4631_v26, %v2016_v32 }
 0x143   : > { %5374 = vmatprep.subr.bf16.mxu0 %v5775_v23  ;;  %5371 = vmatmul.mubr.bf16.gmra.mxu1 %v4594_v43  ;;  %v4651_v45 = vcombine.low %v1549_v0, %v6501_v59  ;;  %v5794_v43 = vld [vmem:[%s7245_s3 + $0x1d8] sm:$0xff]  }
 0x144   : > { %5403 = vmatpush3.bf16.msra.mxu1 %v5774_v44  ;;  %5414 = vmatprep.mubr.bf16.mxu1 %v4648_v56  ;;  %v1859_v44 = vor.u32 %v1858_v10, %v1855_v36  ;;  %v2308_v56 = vshrl.u32 %v6533_v46, 16  ;;  %v5815_v10 = vld [vmem:[%s7247_s5 + $0x28] sm:$0xff]  }
 0x145   : > { %5343 = vmatmul.mubr.bf16.vlgmr.msra.gmra.mxu0 %v6426_v40  ;;  %5404 = vmatprep.subr.bf16.mxu1 %v5776_v12 }
 0x146   : > { %5346 = vmatprep.mubr.bf16.mxu0 %v6435_v58  ;;  %5375 = vmatpush3.bf16.msra.mxu0 %v5775_v23  ;;  %v1862_v23 = vshll.u32 %v1093_v19, 16  ;;  %v1860_v42 = vrot.slane %v1859_v44, 4  ;;  %v2310_v28 = vrot.slane %v2308_v56, 4  ;;  %v5817_v44 = vld [vmem:[%s7247_s5 + $0x20] sm:$0xff]  }
 0x147   : > { %5376 = vmatprep.subr.bf16.mxu0 %v5777_v61 }
 0x148   : > { %5405 = vmatpush3.bf16.msra.mxu1 %v5776_v12  ;;  %v1864_v17 = vrot.slane %v1862_v23, 5  ;;  %v5798_v12 = vld [vmem:[%s7245_s3 + $0x1c8] sm:$0xff]  }
 0x149   : > { %5406 = vmatprep.subr.bf16.mxu1 %v5778_v47 }
 0x14a   : > { %5377 = vmatpush3.bf16.msra.mxu0 %v5777_v61  ;;  %v5799_v61 = vld [vmem:[%s7245_s3 + $0x198] sm:$0xff]  }
 0x14b   : > { %5378 = vmatprep.subr.bf16.mxu0 %v5779_v5 }
 0x14c   : > { %5407 = vmatpush3.bf16.msra.mxu1 %v5778_v47 }
 0x14d   : > { %5347 = vmatmul.mubr.bf16.gmra.mxu0 %v6459_v8  ;;  %5408 = vmatprep.subr.bf16.mxu1 %v5780_v53 }
 0x14e   : > { %5390 = vmatprep.mubr.bf16.mxu0 %v4619_v1  ;;  %5379 = vmatpush3.bf16.msra.mxu0 %v5779_v5  ;;  %v5802_v5 = vld [vmem:[%s7245_s3 + $0x188] sm:$0xff]   ;;  %v5803_v1 = vld [vmem:[%s7245_s3 + $0x180] sm:$0xff]  }
 0x14f   : > { %5380 = vmatprep.subr.bf16.mxu0 %v5781_v3 }
 0x150   : > { %5409 = vmatpush3.bf16.msra.mxu1 %v5780_v53  ;;  %v2319_v53 = vrot.slane %v2317_v35, 5  ;;  %v6688_v35 = vld [vmem:[%s7247_s5 + $0xb8] sm:$0xff]  }
 0x151   : > { %5410 = vmatprep.subr.bf16.mxu1 %v5782_v54  ;;  %7275 = vst [vmem:[#allocation9_spill] sm:$0xff] %v6688_v35 }
 0x152   : > { %5381 = vmatpush3.bf16.msra.mxu0 %v5781_v3 }
 0x153   : > { %5382 = vmatprep.subr.bf16.mxu0 %v5783_v4 }
 0x154   : > { %5411 = vmatpush3.bf16.msra.mxu1 %v5782_v54  ;;  %v5804_v54 = vld [vmem:[%s7245_s3 + $0x238] sm:$0xff]  }
 0x155   : > { %5412 = vmatprep.subr.bf16.mxu1 %v5784_v41 }
 0x156   : > { %5383 = vmatpush3.bf16.msra.mxu0 %v5783_v4 }
 0x157   : > { %5384 = vmatprep.subr.bf16.mxu0 %v5785_v16 }
 0x158   : > { %5413 = vmatpush3.bf16.msra.mxu1 %v5784_v41  ;;  %v4676_v41 = vcombine.low %v6406_v21, %v6533_v46  ;;  %v5811_v21 = vld [vmem:[%s7245_s3 + $0x208] sm:$0xff]  }
 0x159   : > { %5446 = vmatprep.subr.bf16.mxu1 %v5786_v7 }
 0x15a   : > { %5385 = vmatpush3.bf16.msra.mxu0 %v5785_v16  ;;  %v5808_v16 = vld [vmem:[%s7245_s3 + $0x220] sm:$0xff]  }
 0x15b   : > { %5415 = vmatmul.mubr.bf16.vlgmr.msra.gmra.mxu1 %v4649_v6  ;;  %5386 = vmatprep.subr.bf16.mxu0 %v5787_v14 }
 0x15c   : > { %5418 = vmatprep.mubr.bf16.mxu1 %v4650_v25  ;;  %5447 = vmatpush3.bf16.msra.mxu1 %v5786_v7  ;;  %v4710_v7 = vrot.slane %v6533_v46, 9  ;;  %v5813_v25 = vld [vmem:[%s7247_s5 + $0x38] sm:$0xff]  }
 0x15d   : > { %5448 = vmatprep.subr.bf16.mxu1 %v5788_v24 }
 0x15e   : > { %5387 = vmatpush3.bf16.msra.mxu0 %v5787_v14  ;;  %v2465_v14 = vrot.slane %v1095_v48, 5 }
 0x15f   : > { %5388 = vmatprep.subr.bf16.mxu0 %v5789_v34 }
 0x160   : > { %5449 = vmatpush3.bf16.msra.mxu1 %v5788_v24  ;;  %v2466_v19 = vsel %vm6345_vm5, %v4710_v7, %v2465_v14 }
 0x161   : > { %5450 = vmatprep.subr.bf16.mxu1 %v5790_v39  ;;  %v4727_v22 = vcombine.low %v6501_v59, %v2466_v19 }
 0x162   : > { %5389 = vmatpush3.bf16.msra.mxu0 %v5789_v34 }
 0x163   : > { %5419 = vmatmul.mubr.bf16.gmra.mxu1 %v4651_v45  ;;  %5422 = vmatprep.subr.bf16.mxu0 %v5791_v31 }
 0x164   : > { %5451 = vmatpush3.bf16.msra.mxu1 %v5790_v39  ;;  %5462 = vmatprep.mubr.bf16.mxu1 %v6289_v20  ;;  %v1865_v20 = vsel %vm6000_vm3, %v1860_v42, %v1864_v17  ;;  %v5816_v39 = vld [vmem:[%s7247_s5 + $0x78] sm:$0xff]   ;;  %v5822_v17 = vld [vmem:[%s7247_s5 + $0x60] sm:$0xff]  }
 0x165   : > { %5391 = vmatmul.mubr.bf16.vlgmr.msra.gmra.mxu0 %v4620_v49  ;;  %5452 = vmatprep.subr.bf16.mxu1 %v5792_v15  ;;  %v4622_v9 = vcombine.low %v6361_v13, %v1865_v20  ;;  %v2311_v13 = vshll.u32 %v6533_v46, 16  ;;  %v5819_v49 = vld [vmem:[%s7247_s5 + $0x18] sm:$0xff]   ;;  %v5825_v46 = vld [vmem:[%s7247_s5] sm:$0xff]  }
 0x166   : > { %5394 = vmatprep.mubr.bf16.mxu0 %v4621_v51  ;;  %5423 = vmatpush3.bf16.msra.mxu0 %v5791_v31  ;;  %v5820_v51 = vld [vmem:[%s7247_s5 + $0x68] sm:$0xff]  }
 0x167   : > { %5424 = vmatprep.subr.bf16.mxu0 %v5793_v62  ;;  %v2313_v47 = vrot.slane %v2311_v13, 5 }
 0x168   : > { %5453 = vmatpush3.bf16.msra.mxu1 %v5792_v15  ;;  %v5818_v15 = vld [vmem:[%s7247_s5 + $0x70] sm:$0xff]  }
 0x169   : > { %5454 = vmatprep.subr.bf16.mxu1 %v5794_v43  ;;  %v2314_v63 = vor.u32 %v2313_v47, %v2310_v28 }
 0x16a   : > { %5425 = vmatpush3.bf16.msra.mxu0 %v5793_v62 }
 0x16b   : > { %5426 = vmatprep.subr.bf16.mxu0 %v5795_v50  ;;  %v2315_v0 = vrot.slane %v2314_v63, 4 }
 0x16c   : > { %5455 = vmatpush3.bf16.msra.mxu1 %v5794_v43  ;;  %v5821_v43 = vld [vmem:[%s7247_s5 + $0x10] sm:$0xff]  }
 0x16d   : > { %5395 = vmatmul.mubr.bf16.gmra.mxu0 %v4622_v9  ;;  %5456 = vmatprep.subr.bf16.mxu1 %v5796_v2  ;;  %v2320_v3 = vsel %vm6000_vm3, %v2315_v0, %v2319_v53 }
 0x16e   : > { %5427 = vmatpush3.bf16.msra.mxu0 %v5795_v50  ;;  %5438 = vmatprep.mubr.bf16.mxu0 %v6225_v27  ;;  %v5801_v27 = vld [vmem:[%s7245_s3 + $0x190] sm:$0xff]   ;;  %v4701_v4 = vcombine.low %v1865_v20, %v2320_v3  ;;  %v5823_v20 = vld [vmem:[%s7247_s5 + $0x8] sm:$0xff]  }
 0x16f   : > { %5428 = vmatprep.subr.bf16.mxu0 %v5797_v52 }
 0x170   : > { %5457 = vmatpush3.bf16.msra.mxu1 %v5796_v2  ;;  %v5824_v2 = vld [vmem:[%s7247_s5 + $0x58] sm:$0xff]  }
 0x171   : > { %5458 = vmatprep.subr.bf16.mxu1 %v5798_v12 }
 0x172   : > { %5429 = vmatpush3.bf16.msra.mxu0 %v5797_v52 }
 0x173   : > { %5430 = vmatprep.subr.bf16.mxu0 %v5799_v61 }
 0x174   : > { %5459 = vmatpush3.bf16.msra.mxu1 %v5798_v12  ;;  %v5826_v12 = vld [vmem:[%s7247_s5 + $0x50] sm:$0xff]  }
 0x175   : > { %5460 = vmatprep.subr.bf16.mxu1 %v5800_v11 }
 0x176   : > { %5431 = vmatpush3.bf16.msra.mxu0 %v5799_v61  ;;  %v6676_v61 = vld [vmem:[%s7247_s5 + $0xf8] sm:$0xff]  }
 0x177   : > { %5432 = vmatprep.subr.bf16.mxu0 %v5801_v27  ;;  %7274 = vst [vmem:[#allocation8_spill] sm:$0xff] %v6676_v61 }
 0x178   : > { %5461 = vmatpush3.bf16.msra.mxu1 %v5800_v11  ;;  %v5829_v11 = vld [vmem:[%s7247_s5 + $0x48] sm:$0xff]  }
 0x179   : > { %5494 = vmatprep.subr.bf16.mxu1 %v5816_v39 }
 0x17a   : > { %5433 = vmatpush3.bf16.msra.mxu0 %v5801_v27  ;;  %v5832_v27 = vld [vmem:[%s7247_s5 + $0x40] sm:$0xff]  }
 0x17b   : > { %5463 = vmatmul.mubr.bf16.vlgmr.msra.gmra.mxu1 %v6332_v60  ;;  %5434 = vmatprep.subr.bf16.mxu0 %v5802_v5  ;;  %v5805_v60 = vld [vmem:[%s7245_s3 + $0x230] sm:$0xff]  }
 0x17c   : > { %5466 = vmatprep.mubr.bf16.mxu1 %v6365_v18  ;;  %v5807_v18 = vld [vmem:[%s7245_s3 + $0x228] sm:$0xff]   ;;  %5495 = vmatpush3.bf16.msra.mxu1 %v5816_v39 }
 0x17d   : > { %5496 = vmatprep.subr.bf16.mxu1 %v5818_v15 }
 0x17e   : > { %5435 = vmatpush3.bf16.msra.mxu0 %v5802_v5 }
 0x17f   : > { %5436 = vmatprep.subr.bf16.mxu0 %v5803_v1 }
 0x180   : > { %5497 = vmatpush3.bf16.msra.mxu1 %v5818_v15 }
 0x181   : > { %5498 = vmatprep.subr.bf16.mxu1 %v5820_v51 }
 0x182   : > { %5437 = vmatpush3.bf16.msra.mxu0 %v5803_v1 }
 0x183   : > { %5467 = vmatmul.mubr.bf16.gmra.mxu1 %v4701_v4  ;;  %5470 = vmatprep.subr.bf16.mxu0 %v5804_v54 }
 0x184   : > { %5499 = vmatpush3.bf16.msra.mxu1 %v5820_v51 }
 0x185   : > { %5439 = vmatmul.mubr.bf16.vlgmr.msra.gmra.mxu0 %v6258_v55  ;;  %v5809_v55 = vld [vmem:[%s7245_s3 + $0x218] sm:$0xff]   ;;  %5500 = vmatprep.subr.bf16.mxu1 %v5822_v17 }
 0x186   : > { %5442 = vmatprep.mubr.bf16.mxu0 %v6306_v37  ;;  %5471 = vmatpush3.bf16.msra.mxu0 %v5804_v54  ;;  %v5810_v37 = vld [vmem:[%s7245_s3 + $0x210] sm:$0xff]  }
 0x187   : > { %5472 = vmatprep.subr.bf16.mxu0 %v5805_v60 }
 0x188   : > { %5501 = vmatpush3.bf16.msra.mxu1 %v5822_v17 }
 0x189   : > { %5502 = vmatprep.subr.bf16.mxu1 %v5824_v2 }
 0x18a   : > { %5473 = vmatpush3.bf16.msra.mxu0 %v5805_v60 }
 0x18b   : > { %5474 = vmatprep.subr.bf16.mxu0 %v5807_v18 }
 0x18c   : > { %5503 = vmatpush3.bf16.msra.mxu1 %v5824_v2 }
 0x18d   : > { %5443 = vmatmul.mubr.bf16.gmra.mxu0 %v4676_v41  ;;  %5504 = vmatprep.subr.bf16.mxu1 %v5826_v12 }
 0x18e   : > { %5475 = vmatpush3.bf16.msra.mxu0 %v5807_v18  ;;  %5486 = vmatprep.mubr.bf16.mxu0 %v6426_v40  ;;  %v5812_v40 = vld [vmem:[%s7245_s3 + $0x200] sm:$0xff]  }
 0x18f   : > { %5476 = vmatprep.subr.bf16.mxu0 %v5808_v16 }
 0x190   : > { %5505 = vmatpush3.bf16.msra.mxu1 %v5826_v12 }
 0x191   : > { %5506 = vmatprep.subr.bf16.mxu1 %v5829_v11 }
 0x192   : > { %5477 = vmatpush3.bf16.msra.mxu0 %v5808_v16 }
 0x193   : > { %5478 = vmatprep.subr.bf16.mxu0 %v5809_v55 }
 0x194   : > { %5507 = vmatpush3.bf16.msra.mxu1 %v5829_v11 }
 0x195   : > { %5508 = vmatprep.subr.bf16.mxu1 %v5832_v27 }
 0x196   : > { %5479 = vmatpush3.bf16.msra.mxu0 %v5809_v55 }
 0x197   : > { %5480 = vmatprep.subr.bf16.mxu0 %v5810_v37 }
 0x198   : > { %5509 = vmatpush3.bf16.msra.mxu1 %v5832_v27 }
 0x199   : > { %5542 = vmatprep.subr.bf16.mxu1 %v6688_v35 }
 0x19a   : > { %5481 = vmatpush3.bf16.msra.mxu0 %v5810_v37 }
 0x19b   : > { %5482 = vmatprep.subr.bf16.mxu0 %v5811_v21 }
 0x19e   : > { %5483 = vmatpush3.bf16.msra.mxu0 %v5811_v21 }
 0x19f   : > { %5484 = vmatprep.subr.bf16.mxu0 %v5812_v40 }
 0x1a2   : > { %5485 = vmatpush3.bf16.msra.mxu0 %v5812_v40 }
 0x1a3   : > { %5518 = vmatprep.subr.bf16.mxu0 %v5813_v25 }
 0x1a5   : > { %5487 = vmatmul.mubr.bf16.vlgmr.msra.gmra.mxu0 %v6435_v58 }
 0x1a6   : > { %5490 = vmatprep.mubr.bf16.mxu0 %v6459_v8  ;;  %5519 = vmatpush3.bf16.msra.mxu0 %v5813_v25  ;;  %v5814_v8 = vld [vmem:[%s7247_s5 + $0x30] sm:$0xff]  }
 0x1a7   : > { %5520 = vmatprep.subr.bf16.mxu0 %v5814_v8 }
 0x1aa   : > { %5521 = vmatpush3.bf16.msra.mxu0 %v5814_v8 }
 0x1ab   : > { %5522 = vmatprep.subr.bf16.mxu0 %v5815_v10 }
 0x1ad   : > { %5491 = vmatmul.mubr.bf16.gmra.mxu0 %v4727_v22 }
 0x1ae   : > { %5523 = vmatpush3.bf16.msra.mxu0 %v5815_v10 }
 0x1af   : > { %5524 = vmatprep.subr.bf16.mxu0 %v5817_v44 }
 0x1b2   : > { %5525 = vmatpush3.bf16.msra.mxu0 %v5817_v44 }
 0x1b3   : > { %5526 = vmatprep.subr.bf16.mxu0 %v5819_v49 }
 0x1b6   : > { %5527 = vmatpush3.bf16.msra.mxu0 %v5819_v49 }
 0x1b7   : > { %5528 = vmatprep.subr.bf16.mxu0 %v5821_v43 }
 0x1ba   : > { %5529 = vmatpush3.bf16.msra.mxu0 %v5821_v43 }
 0x1bb   : > { %5530 = vmatprep.subr.bf16.mxu0 %v5823_v20 }
 0x1be   : > { %5531 = vmatpush3.bf16.msra.mxu0 %v5823_v20 }
 0x1bf   : > { %5532 = vmatprep.subr.bf16.mxu0 %v5825_v46 }
 0x1c2   : > { %5533 = vmatpush3.bf16.msra.mxu0 %v5825_v46 }
 0x1c3   : > { %5566 = vmatprep.subr.bf16.mxu0 %v6676_v61  ;;  %v6717_v61 = vld [vmem:[#allocation3] sm:$0xf] }
 0x1c4   : > { %7276 = vst [vmem:[#allocation10_spill] sm:$0xff] %v6717_v61 }
 0x1da   : > { %v6604_v26 = vpop.f32.mrf.mxu1 }
 0x1dc   : > { %v6611_v32 = vpop.f32.mrf.mxu1 }
 0x1de   : > { %v6615_v36 = vpop.f32.mrf.mxu1 }
 0x1e0   : > { %v6625_v31 = vpop.f32.mrf.mxu1 }
 0x1e5   : > { %v6595_v30 = vpop.f32.mrf.mxu0 }
 0x1e6   : > { %v1485_v17 = vadd.f32 %v6604_v26, %v6595_v30 }
 0x1e7   : > { %v6597_v6 = vpop.f32.mrf.mxu0 }
 0x1e8   : > { %v6635_v23 = vpop.f32.mrf.mxu1  ;;  %v1477_v46 = vadd.f32 %v6611_v32, %v6597_v6 }
 0x1e9   : > { %v6599_v24 = vpop.f32.mrf.mxu0 }
 0x1ea   : > { %v6653_v50 = vpop.f32.mrf.mxu1  ;;  %v1488_v11 = vadd.f32 %v6615_v36, %v6599_v24  ;;  %v2848_v24 = vshll.u32 %v6717_v61, 16 }
 0x1eb   : > { %v6606_v58 = vpop.f32.mrf.mxu0 }
 0x1ec   : > { %v6663_v52 = vpop.f32.mrf.mxu1  ;;  %v1480_v30 = vadd.f32 %v6625_v31, %v6606_v58 }
 0x1ee   : > { %v6671_v13 = vpop.f32.mrf.mxu1 }
 0x1f1   : > { %v6613_v34 = vpop.f32.mrf.mxu0 }
 0x1f2   : > { %v1501_v26 = vadd.f32 %v6635_v23, %v6613_v34 }
 0x1f3   : > { %v6623_v59 = vpop.f32.mrf.mxu0 }
 0x1f4   : > { %v1493_v36 = vadd.f32 %v6653_v50, %v6623_v59 }
 0x1f5   : > { %v6630_v45 = vpop.f32.mrf.mxu0 }
 0x1f7   : > { %v6640_v62 = vpop.f32.mrf.mxu0 }
 0x1fb   : > { %v5368_v28 = vpop.f32.mrf.mxu1 }
 0x1fd   : > { %v1813_v48 = vpop.f32.mrf.mxu1 }
 0x1ff   : > { %v5369_v5 = vpop.f32.mrf.mxu1 }
 0x201   : > { %v1816_v53 = vpop.f32.mrf.mxu1 }
 0x203   : > { %v5372_v3 = vpop.f32.mrf.mxu1 }
 0x205   : > { %v6645_v42 = vpop.f32.mrf.mxu0  ;;  %v6691_v60 = vpop.f32.mrf.mxu1 }
 0x206   : > { %v1698_v12 = vadd.f32 %v6645_v42, %v1485_v17  ;;  %v2845_v17 = vshrl.u32 %v6717_v61, 16 }
 0x207   : > { %v6661_v9 = vpop.f32.mrf.mxu0  ;;  %v5373_v41 = vpop.f32.mrf.mxu1 }
 0x208   : > { %v1696_v27 = vadd.f32 %v6661_v9, %v1477_v46  ;;  %v1846_v33 = vadd.f32 %v5368_v28, %v1698_v12  ;;  %v1504_v9 = vadd.f32 %v6663_v52, %v6630_v45 }
 0x209   : > { %v5345_v56 = vpop.f32.mrf.mxu0  ;;  %v6693_v55 = vpop.f32.mrf.mxu1 }
 0x20a   : > { %v1699_v38 = vadd.f32 %v5345_v56, %v1488_v11  ;;  %v1844_v32 = vadd.f32 %v1813_v48, %v1696_v27  ;;  %v2847_v11 = vrot.slane %v2845_v17, 4  ;;  %v2850_v27 = vrot.slane %v2848_v24, 5 }
 0x20b   : > { %v1668_v47 = vpop.f32.mrf.mxu0 }
 0x20c   : > { %v1697_v56 = vadd.f32 %v1668_v47, %v1480_v30  ;;  %v1847_v31 = vadd.f32 %v5369_v5, %v1699_v38 }
 0x20d   : > { %v5348_v63 = vpop.f32.mrf.mxu0 }
 0x20e   : > { %v1702_v28 = vadd.f32 %v5348_v63, %v1501_v26  ;;  %v1845_v59 = vadd.f32 %v1816_v53, %v1697_v56 }
 0x20f   : > { %v1681_v0 = vpop.f32.mrf.mxu0 }
 0x210   : > { %v1700_v34 = vadd.f32 %v1681_v0, %v1493_v36  ;;  %v1850_v50 = vadd.f32 %v5372_v3, %v1702_v28 }
 0x211   : > { %v5349_v1 = vpop.f32.mrf.mxu0 }
 0x212   : > { %v1703_v23 = vadd.f32 %v5349_v1, %v1504_v9  ;;  %v1848_v38 = vadd.f32 %v6691_v60, %v1700_v34  ;;  %v2851_v1 = vor.u32 %v2850_v27, %v2847_v11 }
 0x213   : > { %v1684_v54 = vpop.f32.mrf.mxu0 }
 0x214   : > { %v1851_v5 = vadd.f32 %v5373_v41, %v1703_v23  ;;  %v6744_v30 = vrot.slane %v2851_v1, 4  ;;  %v2775_v1 = vld [vmem:[#allocation3 + $0x1c] sm:$0x1] }
 0x21b   : > { %v5416_v37 = vpop.f32.mrf.mxu1 }
 0x21d   : > { %v2126_v40 = vpop.f32.mrf.mxu1 }
 0x21f   : > { %v5417_v14 = vpop.f32.mrf.mxu1 }
 0x221   : > { %v6695_v22 = vpop.f32.mrf.mxu1 }
 0x223   : > { %v6697_v8 = vpop.f32.mrf.mxu1 }
 0x225   : > { %v5392_v4 = vpop.f32.mrf.mxu0  ;;  %v6701_v44 = vpop.f32.mrf.mxu1 }
 0x226   : > { %v2007_v6 = vadd.f32 %v5392_v4, %v1846_v33  ;;  %v1496_v33 = vadd.f32 %v6671_v13, %v6640_v62 }
 0x227   : > { %v1974_v18 = vpop.f32.mrf.mxu0  ;;  %v6703_v49 = vpop.f32.mrf.mxu1 }
 0x228   : > { %v2005_v58 = vadd.f32 %v1974_v18, %v1844_v32  ;;  %v2159_v12 = vadd.f32 %v5416_v37, %v2007_v6  ;;  %v1701_v61 = vadd.f32 %v1684_v54, %v1496_v33  ;;  %v6732_v18 = vld [vmem:[#allocation3 + $0x4] sm:$0x1] }
 0x229   : > { %v5393_v16 = vpop.f32.mrf.mxu0  ;;  %v6705_v43 = vpop.f32.mrf.mxu1 }
 0x22a   : > { %v2008_v48 = vadd.f32 %v5393_v16, %v1847_v31  ;;  %v2157_v52 = vadd.f32 %v2126_v40, %v2005_v58  ;;  %v2854_v16 = vshll.u32 %v6732_v18, 16  ;;  %v1849_v53 = vadd.f32 %v6693_v55, %v1701_v61  ;;  %v5888_v58 = vld [vmem:[%s7247_s5 + $0x228] sm:$0xff]  }
 0x22b   : > { %v1977_v21 = vpop.f32.mrf.mxu0 }
 0x22c   : > { %v2006_v47 = vadd.f32 %v1977_v21, %v1845_v59  ;;  %v2160_v0 = vadd.f32 %v5417_v14, %v2008_v48  ;;  %v6742_v14 = vld [vmem:[%s7246_s4] ss:$0 sm:$0xff]  ;;  %v6746_v61 = vrot.slane %v2854_v16, 5 }
 0x22d   : > { %v5396_v7 = vpop.f32.mrf.mxu0 }
 0x22e   : > { %v2011_v63 = vadd.f32 %v5396_v7, %v1850_v50  ;;  %v2158_v60 = vadd.f32 %v6695_v22, %v2006_v47 }
 0x22f   : > { %v1990_v19 = vpop.f32.mrf.mxu0 }
 0x230   : > { %v2009_v37 = vadd.f32 %v1990_v19, %v1848_v38  ;;  %v2163_v41 = vadd.f32 %v6697_v8, %v2011_v63  ;;  %v2772_v38 = vld [vmem:[#allocation3 + $0x18] sm:$0xf] }
 0x231   : > { %v5397_v25 = vpop.f32.mrf.mxu0 }
 0x232   : > { %v2012_v54 = vadd.f32 %v5397_v25, %v1851_v5  ;;  %v2161_v22 = vadd.f32 %v6701_v44, %v2009_v37 }
 0x233   : > { %v6699_v10 = vpop.f32.mrf.mxu0 }
 0x234   : > { %v2010_v21 = vadd.f32 %v6699_v10, %v1849_v53  ;;  %v2164_v8 = vadd.f32 %v6703_v49, %v2012_v54 }
 0x23b   : > { %v5464_v20 = vpop.f32.mrf.mxu1 }
 0x23d   : > { %v2423_v57 = vpop.f32.mrf.mxu1 }
 0x23f   : > { %v5465_v42 = vpop.f32.mrf.mxu1 }
 0x241   : > { %v2426_v4 = vpop.f32.mrf.mxu1 }
 0x243   : > { %v5468_v62 = vpop.f32.mrf.mxu1 }
 0x245   : > { %v5440_v39 = vpop.f32.mrf.mxu0 }
 0x246   : > { %v2301_v45 = vadd.f32 %v5440_v39, %v2159_v12 }
 0x247   : > { %v2268_v15 = vpop.f32.mrf.mxu0 }
 0x248   : > { %v2299_v13 = vadd.f32 %v2268_v15, %v2157_v52  ;;  %v2456_v40 = vadd.f32 %v5464_v20, %v2301_v45  ;;  %v2439_v15 = vpop.f32.mrf.mxu1 }
 0x249   : > { %v5441_v51 = vpop.f32.mrf.mxu0 }
 0x24a   : > { %v2302_v39 = vadd.f32 %v5441_v51, %v2160_v0  ;;  %v2454_v25 = vadd.f32 %v2423_v57, %v2299_v13  ;;  %v2162_v57 = vadd.f32 %v6705_v43, %v2010_v21  ;;  %v5469_v36 = vpop.f32.mrf.mxu1 }
 0x24b   : > { %v6709_v2 = vpop.f32.mrf.mxu0 }
 0x24c   : > { %v2300_v55 = vadd.f32 %v6709_v2, %v2158_v60  ;;  %v2457_v6 = vadd.f32 %v5465_v42, %v2302_v39  ;;  %v2857_v42 = vsel %vm6000_vm3, %v6744_v30, %v6746_v61  ;;  %v2442_v12 = vpop.f32.mrf.mxu1 }
 0x24d   : > { %v5444_v35 = vpop.f32.mrf.mxu0 }
 0x24e   : > { %v2305_v10 = vadd.f32 %v5444_v35, %v2163_v41  ;;  %v2455_v44 = vadd.f32 %v2426_v4, %v2300_v55  ;;  %v2760_v41 = vld [vmem:[#allocation3 + $0x8] sm:$0xf] }
 0x24f   : > { %v2284_v46 = vpop.f32.mrf.mxu0 }
 0x250   : > { %v2303_v32 = vadd.f32 %v2284_v46, %v2161_v22  ;;  %v2460_v49 = vadd.f32 %v5468_v62, %v2305_v10 }
 0x251   : > { %v5445_v29 = vpop.f32.mrf.mxu0 }
 0x252   : > { %v2306_v17 = vadd.f32 %v5445_v29, %v2164_v8  ;;  %v2458_v23 = vadd.f32 %v2439_v15, %v2303_v32 }
 0x253   : > { %v2287_v3 = vpop.f32.mrf.mxu0 }
 0x254   : > { %v2304_v56 = vadd.f32 %v2287_v3, %v2162_v57  ;;  %v2461_v48 = vadd.f32 %v5469_v36, %v2306_v17 }
 0x256   : > { %v6760_v47 = vadd.f32 %v2442_v12, %v2304_v56 }
 0x265   : > { %v5488_v7 = vpop.f32.mrf.mxu0 }
 0x266   : > { %v2602_v19 = vadd.f32 %v5488_v7, %v2456_v40  ;;  %v2763_v7 = vld [vmem:[#allocation3 + $0xc] sm:$0x1] }
 0x267   : > { %v2569_v51 = vpop.f32.mrf.mxu0 }
 0x268   : > { %v2617_v20 = vadd.f32 %v6742_v14, %v2602_v19  ;;  %v2600_v26 = vadd.f32 %v2569_v51, %v2454_v25  ;;  %v5834_v51 = vld [vmem:[%s7247_s5 + $0xe8] sm:$0xff]  }
 0x269   : > { %v5489_v24 = vpop.f32.mrf.mxu0 }
 0x26a   : > { %vm2625_vm6 = vcmp.ge.f32.partialorder %v2617_v20, 0.0  ;;  %v2633_v9 = vmul.f32 0.1, %v2617_v20  ;;  %v2615_v2 = vadd.f32 %v6742_v14, %v2600_v26  ;;  %v2603_v35 = vadd.f32 %v5489_v24, %v2457_v6 }
 0x26b   : > { %v2572_v28 = vpop.f32.mrf.mxu0 }
 0x26c   : > { %v2641_v46 = vsel %vm2625_vm6, %v2617_v20, %v2633_v9  ;;  %vm2623_vm7 = vcmp.ge.f32.partialorder %v2615_v2, 0.0  ;;  %v2631_v29 = vmul.f32 0.1, %v2615_v2  ;;  %v2618_v43 = vadd.f32 %v6742_v14, %v2603_v35  ;;  %v2778_v9 = vld [vmem:[#allocation3 + $0x20] sm:$0xf] }
 0x26d   : > { %v4996_v31 = vpack.c.bf16 %v2641_v46, %v2641_v46  ;;  %v2601_v33 = vadd.f32 %v2572_v28, %v2455_v44  ;;  %v5492_v34 = vpop.f32.mrf.mxu0 }
 0x26e   : > { %v2639_v11 = vsel %vm2623_vm7, %v2615_v2, %v2631_v29  ;;  %vm2626_vm8 = vcmp.ge.f32.partialorder %v2618_v43, 0.0  ;;  %v2634_v4 = vmul.f32 0.1, %v2618_v43  ;;  %v2606_v27 = vadd.f32 %v5492_v34, %v2460_v49  ;;  %v2781_v2 = vld [vmem:[#allocation3 + $0x24] sm:$0x1] }
 0x26f   : > { %v2696_v59 = vshrl.u32 %v4996_v31, 16  ;;  %v4994_v50 = vpack.c.bf16 %v2639_v11, %v2639_v11  ;;  %v2616_v45 = vadd.f32 %v6742_v14, %v2601_v33  ;;  %v2585_v52 = vpop.f32.mrf.mxu0  ;;  %v2699_v63 = vshll.u32 %v4996_v31, 16  ;;  %v2766_v11 = vld [vmem:[#allocation3 + $0x10] sm:$0xf] }
 0x270   : > { %v2642_v5 = vsel %vm2626_vm8, %v2618_v43, %v2634_v4  ;;  %v2621_v62 = vadd.f32 %v6742_v14, %v2606_v27  ;;  %v2604_v13 = vadd.f32 %v2585_v52, %v2458_v23  ;;  %v2769_v4 = vld [vmem:[#allocation3 + $0x14] sm:$0x1] }
 0x271   : > { %v2698_v0 = vrot.slane %v2696_v59, 7  ;;  %v2680_v16 = vshrl.u32 %v4994_v50, 16  ;;  %v2683_v37 = vshll.u32 %v4994_v50, 16  ;;  %v4997_v54 = vpack.c.bf16 %v2642_v5, %v2642_v5  ;;  %v5493_v10 = vpop.f32.mrf.mxu0  ;;  %v2796_v50 = vld [vmem:[#allocation3 + $0x38] sm:$0xf] }
 0x272   : > { %vm2624_vm9 = vcmp.ge.f32.partialorder %v2616_v45, 0.0  ;;  %v2632_v53 = vmul.f32 0.1, %v2616_v45  ;;  %vm2629_vm10 = vcmp.ge.f32.partialorder %v2621_v62, 0.0  ;;  %v2637_v3 = vmul.f32 0.1, %v2621_v62 }
 0x273   : > { %v2701_v39 = vor.u32 %v2699_v63, %v2698_v0  ;;  %v2702_v40 = vrot.slane %v2698_v0, 4  ;;  %v2682_v21 = vrot.slane %v2680_v16, 7  ;;  %v2704_v60 = vshrl.u32 %v4997_v54, 16  ;;  %v2588_v29 = vpop.f32.mrf.mxu0  ;;  %v2799_v5 = vld [vmem:[#allocation3 + $0x3c] sm:$0x1] }
 0x274   : > { %v2707_v15 = vshll.u32 %v4997_v54, 16  ;;  %v2640_v19 = vsel %vm2624_vm9, %v2616_v45, %v2632_v53  ;;  %v2645_v25 = vsel %vm2629_vm10, %v2621_v62, %v2637_v3  ;;  %v2619_v55 = vadd.f32 %v6742_v14, %v2604_v13  ;;  %v2784_v16 = vld [vmem:[#allocation3 + $0x28] sm:$0xf] }
 0x275   : > { %v2773_v8 = vsel %vm6157_vm11, %v2701_v39, %v2772_v38  ;;  %v2776_v20 = vsel %vm6163_vm12, %v2702_v40, %v2775_v1  ;;  %v2685_v26 = vor.u32 %v2683_v37, %v2682_v21  ;;  %v2686_v6 = vrot.slane %v2682_v21, 4  ;;  %v2787_v40 = vld [vmem:[#allocation3 + $0x2c] sm:$0x1] }
 0x276   : > { %2774 = vst [vmem:[#allocation3 + $0x18] sm:$0xf] %v2773_v8  ;;  %2777 = vst [vmem:[#allocation3 + $0x1c] sm:$0x1] %v2776_v20  ;;  %v2706_v32 = vrot.slane %v2704_v60, 7  ;;  %v4995_v17 = vpack.c.bf16 %v2640_v19, %v2640_v19  ;;  %v5000_v57 = vpack.c.bf16 %v2645_v25, %v2645_v25  ;;  %vm2627_vm13 = vcmp.ge.f32.partialorder %v2619_v55, 0.0 }
 0x277   : > { %v2761_v24 = vsel %vm6157_vm11, %v2685_v26, %v2760_v41  ;;  %v2764_v36 = vsel %vm6163_vm12, %v2686_v6, %v2763_v7  ;;  %v2635_v35 = vmul.f32 0.1, %v2619_v55  ;;  %v2607_v56 = vadd.f32 %v5493_v10, %v2461_v48  ;;  %v7280_v20 = vld [vmem:[#allocation10_spill] sm:$0xff] }
 0x278   : > { %2762 = vst [vmem:[#allocation3 + $0x8] sm:$0xf] %v2761_v24  ;;  %2765 = vst [vmem:[#allocation3 + $0xc] sm:$0x1] %v2764_v36  ;;  %v2709_v44 = vor.u32 %v2707_v15, %v2706_v32  ;;  %v2710_v28 = vrot.slane %v2706_v32, 4  ;;  %v2688_v49 = vshrl.u32 %v4995_v17, 16  ;;  %v2605_v52 = vadd.f32 %v2588_v29, %v6760_v47 }
 0x279   : > { %v2691_v46 = vshll.u32 %v4995_v17, 16  ;;  %v2728_v43 = vshrl.u32 %v5000_v57, 16  ;;  %v2731_v31 = vshll.u32 %v5000_v57, 16  ;;  %v2643_v33 = vsel %vm2627_vm13, %v2619_v55, %v2635_v35  ;;  %v2802_v36 = vld [vmem:[#allocation3 + $0x40] sm:$0xf] }
 0x27a   : > { %v2622_v34 = vadd.f32 %v6742_v14, %v2607_v56  ;;  %v2779_v23 = vsel %vm6157_vm11, %v2709_v44, %v2778_v9  ;;  %v2782_v12 = vsel %vm6163_vm12, %v2710_v28, %v2781_v2  ;;  %v2690_v48 = vrot.slane %v2688_v49, 7  ;;  %v2805_v9 = vld [vmem:[#allocation3 + $0x44] sm:$0x1] }
 0x27b   : > { %v4998_v27 = vpack.c.bf16 %v2643_v33, %v2643_v33  ;;  %2780 = vst [vmem:[#allocation3 + $0x20] sm:$0xf] %v2779_v23  ;;  %2783 = vst [vmem:[#allocation3 + $0x24] sm:$0x1] %v2782_v12  ;;  %v2730_v59 = vrot.slane %v2728_v43, 7  ;;  %v2620_v54 = vadd.f32 %v6742_v14, %v2605_v52 }
 0x27c   : > { %vm2630_vm14 = vcmp.ge.f32.partialorder %v2622_v34, 0.0  ;;  %v2638_v45 = vmul.f32 0.1, %v2622_v34  ;;  %v2693_v63 = vor.u32 %v2691_v46, %v2690_v48  ;;  %v2694_v38 = vrot.slane %v2690_v48, 4  ;;  %v2790_v33 = vld [vmem:[#allocation3 + $0x30] sm:$0xf] }
 0x27d   : > { %v2712_v62 = vshrl.u32 %v4998_v27, 16  ;;  %v2715_v13 = vshll.u32 %v4998_v27, 16  ;;  %v2733_v0 = vor.u32 %v2731_v31, %v2730_v59  ;;  %v2734_v1 = vrot.slane %v2730_v59, 4  ;;  %v6784_v21 = vld [vmem:[#allocation3 + $0x18] sm:$0xf] }
 0x27e   : > { %v2646_v37 = vsel %vm2630_vm14, %v2622_v34, %v2638_v45  ;;  %v2767_v53 = vsel %vm6157_vm11, %v2693_v63, %v2766_v11  ;;  %v2770_v3 = vsel %vm6163_vm12, %v2694_v38, %v2769_v4  ;;  %vm2628_vm15 = vcmp.ge.f32.partialorder %v2620_v54, 0.0  ;;  %v6803_v28 = vld [vmem:[#allocation3 + $0x1c] sm:$0x1]  ;;  %v2793_v52 = vld [vmem:[#allocation3 + $0x34] sm:$0x1]  ;;  %v5831_v38 = vld [vmem:[%s7247_s5 + $0xf0] sm:$0xff]  }
 0x27f   : > { %v2714_v39 = vrot.slane %v2712_v62, 7  ;;  %v5001_v47 = vpack.c.bf16 %v2646_v37, %v2646_v37  ;;  %2768 = vst [vmem:[#allocation3 + $0x10] sm:$0xf] %v2767_v53  ;;  %2771 = vst [vmem:[#allocation3 + $0x14] sm:$0x1] %v2770_v3  ;;  %v2797_v60 = vsel %vm6157_vm11, %v2733_v0, %v2796_v50  ;;  %v2800_v41 = vsel %vm6163_vm12, %v2734_v1, %v2799_v5 }
 0x280   : > { %v2636_v14 = vmul.f32 0.1, %v2620_v54  ;;  %v6790_v7 = vld [vmem:[#allocation3 + $0x8] sm:$0xf]  ;;  %2798 = vst [vmem:[#allocation3 + $0x38] sm:$0xf] %v2797_v60 }
 0x281   : > { %2801 = vst [vmem:[#allocation3 + $0x3c] sm:$0x1] %v2800_v41  ;;  %v2717_v15 = vor.u32 %v2715_v13, %v2714_v39  ;;  %v2718_v19 = vrot.slane %v2714_v39, 4  ;;  %v2736_v25 = vshrl.u32 %v5001_v47, 16  ;;  %v2739_v55 = vshll.u32 %v5001_v47, 16  ;;  %v7281_v41 = vld [vmem:[#allocation8_spill] sm:$0xff] }
 0x282   : > { %v6792_v10 = vld [vmem:[#allocation3 + $0xc] sm:$0x1]  ;;  %v2644_v8 = vsel %vm2628_vm15, %v2620_v54, %v2636_v14  ;;  %v4773_v26 = vcombine.low %v7280_v20, %v6790_v7  ;;  %v2859_v6 = vshrl.u32 %v6790_v7, 16  ;;  %v2862_v32 = vshll.u32 %v6790_v7, 16  ;;  %v6827_v54 = vld [vmem:[#allocation3 + $0x20] sm:$0xf] }
 0x283   : > { %v2785_v17 = vsel %vm6157_vm11, %v2717_v15, %v2784_v16  ;;  %v2788_v57 = vsel %vm6163_vm12, %v2718_v19, %v2787_v40  ;;  %v2738_v24 = vrot.slane %v2736_v25, 7  ;;  %v4999_v2 = vpack.c.bf16 %v2644_v8, %v2644_v8  ;;  %v6833_v40 = vld [vmem:[#allocation3 + $0x24] sm:$0x1] }
 0x284   : > { %2786 = vst [vmem:[#allocation3 + $0x28] sm:$0xf] %v2785_v17  ;;  %2789 = vst [vmem:[#allocation3 + $0x2c] sm:$0x1] %v2788_v57  ;;  %5534 = vmatprep.mubr.bf16.mxu0 %v4773_v26  ;;  %v2861_v35 = vrot.slane %v2859_v6, 4  ;;  %v2864_v56 = vrot.slane %v2862_v32, 5 }
 0x285   : > { %v2868_v44 = vshll.u32 %v6792_v10, 16  ;;  %v2887_v49 = vshrl.u32 %v6784_v21, 16  ;;  %v2741_v46 = vor.u32 %v2739_v55, %v2738_v24  ;;  %v2742_v29 = vrot.slane %v2738_v24, 4 }
 0x286   : > { %v2720_v43 = vshrl.u32 %v4999_v2, 16  ;;  %v2723_v31 = vshll.u32 %v4999_v2, 16  ;;  %v2865_v34 = vor.u32 %v2864_v56, %v2861_v35  ;;  %v2890_v48 = vshll.u32 %v6784_v21, 16  ;;  %v6811_v59 = vld [vmem:[#allocation3 + $0x10] sm:$0xf] }
 0x287   : > { %v2870_v23 = vrot.slane %v2868_v44, 5  ;;  %v2889_v12 = vrot.slane %v2887_v49, 4  ;;  %v2803_v11 = vsel %vm6157_vm11, %v2741_v46, %v2802_v36  ;;  %v2806_v4 = vsel %vm6163_vm12, %v2742_v29, %v2805_v9  ;;  %v6813_v50 = vld [vmem:[#allocation3 + $0x14] sm:$0x1]  ;;  %v6862_v32 = vld [vmem:[#allocation3 + $0x38] sm:$0xf] }
 0x288   : > { %v2722_v27 = vrot.slane %v2720_v43, 7  ;;  %v2896_v45 = vshll.u32 %v6803_v28, 16  ;;  %2804 = vst [vmem:[#allocation3 + $0x40] sm:$0xf] %v2803_v11  ;;  %2807 = vst [vmem:[#allocation3 + $0x44] sm:$0x1] %v2806_v4  ;;  %v6818_v63 = vcombine.low %v6811_v59, %v6784_v21 }
 0x289   : > { %v2866_v5 = vrot.slane %v2865_v34, 4  ;;  %v2873_v62 = vshrl.u32 %v6811_v59, 16  ;;  %v2876_v13 = vshll.u32 %v6811_v59, 16  ;;  %v2882_v16 = vshll.u32 %v6813_v50, 16  ;;  %v5838_v49 = vld [vmem:[%s7247_s5 + $0xe0] sm:$0xff]  }
 0x28a   : > { %v2725_v0 = vor.u32 %v2723_v31, %v2722_v27  ;;  %v2726_v1 = vrot.slane %v2722_v27, 4  ;;  %v2892_v37 = vrot.slane %v2890_v48, 5  ;;  %5535 = vmatmul.mubr.bf16.vlgmr.msra.gmra.mxu0 %v6818_v63  ;;  %v2898_v19 = vrot.slane %v2896_v45, 5  ;;  %v5839_v31 = vld [vmem:[%s7247_s5 + $0xb0] sm:$0xff]   ;;  %v6887_v4 = vld [vmem:[#allocation3 + $0x3c] sm:$0x1] }
 0x28b   : > { %v6831_v53 = vsel %vm6000_vm3, %v2866_v5, %v2870_v23  ;;  %v2875_v3 = vrot.slane %v2873_v62, 4  ;;  %v2878_v39 = vrot.slane %v2876_v13, 5  ;;  %5567 = vmatpush3.bf16.msra.mxu0 %v7281_v41  ;;  %v6840_v14 = vld [vmem:[#allocation3 + $0x28] sm:$0xf]  ;;  %v6848_v25 = vld [vmem:[#allocation3 + $0x2c] sm:$0x1] }
 0x28c   : > { %v2791_v47 = vsel %vm6157_vm11, %v2725_v0, %v2790_v33  ;;  %v2794_v60 = vsel %vm6163_vm12, %v2726_v1, %v2793_v52  ;;  %v4761_v15 = vcombine.low %v2857_v42, %v6831_v53  ;;  %5568 = vmatprep.subr.bf16.mxu0 %v5831_v38  ;;  %v6852_v22 = vcombine.low %v6827_v54, %v6840_v14  ;;  %v7282_v62 = vld [vmem:[#allocation9_spill] sm:$0xff] }
 0x28d   : > { %2792 = vst [vmem:[#allocation3 + $0x30] sm:$0xf] %v2791_v47  ;;  %2795 = vst [vmem:[#allocation3 + $0x34] sm:$0x1] %v2794_v60  ;;  %v2879_v55 = vor.u32 %v2878_v39, %v2875_v3  ;;  %v2884_v8 = vrot.slane %v2882_v16, 5  ;;  %v2893_v26 = vor.u32 %v2892_v37, %v2889_v12  ;;  %v2901_v30 = vshrl.u32 %v6827_v54, 16 }
 0x28e   : > { %5510 = vmatprep.mubr.bf16.mxu1 %v4761_v15  ;;  %v2904_v61 = vshll.u32 %v6827_v54, 16  ;;  %v2910_v42 = vshll.u32 %v6833_v40, 16  ;;  %v2915_v6 = vshrl.u32 %v6840_v14, 16  ;;  %5538 = vmatprep.mubr.bf16.mxu0 %v6852_v22  ;;  %v2918_v24 = vshll.u32 %v6840_v14, 16  ;;  %v5841_v3 = vld [vmem:[%s7247_s5 + $0xa8] sm:$0xff]  }
 0x28f   : > { %v2880_v17 = vrot.slane %v2879_v55, 4  ;;  %v2894_v57 = vrot.slane %v2893_v26, 4  ;;  %v2924_v36 = vshll.u32 %v6848_v25, 16  ;;  %5569 = vmatpush3.bf16.msra.mxu0 %v5831_v38  ;;  %v2903_v9 = vrot.slane %v2901_v30, 4 }
 0x290   : > { %v2906_v2 = vrot.slane %v2904_v61, 5  ;;  %v2917_v35 = vrot.slane %v2915_v6, 4  ;;  %5570 = vmatprep.subr.bf16.mxu0 %v5834_v51  ;;  %v2920_v46 = vrot.slane %v2918_v24, 5  ;;  %v4785_v29 = vrot.slane %v7280_v20, 9  ;;  %v5842_v61 = vld [vmem:[%s7247_s5 + $0xd0] sm:$0xff]   ;;  %v5843_v6 = vld [vmem:[%s7247_s5 + $0xa0] sm:$0xff]  }
 0x291   : > { %v6868_v56 = vsel %vm6000_vm3, %v2880_v17, %v2884_v8  ;;  %v6872_v44 = vsel %vm6000_vm3, %v2894_v57, %v2898_v19  ;;  %v2943_v34 = vshrl.u32 %v6862_v32, 16  ;;  %v2946_v23 = vshll.u32 %v6862_v32, 16 }
 0x292   : > { %v6880_v43 = vcombine.low %v6868_v56, %v6872_v44  ;;  %v2907_v33 = vor.u32 %v2906_v2, %v2903_v9  ;;  %v2912_v12 = vrot.slane %v2910_v42, 5  ;;  %v2921_v48 = vor.u32 %v2920_v46, %v2917_v35  ;;  %v5845_v46 = vld [vmem:[%s7247_s5 + $0x98] sm:$0xff]  }
 0x293   : > { %v2926_v11 = vrot.slane %v2924_v36, 5  ;;  %v3249_v20 = vrot.slane %v6732_v18, 5  ;;  %5571 = vmatpush3.bf16.msra.mxu0 %v5834_v51  ;;  %v2945_v38 = vrot.slane %v2943_v34, 4  ;;  %v5840_v18 = vld [vmem:[%s7247_s5 + $0xd8] sm:$0xff]   ;;  %v4837_v16 = vcombine.low %v6790_v7, %v6811_v59 }
 0x294   : > { %v6890_v27 = vld [vmem:[#allocation3 + $0x30] sm:$0xf]  ;;  %5511 = vmatmul.mubr.bf16.vlgmr.msra.gmra.mxu1 %v6880_v43  ;;  %v2908_v45 = vrot.slane %v2907_v33, 4  ;;  %v6893_v52 = vld [vmem:[#allocation3 + $0x34] sm:$0x1]  ;;  %5572 = vmatprep.subr.bf16.mxu0 %v5838_v49  ;;  %v2922_v13 = vrot.slane %v2921_v48, 4 }
 0x295   : > { %v6897_v5 = vcombine.low %v6890_v27, %v6862_v32  ;;  %5543 = vmatpush3.bf16.msra.mxu1 %v7282_v62  ;;  %v2929_v0 = vshrl.u32 %v6890_v27, 16  ;;  %v2932_v1 = vshll.u32 %v6890_v27, 16  ;;  %v2948_v39 = vrot.slane %v2946_v23, 5  ;;  %v5847_v33 = vld [vmem:[%s7247_s5 + $0x90] sm:$0xff]   ;;  %v5849_v34 = vld [vmem:[%s7247_s5 + $0x178] sm:$0xff]   ;;  %v5850_v23 = vld [vmem:[%s7247_s5 + $0x88] sm:$0xff]  }
 0x296   : > { %5544 = vmatprep.subr.bf16.mxu1 %v5839_v31  ;;  %v6909_v37 = vsel %vm6000_vm3, %v2908_v45, %v2912_v12  ;;  %v2952_v47 = vshll.u32 %v6887_v4, 16  ;;  %v6918_v60 = vsel %vm6000_vm3, %v2922_v13, %v2926_v11  ;;  %v2938_v19 = vshll.u32 %v6893_v52, 16  ;;  %v5852_v48 = vld [vmem:[%s7247_s5 + $0x170] sm:$0xff]  }
 0x297   : > { %5539 = vmatmul.mubr.bf16.gmra.mxu0 %v6897_v5  ;;  %v2931_v41 = vrot.slane %v2929_v0, 4  ;;  %v2934_v15 = vrot.slane %v2932_v1, 5  ;;  %v6923_v51 = vcombine.low %v6909_v37, %v6918_v60  ;;  %v2949_v55 = vor.u32 %v2948_v39, %v2945_v38  ;;  %v5857_v39 = vld [vmem:[%s7247_s5 + $0x160] sm:$0xff]  }
 0x298   : > { %5582 = vmatprep.mubr.bf16.mxu0 %v4837_v16  ;;  %5573 = vmatpush3.bf16.msra.mxu0 %v5838_v49  ;;  %v4786_v8 = vrot.slane %v6790_v7, 9  ;;  %v3253_v26 = vrot.slane %v6792_v10, 5  ;;  %v2940_v57 = vrot.slane %v2938_v19, 5  ;;  %v2954_v7 = vrot.slane %v2952_v47, 5  ;;  %v5844_v49 = vld [vmem:[%s7247_s5 + $0xc8] sm:$0xff]  }
 0x299   : > { %5545 = vmatpush3.bf16.msra.mxu1 %v5839_v31  ;;  %5574 = vmatprep.subr.bf16.mxu0 %v5840_v18  ;;  %v2935_v30 = vor.u32 %v2934_v15, %v2931_v41  ;;  %v2950_v42 = vrot.slane %v2949_v55, 4  ;;  %v3250_v24 = vsel %vm6345_vm5, %v4785_v29, %v3249_v20  ;;  %v5846_v31 = vld [vmem:[%s7247_s5 + $0xc0] sm:$0xff]   ;;  %v4838_v12 = vcombine.low %v6784_v21, %v6827_v54  ;;  %v5858_v15 = vld [vmem:[%s7247_s5 + $0x130] sm:$0xff]  }
 0x29a   : > { %5514 = vmatprep.mubr.bf16.mxu1 %v6923_v51  ;;  %5546 = vmatprep.subr.bf16.mxu1 %v5841_v3  ;;  %v6938_v36 = vsel %vm6345_vm5, %v4786_v8, %v3253_v26  ;;  %v4839_v11 = vcombine.low %v6840_v14, %v6890_v27  ;;  %v5853_v20 = vld [vmem:[%s7247_s5 + $0x80] sm:$0xff]   ;;  %v4787_v45 = vrot.slane %v6811_v59, 9  ;;  %v3257_v38 = vrot.slane %v6813_v50, 5  ;;  %v6991_v59 = vld [vmem:[#allocation3 + $0x40] sm:$0xf]  ;;  %v5856_v50 = vld [vmem:[%s7247_s5 + $0x138] sm:$0xff]  }
 0x29b   : > { %v2936_v17 = vrot.slane %v2935_v30, 4  ;;  %v6946_v2 = vsel %vm6000_vm3, %v2950_v42, %v2954_v7  ;;  %v4809_v29 = vcombine.low %v3250_v24, %v6938_v36  ;;  %v4790_v62 = vrot.slane %v6840_v14, 9  ;;  %v5859_v8 = vld [vmem:[%s7247_s5 + $0x158] sm:$0xff]   ;;  %v5868_v24 = vld [vmem:[%s7247_s5 + $0x108] sm:$0xff]  }
 0x29c   : > { %5575 = vmatpush3.bf16.msra.mxu0 %v5840_v18  ;;  %v3269_v13 = vrot.slane %v6848_v25, 5  ;;  %v5855_v18 = vld [vmem:[%s7247_s5 + $0x168] sm:$0xff]   ;;  %v4788_v0 = vrot.slane %v6784_v21, 9  ;;  %v3261_v1 = vrot.slane %v6803_v28, 5  ;;  %v4789_v14 = vrot.slane %v6827_v54, 9  ;;  %v5867_v7 = vld [vmem:[%s7247_s5 + $0x1f8] sm:$0xff]  }
 0x29d   : > { %v6942_v9 = vsel %vm6000_vm3, %v2936_v17, %v2940_v57  ;;  %5547 = vmatpush3.bf16.msra.mxu1 %v5841_v3  ;;  %5576 = vmatprep.subr.bf16.mxu0 %v5842_v61  ;;  %v3265_v25 = vrot.slane %v6833_v40, 5  ;;  %v3258_v16 = vsel %vm6345_vm5, %v4787_v45, %v3257_v38  ;;  %v4840_v28 = vcombine.low %v6862_v32, %v6991_v59  ;;  %v5863_v17 = vld [vmem:[%s7247_s5 + $0x148] sm:$0xff]   ;;  %v5864_v57 = vld [vmem:[%s7247_s5 + $0x118] sm:$0xff]  }
 0x29e   : > { %v6950_v35 = vcombine.low %v6942_v9, %v6946_v2  ;;  %5548 = vmatprep.subr.bf16.mxu1 %v5843_v6  ;;  %v7002_v21 = vsel %vm6345_vm5, %v4790_v62, %v3269_v13  ;;  %v7008_v3 = vsel %vm6345_vm5, %v4788_v0, %v3261_v1  ;;  %v4894_v47 = vcombine.low %v6938_v36, %v3258_v16  ;;  %v2825_v36 = vld [vmem:[#allocation3 + $0x44] sm:$0x1]  ;;  %v5872_v38 = vld [vmem:[%s7247_s5 + $0x1b8] sm:$0xff]  }
 0x29f   : > { %v7011_v54 = vcombine.low %v3258_v16, %v7008_v3  ;;  %v3266_v40 = vsel %vm6345_vm5, %v4789_v14, %v3265_v25  ;;  %v4791_v19 = vrot.slane %v6890_v27, 9  ;;  %v3273_v55 = vrot.slane %v6893_v52, 5  ;;  %v5860_v52 = vld [vmem:[%s7247_s5 + $0x128] sm:$0xff]   ;;  %v5875_v16 = vld [vmem:[%s7247_s5 + $0x1d8] sm:$0xff]  }
 0x2a0   : > { %5515 = vmatmul.mubr.bf16.gmra.mxu1 %v6950_v35  ;;  %5577 = vmatpush3.bf16.msra.mxu0 %v5842_v61  ;;  %v7020_v41 = vcombine.low %v3266_v40, %v7002_v21  ;;  %v4792_v26 = vrot.slane %v6862_v32, 9  ;;  %v3277_v30 = vrot.slane %v6887_v4, 5  ;;  %v5861_v32 = vld [vmem:[%s7247_s5 + $0x150] sm:$0xff]   ;;  %v4865_v42 = vcombine.low %v6831_v53, %v6868_v56  ;;  %v5865_v53 = vld [vmem:[%s7247_s5 + $0x140] sm:$0xff]  }
 0x2a1   : > { %5558 = vmatprep.mubr.bf16.mxu1 %v4809_v29  ;;  %5549 = vmatpush3.bf16.msra.mxu1 %v5843_v6  ;;  %v3274_v27 = vsel %vm6345_vm5, %v4791_v19, %v3273_v55  ;;  %v5862_v6 = vld [vmem:[%s7247_s5 + $0x120] sm:$0xff]   ;;  %v5866_v56 = vld [vmem:[%s7247_s5 + $0x110] sm:$0xff]   ;;  %v4895_v29 = vcombine.low %v7008_v3, %v3266_v40  ;;  %v3591_v0 = vshll.u32 %v2825_v36, 16  ;;  %v4866_v1 = vcombine.low %v6872_v44, %v6909_v37  ;;  %v5876_v37 = vld [vmem:[%s7247_s5 + $0x1a8] sm:$0xff]  }
 0x2a2   : > { %5578 = vmatprep.subr.bf16.mxu0 %v5844_v49  ;;  %5550 = vmatprep.subr.bf16.mxu1 %v5845_v46  ;;  %v3278_v61 = vsel %vm6345_vm5, %v4792_v26, %v3277_v30  ;;  %v4867_v14 = vcombine.low %v6918_v60, %v6942_v9  ;;  %v5877_v60 = vld [vmem:[%s7247_s5 + $0x1d0] sm:$0xff]   ;;  %v5879_v3 = vld [vmem:[%s7247_s5 + $0x1c8] sm:$0xff]   ;;  %v2827_v55 = vld [vmem:[#allocation3 + $0x4c] sm:$0x1] }
 0x2a3   : > { %v7044_v4 = vcombine.low %v3274_v27, %v3278_v61  ;;  %v3593_v44 = vrot.slane %v3591_v0, 5  ;;  %v4046_v26 = vshll.u32 %v2827_v55, 16  ;;  %v5883_v30 = vld [vmem:[%s7247_s5 + $0x188] sm:$0xff]  }
 0x2a4   : > { %5579 = vmatpush3.bf16.msra.mxu0 %v5844_v49  ;;  %v3582_v49 = vshrl.u32 %v6991_v59, 16 }
 0x2a5   : > { %5551 = vmatpush3.bf16.msra.mxu1 %v5845_v46  ;;  %5580 = vmatprep.subr.bf16.mxu0 %v5846_v31  ;;  %v3585_v46 = vshll.u32 %v6991_v59, 16 }
 0x2a6   : > { %5552 = vmatprep.subr.bf16.mxu1 %v5847_v33 }
 0x2a8   : > { %5581 = vmatpush3.bf16.msra.mxu0 %v5846_v31  ;;  %v5869_v31 = vld [vmem:[%s7247_s5 + $0x1f0] sm:$0xff]  }
 0x2a9   : > { %5553 = vmatpush3.bf16.msra.mxu1 %v5847_v33  ;;  %5614 = vmatprep.subr.bf16.mxu0 %v5849_v34  ;;  %v4896_v33 = vcombine.low %v7002_v21, %v3274_v27  ;;  %v5878_v21 = vld [vmem:[%s7247_s5 + $0x1a0] sm:$0xff]  }
 0x2aa   : > { %5554 = vmatprep.subr.bf16.mxu1 %v5850_v23 }
 0x2ab   : > { %5583 = vmatmul.mubr.bf16.vlgmr.msra.gmra.mxu0 %v4838_v12  ;;  %v5870_v12 = vld [vmem:[%s7247_s5 + $0x100] sm:$0xff]  }
 0x2ac   : > { %5586 = vmatprep.mubr.bf16.mxu0 %v4839_v11  ;;  %5615 = vmatpush3.bf16.msra.mxu0 %v5849_v34  ;;  %v4877_v34 = vrot.slane %v6991_v59, 9  ;;  %v3587_v11 = vrot.slane %v3585_v46, 5 }
 0x2ad   : > { %5555 = vmatpush3.bf16.msra.mxu1 %v5850_v23  ;;  %5616 = vmatprep.subr.bf16.mxu0 %v5852_v48  ;;  %v3745_v23 = vrot.slane %v2825_v36, 5 }
 0x2ae   : > { %5556 = vmatprep.subr.bf16.mxu1 %v5853_v20 }
 0x2af   : > { %v7086_v45 = vsel %vm6345_vm5, %v4877_v34, %v3745_v23 }
 0x2b0   : > { %5617 = vmatpush3.bf16.msra.mxu0 %v5852_v48  ;;  %v3584_v48 = vrot.slane %v3582_v49, 4  ;;  %v4897_v13 = vcombine.low %v3278_v61, %v7086_v45  ;;  %v5884_v61 = vld [vmem:[%s7247_s5 + $0x180] sm:$0xff]  }
 0x2b1   : > { %5557 = vmatpush3.bf16.msra.mxu1 %v5853_v20  ;;  %5618 = vmatprep.subr.bf16.mxu0 %v5855_v18  ;;  %v5871_v20 = vld [vmem:[%s7247_s5 + $0x1e8] sm:$0xff]  }
 0x2b2   : > { %5590 = vmatprep.subr.bf16.mxu1 %v5856_v50  ;;  %v3588_v62 = vor.u32 %v3587_v11, %v3584_v48 }
 0x2b3   : > { %5587 = vmatmul.mubr.bf16.gmra.mxu0 %v4840_v28  ;;  %v7118_v28 = vld [vmem:[#allocation3 + $0x48] sm:$0xf] }
 0x2b4   : > { %5559 = vmatmul.mubr.bf16.vlgmr.msra.gmra.mxu1 %v7011_v54  ;;  %5619 = vmatpush3.bf16.msra.mxu0 %v5855_v18  ;;  %v5873_v18 = vld [vmem:[%s7247_s5 + $0x1e0] sm:$0xff]   ;;  %v3589_v25 = vrot.slane %v3588_v62, 4  ;;  %v4037_v40 = vshrl.u32 %v7118_v28, 16 }
 0x2b5   : > { %5630 = vmatprep.mubr.bf16.mxu0 %v4894_v47  ;;  %5562 = vmatprep.mubr.bf16.mxu1 %v7020_v41  ;;  %v5881_v47 = vld [vmem:[%s7247_s5 + $0x1c0] sm:$0xff]  }
 0x2b6   : > { %5591 = vmatpush3.bf16.msra.mxu1 %v5856_v50  ;;  %5620 = vmatprep.subr.bf16.mxu0 %v5857_v39  ;;  %v5874_v50 = vld [vmem:[%s7247_s5 + $0x1b0] sm:$0xff]  }
 0x2b7   : > { %5592 = vmatprep.subr.bf16.mxu1 %v5858_v15 }
 0x2b8   : > { %5621 = vmatpush3.bf16.msra.mxu0 %v5857_v39  ;;  %v5880_v39 = vld [vmem:[%s7247_s5 + $0x198] sm:$0xff]  }
 0x2b9   : > { %5622 = vmatprep.subr.bf16.mxu0 %v5859_v8 }
 0x2ba   : > { %5593 = vmatpush3.bf16.msra.mxu1 %v5858_v15  ;;  %v4039_v15 = vrot.slane %v4037_v40, 4 }
 0x2bb   : > { %5594 = vmatprep.subr.bf16.mxu1 %v5860_v52 }
 0x2bc   : > { %5563 = vmatmul.mubr.bf16.gmra.mxu1 %v7044_v4  ;;  %5623 = vmatpush3.bf16.msra.mxu0 %v5859_v8 }
 0x2bd   : > { %5606 = vmatprep.mubr.bf16.mxu1 %v4865_v42  ;;  %5624 = vmatprep.subr.bf16.mxu0 %v5861_v32  ;;  %v5885_v42 = vld [vmem:[%s7247_s5 + $0x238] sm:$0xff]  }
 0x2be   : > { %5595 = vmatpush3.bf16.msra.mxu1 %v5860_v52  ;;  %v4048_v52 = vrot.slane %v4046_v26, 5 }
 0x2bf   : > { %5596 = vmatprep.subr.bf16.mxu1 %v5862_v6 }
 0x2c0   : > { %5625 = vmatpush3.bf16.msra.mxu0 %v5861_v32 }
 0x2c1   : > { %5626 = vmatprep.subr.bf16.mxu0 %v5863_v17 }
 0x2c2   : > { %5597 = vmatpush3.bf16.msra.mxu1 %v5862_v6 }
 0x2c3   : > { %5598 = vmatprep.subr.bf16.mxu1 %v5864_v57 }
 0x2c4   : > { %5627 = vmatpush3.bf16.msra.mxu0 %v5863_v17  ;;  %v5889_v17 = vld [vmem:[%s7247_s5 + $0x220] sm:$0xff]  }
 0x2c5   : > { %5628 = vmatprep.subr.bf16.mxu0 %v5865_v53 }
 0x2c6   : > { %5599 = vmatpush3.bf16.msra.mxu1 %v5864_v57  ;;  %v4956_v57 = vrot.slane %v7118_v28, 9 }
 0x2c7   : > { %5600 = vmatprep.subr.bf16.mxu1 %v5866_v56 }
 0x2c8   : > { %5629 = vmatpush3.bf16.msra.mxu0 %v5865_v53  ;;  %v4194_v53 = vrot.slane %v2827_v55, 5 }
 0x2c9   : > { %5662 = vmatprep.subr.bf16.mxu0 %v5867_v7 }
 0x2ca   : > { %5601 = vmatpush3.bf16.msra.mxu1 %v5866_v56  ;;  %v4195_v56 = vsel %vm6345_vm5, %v4956_v57, %v4194_v53 }
 0x2cb   : > { %5631 = vmatmul.mubr.bf16.vlgmr.msra.gmra.mxu0 %v4895_v29  ;;  %5602 = vmatprep.subr.bf16.mxu1 %v5868_v24 }
 0x2cc   : > { %5634 = vmatprep.mubr.bf16.mxu0 %v4896_v33  ;;  %5663 = vmatpush3.bf16.msra.mxu0 %v5867_v7  ;;  %v4973_v7 = vcombine.low %v7086_v45, %v4195_v56 }
 0x2cd   : > { %5664 = vmatprep.subr.bf16.mxu0 %v5869_v31 }
 0x2ce   : > { %5603 = vmatpush3.bf16.msra.mxu1 %v5868_v24 }
 0x2cf   : > { %5604 = vmatprep.subr.bf16.mxu1 %v5870_v12 }
 0x2d0   : > { %5665 = vmatpush3.bf16.msra.mxu0 %v5869_v31 }
 0x2d1   : > { %5666 = vmatprep.subr.bf16.mxu0 %v5871_v20 }
 0x2d2   : > { %5605 = vmatpush3.bf16.msra.mxu1 %v5870_v12 }
 0x2d3   : > { %5635 = vmatmul.mubr.bf16.gmra.mxu0 %v4897_v13  ;;  %5638 = vmatprep.subr.bf16.mxu1 %v5872_v38 }
 0x2d4   : > { %5667 = vmatpush3.bf16.msra.mxu0 %v5871_v20  ;;  %5678 = vmatprep.mubr.bf16.mxu0 %v6880_v43  ;;  %v3594_v43 = vsel %vm6000_vm3, %v3589_v25, %v3593_v44 }
 0x2d5   : > { %5607 = vmatmul.mubr.bf16.vlgmr.msra.gmra.mxu1 %v4866_v1  ;;  %5668 = vmatprep.subr.bf16.mxu0 %v5873_v18  ;;  %v4868_v9 = vcombine.low %v6946_v2, %v3594_v43  ;;  %v4040_v2 = vshll.u32 %v7118_v28, 16 }
 0x2d6   : > { %5610 = vmatprep.mubr.bf16.mxu1 %v4867_v14  ;;  %5639 = vmatpush3.bf16.msra.mxu1 %v5872_v38 }
 0x2d7   : > { %5640 = vmatprep.subr.bf16.mxu1 %v5874_v50  ;;  %v4042_v19 = vrot.slane %v4040_v2, 5 }
 0x2d8   : > { %5669 = vmatpush3.bf16.msra.mxu0 %v5873_v18 }
 0x2d9   : > { %5670 = vmatprep.subr.bf16.mxu0 %v5875_v16  ;;  %v4043_v8 = vor.u32 %v4042_v19, %v4039_v15 }
 0x2da   : > { %5641 = vmatpush3.bf16.msra.mxu1 %v5874_v50 }
 0x2db   : > { %5642 = vmatprep.subr.bf16.mxu1 %v5876_v37  ;;  %v4044_v27 = vrot.slane %v4043_v8, 4 }
 0x2dc   : > { %5671 = vmatpush3.bf16.msra.mxu0 %v5875_v16 }
 0x2dd   : > { %5611 = vmatmul.mubr.bf16.gmra.mxu1 %v4868_v9  ;;  %5672 = vmatprep.subr.bf16.mxu0 %v5877_v60  ;;  %v4049_v32 = vsel %vm6000_vm3, %v4044_v27, %v4048_v52  ;;  %vm4376_vm3 = vcmask 64512  }
 0x2de   : > { %5643 = vmatpush3.bf16.msra.mxu1 %v5876_v37  ;;  %5654 = vmatprep.mubr.bf16.mxu1 %v6818_v63  ;;  %v5882_v63 = vld [vmem:[%s7247_s5 + $0x190] sm:$0xff]   ;;  %v4947_v6 = vcombine.low %v3594_v43, %v4049_v32 }
 0x2df   : > { %5644 = vmatprep.subr.bf16.mxu1 %v5878_v21 }
 0x2e0   : > { %5673 = vmatpush3.bf16.msra.mxu0 %v5877_v60 }
 0x2e1   : > { %5674 = vmatprep.subr.bf16.mxu0 %v5879_v3 }
 0x2e2   : > { %5645 = vmatpush3.bf16.msra.mxu1 %v5878_v21 }
 0x2e3   : > { %5646 = vmatprep.subr.bf16.mxu1 %v5880_v39 }
 0x2e4   : > { %5675 = vmatpush3.bf16.msra.mxu0 %v5879_v3 }
 0x2e5   : > { %5676 = vmatprep.subr.bf16.mxu0 %v5881_v47 }
 0x2e6   : > { %5647 = vmatpush3.bf16.msra.mxu1 %v5880_v39 }
 0x2e7   : > { %5648 = vmatprep.subr.bf16.mxu1 %v5882_v63 }
 0x2e8   : > { %5677 = vmatpush3.bf16.msra.mxu0 %v5881_v47 }
 0x2ea   : > { %5649 = vmatpush3.bf16.msra.mxu1 %v5882_v63 }
 0x2eb   : > { %5679 = vmatmul.mubr.bf16.vlgmr.msra.gmra.mxu0 %v6923_v51  ;;  %5650 = vmatprep.subr.bf16.mxu1 %v5883_v30  ;;  %v5886_v51 = vld [vmem:[%s7247_s5 + $0x230] sm:$0xff]  }
 0x2ec   : > { %5682 = vmatprep.mubr.bf16.mxu0 %v6950_v35  ;;  %v4922_v35 = vcombine.low %v6991_v59, %v7118_v28  ;;  %v5892_v59 = vld [vmem:[%s7247_s5 + $0x208] sm:$0xff]  }
 0x2ee   : > { %5651 = vmatpush3.bf16.msra.mxu1 %v5883_v30 }
 0x2ef   : > { %5652 = vmatprep.subr.bf16.mxu1 %v5884_v61 }
 0x2f2   : > { %5653 = vmatpush3.bf16.msra.mxu1 %v5884_v61 }
 0x2f3   : > { %5683 = vmatmul.mubr.bf16.gmra.mxu0 %v4947_v6  ;;  %5686 = vmatprep.subr.bf16.mxu1 %v5885_v42 }
 0x2f5   : > { %5655 = vmatmul.mubr.bf16.vlgmr.msra.gmra.mxu1 %v6852_v22  ;;  %v5890_v22 = vld [vmem:[%s7247_s5 + $0x218] sm:$0xff]  }
 0x2f6   : > { %5658 = vmatprep.mubr.bf16.mxu1 %v6897_v5  ;;  %5687 = vmatpush3.bf16.msra.mxu1 %v5885_v42  ;;  %v5891_v5 = vld [vmem:[%s7247_s5 + $0x210] sm:$0xff]  }
 0x2f7   : > { %5688 = vmatprep.subr.bf16.mxu1 %v5886_v51 }
 0x2fa   : > { %5689 = vmatpush3.bf16.msra.mxu1 %v5886_v51 }
 0x2fb   : > { %5690 = vmatprep.subr.bf16.mxu1 %v5888_v58 }
 0x2fd   : > { %5659 = vmatmul.mubr.bf16.gmra.mxu1 %v4922_v35 }
 0x2fe   : > { %5691 = vmatpush3.bf16.msra.mxu1 %v5888_v58  ;;  %5702 = vmatprep.mubr.bf16.mxu1 %v7011_v54  ;;  %v5893_v54 = vld [vmem:[%s7247_s5 + $0x200] sm:$0xff]  }
 0x2ff   : > { %5692 = vmatprep.subr.bf16.mxu1 %v5889_v17 }
 0x302   : > { %5693 = vmatpush3.bf16.msra.mxu1 %v5889_v17 }
 0x303   : > { %5694 = vmatprep.subr.bf16.mxu1 %v5890_v22 }
 0x306   : > { %5695 = vmatpush3.bf16.msra.mxu1 %v5890_v22 }
 0x307   : > { %5696 = vmatprep.subr.bf16.mxu1 %v5891_v5 }
 0x30a   : > { %5697 = vmatpush3.bf16.msra.mxu1 %v5891_v5 }
 0x30b   : > { %5698 = vmatprep.subr.bf16.mxu1 %v5892_v59 }
 0x30e   : > { %5699 = vmatpush3.bf16.msra.mxu1 %v5892_v59 }
 0x30f   : > { %5700 = vmatprep.subr.bf16.mxu1 %v5893_v54 }
 0x312   : > { %5701 = vmatpush3.bf16.msra.mxu1 %v5893_v54 }
 0x315   : > { %5703 = vmatmul.mubr.bf16.vlgmr.msra.gmra.mxu1 %v7020_v41 }
 0x316   : > { %5706 = vmatprep.mubr.bf16.mxu1 %v7044_v4 }
 0x31d   : > { %5707 = vmatmul.mubr.bf16.gmra.mxu1 %v4973_v7 }
 0x34a   : > { %v5536_v29 = vpop.f32.mrf.mxu0 }
 0x34c   : > { %v3208_v33 = vpop.f32.mrf.mxu0 }
 0x34e   : > { %v5537_v23 = vpop.f32.mrf.mxu0 }
 0x350   : > { %v3211_v41 = vpop.f32.mrf.mxu0 }
 0x354   : > { %v5512_v24 = vpop.f32.mrf.mxu1 }
 0x355   : > { %v3217_v42 = vadd.f32 %v5536_v29, %v5512_v24 }
 0x356   : > { %v3071_v36 = vpop.f32.mrf.mxu1 }
 0x357   : > { %v5540_v10 = vpop.f32.mrf.mxu0  ;;  %v3209_v51 = vadd.f32 %v3208_v33, %v3071_v36 }
 0x358   : > { %v5513_v49 = vpop.f32.mrf.mxu1 }
 0x359   : > { %v3224_v20 = vpop.f32.mrf.mxu0  ;;  %v3220_v17 = vadd.f32 %v5537_v23, %v5513_v49 }
 0x35a   : > { %v3074_v46 = vpop.f32.mrf.mxu1 }
 0x35b   : > { %v5541_v38 = vpop.f32.mrf.mxu0  ;;  %v3212_v53 = vadd.f32 %v3211_v41, %v3074_v46 }
 0x35d   : > { %v7184_v13 = vpop.f32.mrf.mxu0 }
 0x35e   : > { %7284 = vst [vmem:[#allocation4_spill] sm:$0xff] %v7184_v13 }
 0x360   : > { %v5516_v31 = vpop.f32.mrf.mxu1 }
 0x361   : > { %v3233_v56 = vadd.f32 %v5540_v10, %v5516_v31 }
 0x362   : > { %v3087_v34 = vpop.f32.mrf.mxu1 }
 0x364   : > { %v7180_v12 = vpop.f32.mrf.mxu1 }
 0x365   : > { %v3236_v33 = vadd.f32 %v5541_v38, %v7180_v12  ;;  %v7289_v10 = vld [vmem:[#allocation4_spill] sm:$0xff] }
 0x366   : > { %v7182_v48 = vpop.f32.mrf.mxu1 }
 0x36b   : > { %v5584_v18 = vpop.f32.mrf.mxu0 }
 0x36d   : > { %v3542_v1 = vpop.f32.mrf.mxu0 }
 0x36f   : > { %v5585_v14 = vpop.f32.mrf.mxu0 }
 0x371   : > { %v3545_v16 = vpop.f32.mrf.mxu0 }
 0x373   : > { %v5588_v43 = vpop.f32.mrf.mxu0 }
 0x374   : > { %v5560_v4 = vpop.f32.mrf.mxu1 }
 0x375   : > { %v3558_v9 = vpop.f32.mrf.mxu0  ;;  %v3427_v58 = vadd.f32 %v5560_v4, %v3217_v42 }
 0x376   : > { %v3394_v11 = vpop.f32.mrf.mxu1 }
 0x377   : > { %v5589_v28 = vpop.f32.mrf.mxu0  ;;  %v3425_v22 = vadd.f32 %v3394_v11, %v3209_v51  ;;  %v3575_v57 = vadd.f32 %v5584_v18, %v3427_v58 }
 0x378   : > { %v5561_v45 = vpop.f32.mrf.mxu1 }
 0x379   : > { %v7188_v40 = vpop.f32.mrf.mxu0  ;;  %v3428_v54 = vadd.f32 %v5561_v45, %v3220_v17 }
 0x37a   : > { %v3397_v62 = vpop.f32.mrf.mxu1  ;;  %7286 = vst [vmem:[#allocation6_spill] sm:$0xff] %v7188_v40 }
 0x37b   : > { %v3426_v13 = vadd.f32 %v3397_v62, %v3212_v53  ;;  %v3576_v36 = vadd.f32 %v5585_v14, %v3428_v54 }
 0x37c   : > { %v5564_v0 = vpop.f32.mrf.mxu1 }
 0x37d   : > { %v3574_v45 = vadd.f32 %v3545_v16, %v3426_v13 }
 0x37e   : > { %v3410_v50 = vpop.f32.mrf.mxu1 }
 0x380   : > { %v5565_v25 = vpop.f32.mrf.mxu1 }
 0x381   : > { %v3432_v42 = vadd.f32 %v5565_v25, %v3236_v33 }
 0x382   : > { %v7186_v44 = vpop.f32.mrf.mxu1 }
 0x383   : > { %7285 = vst [vmem:[#allocation5_spill] sm:$0xff] %v7186_v44  ;;  %v3225_v44 = vadd.f32 %v3224_v20, %v3087_v34  ;;  %v3228_v34 = vadd.f32 %v7289_v10, %v7182_v48  ;;  %v7203_v48 = vld [vmem:[%s7248_s6] ss:$0 sm:$0xff] }
 0x385   : > { %v3429_v4 = vadd.f32 %v3410_v50, %v3225_v44  ;;  %v3580_v44 = vadd.f32 %v5589_v28, %v3432_v42 }
 0x38a   : > { %v7290_v12 = vld [vmem:[#allocation5_spill] sm:$0xff] }
 0x38b   : > { %v5632_v2 = vpop.f32.mrf.mxu0  ;;  %v3430_v38 = vadd.f32 %v7290_v12, %v3228_v34 }
 0x38d   : > { %v3855_v47 = vpop.f32.mrf.mxu0 }
 0x38f   : > { %v5633_v19 = vpop.f32.mrf.mxu0 }
 0x391   : > { %v3858_v55 = vpop.f32.mrf.mxu0 }
 0x393   : > { %v5636_v30 = vpop.f32.mrf.mxu0 }
 0x395   : > { %v5608_v37 = vpop.f32.mrf.mxu1  ;;  %v3871_v52 = vpop.f32.mrf.mxu0 }
 0x396   : > { %v3736_v7 = vadd.f32 %v5608_v37, %v3575_v57 }
 0x397   : > { %v3703_v60 = vpop.f32.mrf.mxu1  ;;  %v7192_v32 = vpop.f32.mrf.mxu0 }
 0x398   : > { %7288 = vst [vmem:[#allocation8_spill] sm:$0xff] %v7192_v32  ;;  %v3431_v32 = vadd.f32 %v5564_v0, %v3233_v56  ;;  %v3888_v11 = vadd.f32 %v5632_v2, %v3736_v7  ;;  %v3577_v0 = vadd.f32 %v3558_v9, %v3429_v4 }
 0x399   : > { %v5609_v21 = vpop.f32.mrf.mxu1  ;;  %v7194_v35 = vpop.f32.mrf.mxu0 }
 0x39a   : > { %v3737_v49 = vadd.f32 %v5609_v21, %v3576_v36  ;;  %v3579_v18 = vadd.f32 %v5588_v43, %v3431_v32 }
 0x39b   : > { %v3706_v3 = vpop.f32.mrf.mxu1 }
 0x39c   : > { %v3735_v20 = vadd.f32 %v3706_v3, %v3574_v45  ;;  %v3889_v37 = vadd.f32 %v5633_v19, %v3737_v49 }
 0x39d   : > { %v5612_v39 = vpop.f32.mrf.mxu1 }
 0x39e   : > { %v3740_v62 = vadd.f32 %v5612_v39, %v3579_v18 }
 0x39f   : > { %v3719_v15 = vpop.f32.mrf.mxu1  ;;  %v7293_v51 = vld [vmem:[#allocation8_spill] sm:$0xff] }
 0x3a0   : > { %v3738_v50 = vadd.f32 %v3719_v15, %v3577_v0  ;;  %v3892_v21 = vadd.f32 %v5636_v30, %v3740_v62 }
 0x3a1   : > { %v5613_v63 = vpop.f32.mrf.mxu1 }
 0x3a2   : > { %v3741_v43 = vadd.f32 %v5613_v63, %v3580_v44 }
 0x3a3   : > { %v7190_v8 = vpop.f32.mrf.mxu1 }
 0x3a4   : > { %7287 = vst [vmem:[#allocation10_spill] sm:$0xff] %v7190_v8  ;;  %v3573_v8 = vadd.f32 %v3542_v1, %v3425_v22  ;;  %v3893_v58 = vadd.f32 %v7293_v51, %v3741_v43 }
 0x3a6   : > { %v3734_v29 = vadd.f32 %v3703_v60, %v3573_v8  ;;  %v3887_v60 = vadd.f32 %v3858_v55, %v3735_v20  ;;  %v3890_v8 = vadd.f32 %v3871_v52, %v3738_v50 }
 0x3a8   : > { %v3886_v41 = vadd.f32 %v3855_v47, %v3734_v29  ;;  %v7291_v47 = vld [vmem:[#allocation6_spill] sm:$0xff] }
 0x3a9   : > { %v3578_v19 = vadd.f32 %v7291_v47, %v3430_v38 }
 0x3ab   : > { %v5680_v5 = vpop.f32.mrf.mxu0 }
 0x3ad   : > { %v4152_v40 = vpop.f32.mrf.mxu0 }
 0x3af   : > { %v5681_v23 = vpop.f32.mrf.mxu0 }
 0x3b1   : > { %v4155_v1 = vpop.f32.mrf.mxu0 }
 0x3b3   : > { %v5684_v9 = vpop.f32.mrf.mxu0 }
 0x3b5   : > { %v5656_v26 = vpop.f32.mrf.mxu1  ;;  %v4168_v22 = vpop.f32.mrf.mxu0 }
 0x3b6   : > { %v4030_v31 = vadd.f32 %v5656_v26, %v3888_v11 }
 0x3b7   : > { %v3997_v27 = vpop.f32.mrf.mxu1  ;;  %v5685_v4 = vpop.f32.mrf.mxu0 }
 0x3b8   : > { %v4028_v14 = vadd.f32 %v3997_v27, %v3886_v41  ;;  %v4185_v16 = vadd.f32 %v5680_v5, %v4030_v31  ;;  %v7292_v27 = vld [vmem:[#allocation10_spill] sm:$0xff] }
 0x3b9   : > { %v5657_v61 = vpop.f32.mrf.mxu1  ;;  %v4171_v20 = vpop.f32.mrf.mxu0 }
 0x3ba   : > { %v4031_v13 = vadd.f32 %v5657_v61, %v3889_v37  ;;  %v4183_v39 = vadd.f32 %v4152_v40, %v4028_v14  ;;  %v3739_v61 = vadd.f32 %v7292_v27, %v3578_v19 }
 0x3bb   : > { %v4000_v6 = vpop.f32.mrf.mxu1 }
 0x3bc   : > { %v4029_v15 = vadd.f32 %v4000_v6, %v3887_v60  ;;  %v4186_v30 = vadd.f32 %v5681_v23, %v4031_v13 }
 0x3bd   : > { %v5660_v59 = vpop.f32.mrf.mxu1 }
 0x3be   : > { %v4034_v28 = vadd.f32 %v5660_v59, %v3892_v21  ;;  %v4184_v59 = vadd.f32 %v4155_v1, %v4029_v15 }
 0x3bf   : > { %v4013_v24 = vpop.f32.mrf.mxu1 }
 0x3c0   : > { %v4032_v32 = vadd.f32 %v4013_v24, %v3890_v8  ;;  %v4189_v57 = vadd.f32 %v5684_v9, %v4034_v28  ;;  %v3891_v24 = vadd.f32 %v7194_v35, %v3739_v61 }
 0x3c1   : > { %v5661_v46 = vpop.f32.mrf.mxu1 }
 0x3c2   : > { %v4035_v5 = vadd.f32 %v5661_v46, %v3893_v58  ;;  %v4187_v33 = vadd.f32 %v4168_v22, %v4032_v32 }
 0x3c3   : > { %v4016_v25 = vpop.f32.mrf.mxu1 }
 0x3c4   : > { %v4033_v42 = vadd.f32 %v4016_v25, %v3891_v24  ;;  %v4190_v41 = vadd.f32 %v5685_v4, %v4035_v5 }
 0x3c6   : > { %v4188_v37 = vadd.f32 %v4171_v20, %v4033_v42 }
 0x3d5   : > { %v5704_v2 = vpop.f32.mrf.mxu1 }
 0x3d6   : > { %v4331_v3 = vadd.f32 %v5704_v2, %v4185_v16 }
 0x3d7   : > { %v4298_v26 = vpop.f32.mrf.mxu1 }
 0x3d8   : > { %v4346_v63 = vadd.f32 %v7203_v48, %v4331_v3  ;;  %v4329_v55 = vadd.f32 %v4298_v26, %v4183_v39 }
 0x3d9   : > { %v5705_v17 = vpop.f32.mrf.mxu1 }
 0x3da   : > { %vm4354_vm11 = vcmp.ge.f32.partialorder %v4346_v63, 0.0  ;;  %v4362_v40 = vmul.f32 0.1, %v4346_v63  ;;  %v4344_v52 = vadd.f32 %v7203_v48, %v4329_v55  ;;  %v4332_v6 = vadd.f32 %v5705_v17, %v4186_v30 }
 0x3db   : > { %v4301_v54 = vpop.f32.mrf.mxu1 }
 0x3dc   : > { %v4370_v53 = vsel %vm4354_vm11, %v4346_v63, %v4362_v40  ;;  %vm4352_vm12 = vcmp.ge.f32.partialorder %v4344_v52, 0.0  ;;  %v4360_v56 = vmul.f32 0.1, %v4344_v52  ;;  %v4347_v7 = vadd.f32 %v7203_v48, %v4332_v6 }
 0x3dd   : > { %4379 = vst.msk [vmem:[%s7213_s18 + $0x10] sm:$0xff] %vm4376_vm3, %v4370_v53  ;;  %v4330_v29 = vadd.f32 %v4301_v54, %v4184_v59  ;;  %v5708_v36 = vpop.f32.mrf.mxu1 }
 0x3de   : > { %v4368_v49 = vsel %vm4352_vm12, %v4344_v52, %v4360_v56  ;;  %vm4355_vm0 = vcmp.ge.f32.partialorder %v4347_v7, 0.0  ;;  %v4363_v23 = vmul.f32 0.1, %v4347_v7  ;;  %v4335_v11 = vadd.f32 %v5708_v36, %v4189_v57 }
 0x3df   : > { %4377 = vst.msk [vmem:[%s7213_s18] sm:$0xff] %vm4376_vm3, %v4368_v49  ;;  %v4345_v45 = vadd.f32 %v7203_v48, %v4330_v29  ;;  %v4314_v18 = vpop.f32.mrf.mxu1 }
 0x3e0   : > { %v4371_v46 = vsel %vm4355_vm0, %v4347_v7, %v4363_v23  ;;  %v4350_v35 = vadd.f32 %v7203_v48, %v4335_v11  ;;  %v4333_v31 = vadd.f32 %v4314_v18, %v4187_v33 }
 0x3e1   : > { %4380 = vst.msk [vmem:[%s7213_s18 + $0x18] sm:$0xff] %vm4376_vm3, %v4371_v46  ;;  %vm4353_vm1 = vcmp.ge.f32.partialorder %v4345_v45, 0.0  ;;  %v4361_v10 = vmul.f32 0.1, %v4345_v45  ;;  %v5709_v34 = vpop.f32.mrf.mxu1 }
 0x3e2   : > { %vm4358_vm2 = vcmp.ge.f32.partialorder %v4350_v35, 0.0  ;;  %v4366_v62 = vmul.f32 0.1, %v4350_v35  ;;  %v4348_v0 = vadd.f32 %v7203_v48, %v4333_v31  ;;  %v4336_v1 = vadd.f32 %v5709_v34, %v4190_v41 }
 0x3e3   : > { %v4369_v14 = vsel %vm4353_vm1, %v4345_v45, %v4361_v10  ;;  %v4317_v12 = vpop.f32.mrf.mxu1 }
 0x3e4   : > { %4378 = vst.msk [vmem:[%s7213_s18 + $0x8] sm:$0xff] %vm4376_vm3, %v4369_v14  ;;  %v4374_v38 = vsel %vm4358_vm2, %v4350_v35, %v4366_v62  ;;  %vm4356_vm4 = vcmp.ge.f32.partialorder %v4348_v0, 0.0  ;;  %v4364_v50 = vmul.f32 0.1, %v4348_v0  ;;  %v4351_v44 = vadd.f32 %v7203_v48, %v4336_v1 }
 0x3e5   : > { %4383 = vst.msk [vmem:[%s7213_s18 + $0x30] sm:$0xff] %vm4376_vm3, %v4374_v38  ;;  %v4334_v25 = vadd.f32 %v4317_v12, %v4188_v37 }
 0x3e6   : > { %v4372_v13 = vsel %vm4356_vm4, %v4348_v0, %v4364_v50  ;;  %vm4359_vm5 = vcmp.ge.f32.partialorder %v4351_v44, 0.0  ;;  %v4367_v16 = vmul.f32 0.1, %v4351_v44 }
 0x3e7   : > { %4381 = vst.msk [vmem:[%s7213_s18 + $0x20] sm:$0xff] %vm4376_vm3, %v4372_v13  ;;  %v4349_v43 = vadd.f32 %v7203_v48, %v4334_v25 }
 0x3e8   : > { %v4375_v60 = vsel %vm4359_vm5, %v4351_v44, %v4367_v16 }
 0x3e9   : > { %4384 = vst.msk [vmem:[%s7213_s18 + $0x38] sm:$0xff] %vm4376_vm3, %v4375_v60  ;;  %vm4357_vm6 = vcmp.ge.f32.partialorder %v4349_v43, 0.0  ;;  %v4365_v21 = vmul.f32 0.1, %v4349_v43 }
 0x3eb   : > { %v4373_v2 = vsel %vm4357_vm6, %v4349_v43, %v4365_v21 }
 0x3ec   : > { %4382 = vst.msk [vmem:[%s7213_s18 + $0x28] sm:$0xff] %vm4376_vm3, %v4373_v2 }
 0x3ed PF: > { %s17_s24 = sadd.s32 1, %s5900_s24  }
 0x3ee   : > { %p14_p4 = scmp.ge.s32.totalorder %s17_s24, 4  }
 0x3f0   :  { %16 = sbr.rel (!%p14_p4) target bundleno = 1 (0x1), region = 99 }

</bundles_post_ra>
